<compile_context>
chip_gen: v5e
topology: v5e:2x2
jax: 0.10.0
libtpu: 0.0.40
codegen_flags: <defaults>
</compile_context>

<pallas_src>
import functools

import jax
import jax.numpy as jnp
from jax import lax
from jax.experimental import pallas as pl
from jax.experimental.pallas import tpu as pltpu


def _round_up(x, m):
    return ((x + m - 1) // m) * m


def mh_attn_kernel(xq_ref, xk_ref, xv_ref, wqT_ref, wkT_ref, wvT_ref,
                   wzT_ref, bz_ref, out_ref, attn_ref,
                   q_s, k_s, v_s, z_s,
                   *, num_heads, head_dim, sk_valid, approx_recip, exp_dtype):
    # xq_ref: (1, TSq, D)   xk_ref/xv_ref: (1, Sk_pad, D)
    # wqT/wkT/wvT_ref: (D, D) block-diagonal, pre-transposed per-head weights
    # wzT_ref: (D, D) pre-transposed output weight     bz_ref: (1, D) f32
    # out_ref: (1, TSq, D) f32   attn_ref: (1, H, TSq, Sk_pad) (bf16 or f32)
    # q_s/k_s/v_s: compute-dtype VMEM scratch; z_s: (TSq, D) f32 scratch slab.
    scale = 1.0 / (float(head_dim) ** 0.25)
    cdt = q_s.dtype                      # MXU input dtype (bf16 on the fast path)
    tsq = q_s.shape[0]
    sk_pad = k_s.shape[0]

    # Fused Q/K/V projections: one lane-dense (S,D)@(D,D) matmul each
    # (block-diagonal weights reproduce the H per-head nn.Linear layers exactly).
    q = jnp.dot(xq_ref[0], wqT_ref[...], preferred_element_type=jnp.float32) * scale
    k = jnp.dot(xk_ref[0], wkT_ref[...], preferred_element_type=jnp.float32) * scale
    v = jnp.dot(xv_ref[0], wvT_ref[...], preferred_element_type=jnp.float32)
    # Park q/k/v in VMEM: bounds vreg live ranges across the head loop (each head
    # re-loads only its narrow column slices) and feeds the MXU in `cdt`.
    q_s[...] = q.astype(cdt)
    k_s[...] = k.astype(cdt)
    v_s[...] = v.astype(cdt)

    need_mask = sk_valid < sk_pad
    if need_mask:
        col = lax.broadcasted_iota(jnp.int32, (tsq, sk_pad), 1)
        key_valid = col < sk_valid

    # Static unroll over heads (H is small). Per-head slices are sub-128-lane
    # when head_dim < 128 (masked loads/stores in the bundle); acceptable since
    # this kernel is bound by the attention-map HBM writeback.
    for h in range(num_heads):
        lo = h * head_dim
        q_h = q_s[:, lo:lo + head_dim]       # (TSq, hd)
        k_h = k_s[:, lo:lo + head_dim]       # (Sk_pad, hd)
        v_h = v_s[:, lo:lo + head_dim]       # (Sk_pad, hd)

        # s = q_h @ k_h.T expressed as an NT contraction -> no explicit transpose.
        s = lax.dot_general(q_h, k_h, (((1,), (1,)), ((), ())),
                            preferred_element_type=jnp.float32)     # (TSq, Sk_pad)
        s = s - jnp.max(s, axis=-1, keepdims=True)
        e = jnp.exp(s.astype(exp_dtype)).astype(jnp.float32)
        if need_mask:
            e = jnp.where(key_valid, e, 0.0)         # zero padded key columns
        denom = jnp.sum(e, axis=-1, keepdims=True)
        p = e * pl.reciprocal(denom, approx=approx_recip)

        # Attention-map writeback (the roofline term); bf16 on the fast path.
        attn_ref[0, h] = p.astype(attn_ref.dtype)
        # Per-head output goes straight into its column slab of the f32 z scratch.
        z_s[:, lo:lo + head_dim] = jnp.dot(p.astype(cdt), v_h,
                                           preferred_element_type=jnp.float32)

    # Output projection (pre-transposed weight) + bias, f32 accumulation.
    out_ref[0] = (jnp.dot(z_s[...].astype(cdt), wzT_ref[...],
                          preferred_element_type=jnp.float32) + bz_ref[0])


def _block_diag_transposed(w, dtype):
    """(H, hd, hd) torch-layout (out,in) weights -> (D, D) block-diag of per-head W.T."""
    H, hd, _ = w.shape
    wt = jnp.transpose(w, (0, 2, 1))                       # per-head W.T
    eye = jnp.eye(H, dtype=w.dtype)
    return jnp.einsum("hij,hg->higj", wt, eye).reshape(H * hd, H * hd).astype(dtype)


def mh_self_attention_narrow(xq, xk, xv, wq, wk, wv, wz, bz, *,
                             use_bf16=True, bf16_exp=False, block_sq=None):
    B, Sq, D = xq.shape
    Sk = xk.shape[1]
    H, hd, _ = wq.shape
    assert H * hd == D

    compute_dtype = jnp.bfloat16 if use_bf16 else jnp.float32
    attn_dtype = jnp.bfloat16 if use_bf16 else jnp.float32
    exp_dtype = jnp.bfloat16 if bf16_exp else jnp.float32   # bf16 EUP: v6e/v7x only

    # One-time wrapper-side layout plumbing (free relative to the kernel).
    wqT = _block_diag_transposed(wq, compute_dtype)
    wkT = _block_diag_transposed(wk, compute_dtype)
    wvT = _block_diag_transposed(wv, compute_dtype)
    wzT = wz.T.astype(compute_dtype)                        # nn.Linear: y = x @ W.T + b
    bz2 = bz.reshape(1, D).astype(jnp.float32)              # bias added in f32

    # Lane-dense key axis: pad Sk to a multiple of 128 so the attn writeback is
    # full-width vst; padded key columns are masked to zero inside the kernel.
    sk_pad = _round_up(Sk, 128)

    # ---- Per-generation VMEM-aware tile sizing --------------------------------
    try:
        vmem_cap = int(pltpu.get_tpu_info().vmem_capacity_bytes)
    except Exception:
        vmem_cap = 64 * 1024 * 1024                         # conservative (v7x per-TC)
    if vmem_cap <= 0:
        vmem_cap = 64 * 1024 * 1024
    vmem_limit = max(32 * 1024 * 1024,
                     min(int(vmem_cap * 0.85), 100 * 1024 * 1024))
    budget = int(vmem_limit * 0.85)                         # headroom for compiler scratch

    attn_b = jnp.dtype(attn_dtype).itemsize
    in_b = jnp.dtype(compute_dtype).itemsize

    def _footprint(tsq):
        return (2 * H * tsq * sk_pad * attn_b               # attn out tile (dbl-buffered)
                + 2 * tsq * D * 4                           # out tile (f32)
                + 2 * tsq * D * in_b                        # xq tile
                + 2 * 2 * sk_pad * D * in_b                 # xk, xv tiles
                + 2 * (4 * D * D * in_b + D * 4)            # weights + bias (worst case 2x)
                + (tsq + 2 * sk_pad) * D * in_b             # q/k/v scratch
                + tsq * D * 4)                              # z scratch (f32)

    if block_sq is None:
        cap = min(512, _round_up(Sq, 8))
        block_sq = 8
        for cand in (512, 384, 256, 192, 128, 96, 64, 48, 32, 16, 8):
            if cand <= cap and _footprint(cand) <= budget:
                block_sq = cand
                break
    block_sq = max(8, _round_up(min(block_sq, _round_up(Sq, 8)), 8))

    sq_pad = _round_up(Sq, block_sq)
    n_sq = sq_pad // block_sq
    # Megacore (v7x has 2 TensorCores): make sure there are >= 2 grid points.
    if B * n_sq < 2 and block_sq > 8:
        block_sq = max(8, _round_up(block_sq // 2, 8))
        sq_pad = _round_up(Sq, block_sq)
        n_sq = sq_pad // block_sq

    # Wrapper-side padding (mask/slice on the way out); also halves input DMA on bf16.
    xq_c = xq.astype(compute_dtype)
    xk_c = xk.astype(compute_dtype)
    xv_c = xv.astype(compute_dtype)
    if sq_pad != Sq:
        xq_c = jnp.pad(xq_c, ((0, 0), (0, sq_pad - Sq), (0, 0)))
    if sk_pad != Sk:
        xk_c = jnp.pad(xk_c, ((0, 0), (0, sk_pad - Sk), (0, 0)))
        xv_c = jnp.pad(xv_c, ((0, 0), (0, sk_pad - Sk), (0, 0)))

    kernel = functools.partial(
        mh_attn_kernel, num_heads=H, head_dim=hd, sk_valid=Sk,
        approx_recip=use_bf16, exp_dtype=exp_dtype)

    def build_and_run(single_buffer_invariants):
        inv_kwargs = (dict(pipeline_mode=pl.Buffered(1))
                      if single_buffer_invariants else {})
        w_spec = pl.BlockSpec((D, D), lambda b, s: (0, 0), **inv_kwargs)
        b_spec = pl.BlockSpec((1, D), lambda b, s: (0, 0), **inv_kwargs)

        grid_spec = pltpu.PrefetchScalarGridSpec(
            num_scalar_prefetch=0,
            grid=(B, n_sq),
            in_specs=[
                pl.BlockSpec((1, block_sq, D), lambda b, s: (b, s, 0)),
                pl.BlockSpec((1, sk_pad, D), lambda b, s: (b, 0, 0)),
                pl.BlockSpec((1, sk_pad, D), lambda b, s: (b, 0, 0)),
                w_spec, w_spec, w_spec, w_spec, b_spec,
            ],
            out_specs=[
                pl.BlockSpec((1, block_sq, D), lambda b, s: (b, s, 0)),
                pl.BlockSpec((1, H, block_sq, sk_pad), lambda b, s: (b, 0, s, 0)),
            ],
            scratch_shapes=[
                pltpu.VMEM((block_sq, D), compute_dtype),    # q
                pltpu.VMEM((sk_pad, D), compute_dtype),      # k
                pltpu.VMEM((sk_pad, D), compute_dtype),      # v
                pltpu.VMEM((block_sq, D), jnp.float32),      # z (head-concat slab)
            ],
        )
        out_shapes = (
            jax.ShapeDtypeStruct((B, sq_pad, D), jnp.float32),
            jax.ShapeDtypeStruct((B, H, sq_pad, sk_pad), attn_dtype),
        )
        return pl.pallas_call(
            kernel,
            out_shape=out_shapes,
            grid_spec=grid_spec,
            compiler_params=pltpu.CompilerParams(
                dimension_semantics=("parallel", "parallel"),
                vmem_limit_bytes=vmem_limit),
        )(xq_c, xk_c, xv_c, wqT, wkT, wvT, wzT, bz2)

    try:
        # Single-buffer the grid-invariant weights/bias (constant index_map;
        # double-buffering them only wastes VMEM that could grow block_sq).
        out, attn = build_and_run(True)
    except Exception:
        # pipeline_mode=pl.Buffered(1) not supported on this jax version.
        out, attn = build_and_run(False)

    if sq_pad != Sq:
        out = out[:, :Sq, :]
        attn = attn[:, :, :Sq, :]
    if sk_pad != Sk:
        attn = attn[:, :, :, :Sk]
    return out, attn


def reference_forward(xq, xk, xv, wq, wk, wv, wz, bz):
    """Pure-JAX reference mirroring the PyTorch module (mask=None)."""
    H, hd, _ = wq.shape
    scale = 1.0 / (float(hd) ** 0.25)
    outs, attns = [], []
    for h in range(H):
        lo, hi = h * hd, (h + 1) * hd
        q = jnp.einsum("bsd,ed->bse", xq[:, :, lo:hi], wq[h]) * scale
        k = jnp.einsum("bsd,ed->bse", xk[:, :, lo:hi], wk[h]) * scale
        v = jnp.einsum("bsd,ed->bse", xv[:, :, lo:hi], wv[h])
        s = jnp.einsum("bqe,bke->bqk", q, k)
        p = jax.nn.softmax(s, axis=-1)
        attns.append(p)
        outs.append(jnp.einsum("bqk,bke->bqe", p, v))
    z = jnp.concatenate(outs, axis=-1)
    out = jnp.einsum("bsd,ed->bse", z, wz) + bz[None, None, :]
    return out, jnp.stack(attns, axis=1)


if __name__ == "__main__":
    # Small shapes implied by the module: (batch, seq, input_size), heads divide input_size.
    B, Sq, Sk, D, H = 2, 8, 8, 32, 4
    hd = D // H

    key = jax.random.PRNGKey(0)
    keys = jax.random.split(key, 8)
    xq = jax.random.normal(keys[0], (B, Sq, D), dtype=jnp.float32)
    xk = jax.random.normal(keys[1], (B, Sk, D), dtype=jnp.float32)
    xv = jax.random.normal(keys[2], (B, Sk, D), dtype=jnp.float32)

    # Parameters in torch nn.Linear layout: (out_features, in_features).
    wq = 0.1 * jax.random.normal(keys[3], (H, hd, hd), dtype=jnp.float32)
    wk = 0.1 * jax.random.normal(keys[4], (H, hd, hd), dtype=jnp.float32)
    wv = 0.1 * jax.random.normal(keys[5], (H, hd, hd), dtype=jnp.float32)
    wz = 0.1 * jax.random.normal(keys[6], (D, D), dtype=jnp.float32)
    bz = 0.1 * jax.random.normal(keys[7], (D,), dtype=jnp.float32)

    ref_out, ref_attn = reference_forward(xq, xk, xv, wq, wk, wv, wz, bz)

    # Precise path: f32 MXU inputs, f32 attention writeback, exact reciprocal.
    out32, attn32 = mh_self_attention_narrow(
        xq, xk, xv, wq, wk, wv, wz, bz, use_bf16=False)
    out32 = jax.block_until_ready(out32)
    attn32 = jax.block_until_ready(attn32)
    assert jnp.allclose(out32, ref_out, atol=1e-4, rtol=1e-4), "f32 output mismatch"
    assert jnp.allclose(attn32, ref_attn, atol=1e-4, rtol=1e-4), "f32 attention mismatch"

    # Fast (default) path: bf16 MXU inputs + bf16 attention writeback.
    out16, attn16 = mh_self_attention_narrow(xq, xk, xv, wq, wk, wv, wz, bz)
    out16 = jax.block_until_ready(out16)
    attn16 = jax.block_until_ready(attn16)
    assert jnp.allclose(out16, ref_out, atol=3e-2, rtol=3e-2), "bf16 output mismatch"
    assert jnp.allclose(attn16.astype(jnp.float32), ref_attn,
                        atol=2e-2, rtol=0.0), "bf16 attention mismatch"

    print("KERNEL_OK")
</pallas_src>

<mosaic_0001>
module attributes {stable_mosaic.version = 11 : i64} {
  func.func @mh_attn_kernel(%arg0: i32, %arg1: i32, %arg2: memref<1x8x32xf32, #tpu.memory_space<vmem>>, %arg3: memref<1x128x32xf32, #tpu.memory_space<vmem>>, %arg4: memref<1x128x32xf32, #tpu.memory_space<vmem>>, %arg5: memref<32x32xf32, #tpu.memory_space<vmem>>, %arg6: memref<32x32xf32, #tpu.memory_space<vmem>>, %arg7: memref<32x32xf32, #tpu.memory_space<vmem>>, %arg8: memref<32x32xf32, #tpu.memory_space<vmem>>, %arg9: memref<1x32xf32, #tpu.memory_space<vmem>>, %arg10: memref<1x8x32xf32, #tpu.memory_space<vmem>>, %arg11: memref<1x4x8x128xf32, #tpu.memory_space<vmem>>, %arg12: memref<8x32xf32, #tpu.memory_space<vmem>>, %arg13: memref<128x32xf32, #tpu.memory_space<vmem>>, %arg14: memref<128x32xf32, #tpu.memory_space<vmem>>, %arg15: memref<8x32xf32, #tpu.memory_space<vmem>>) attributes {dimension_semantics = [#tpu.dimension_semantics<parallel>, #tpu.dimension_semantics<parallel>], iteration_bounds = array<i64: 2, 1>, scalar_prefetch = 0 : i64, scratch_operands = 4 : i64, tpu.core_type = #tpu.core_type<tc>, window_params = [{transform_indices = @transform_0, window_bounds = array<i64: 1, 8, 32>}, {transform_indices = @transform_1, window_bounds = array<i64: 1, 128, 32>}, {transform_indices = @transform_2, window_bounds = array<i64: 1, 128, 32>}, {pipeline_mode = #tpu.pipeline_mode<synchronous>, transform_indices = @transform_3, window_bounds = array<i64: 32, 32>}, {pipeline_mode = #tpu.pipeline_mode<synchronous>, transform_indices = @transform_4, window_bounds = array<i64: 32, 32>}, {pipeline_mode = #tpu.pipeline_mode<synchronous>, transform_indices = @transform_5, window_bounds = array<i64: 32, 32>}, {pipeline_mode = #tpu.pipeline_mode<synchronous>, transform_indices = @transform_6, window_bounds = array<i64: 32, 32>}, {pipeline_mode = #tpu.pipeline_mode<synchronous>, transform_indices = @transform_7, window_bounds = array<i64: 1, 32>}, {transform_indices = @transform_8, window_bounds = array<i64: 1, 8, 32>}, {transform_indices = @transform_9, window_bounds = array<i64: 1, 4, 8, 128>}]} {
    %c0 = arith.constant 0 : index
    %c0_0 = arith.constant 0 : index
    %c0_1 = arith.constant 0 : index
    %0 = vector.load %arg2[%c0, %c0_0, %c0_1] : memref<1x8x32xf32, #tpu.memory_space<vmem>>, vector<1x8x32xf32>
    %1 = vector.shape_cast %0 : vector<1x8x32xf32> to vector<8x32xf32>
    %c0_2 = arith.constant 0 : index
    %c0_3 = arith.constant 0 : index
    %2 = vector.load %arg5[%c0_2, %c0_3] : memref<32x32xf32, #tpu.memory_space<vmem>>, vector<32x32xf32>
    %cst = arith.constant dense<0.000000e+00> : vector<8x32xf32>
    %3 = tpu.matmul %1, %2, %cst {dimension_numbers = #tpu.dot_dimension_numbers<[1], [0], [0], [1], [0, 0, 1, 1], [], []>} : vector<8x32xf32>, vector<32x32xf32>, vector<8x32xf32> -> vector<8x32xf32>
    %cst_4 = arith.constant 0.594603539 : f32
    %4 = vector.broadcast %cst_4 : f32 to vector<8x32xf32>
    %5 = arith.mulf %3, %4 : vector<8x32xf32>
    %c0_5 = arith.constant 0 : index
    %c0_6 = arith.constant 0 : index
    %c0_7 = arith.constant 0 : index
    %6 = vector.load %arg3[%c0_5, %c0_6, %c0_7] : memref<1x128x32xf32, #tpu.memory_space<vmem>>, vector<1x128x32xf32>
    %7 = vector.shape_cast %6 : vector<1x128x32xf32> to vector<128x32xf32>
    %c0_8 = arith.constant 0 : index
    %c0_9 = arith.constant 0 : index
    %8 = vector.load %arg6[%c0_8, %c0_9] : memref<32x32xf32, #tpu.memory_space<vmem>>, vector<32x32xf32>
    %cst_10 = arith.constant dense<0.000000e+00> : vector<128x32xf32>
    %9 = tpu.matmul %7, %8, %cst_10 {dimension_numbers = #tpu.dot_dimension_numbers<[1], [0], [0], [1], [0, 0, 1, 1], [], []>} : vector<128x32xf32>, vector<32x32xf32>, vector<128x32xf32> -> vector<128x32xf32>
    %cst_11 = arith.constant 0.594603539 : f32
    %10 = vector.broadcast %cst_11 : f32 to vector<128x32xf32>
    %11 = arith.mulf %9, %10 : vector<128x32xf32>
    %c0_12 = arith.constant 0 : index
    %c0_13 = arith.constant 0 : index
    %c0_14 = arith.constant 0 : index
    %12 = vector.load %arg4[%c0_12, %c0_13, %c0_14] : memref<1x128x32xf32, #tpu.memory_space<vmem>>, vector<1x128x32xf32>
    %13 = vector.shape_cast %12 : vector<1x128x32xf32> to vector<128x32xf32>
    %c0_15 = arith.constant 0 : index
    %c0_16 = arith.constant 0 : index
    %14 = vector.load %arg7[%c0_15, %c0_16] : memref<32x32xf32, #tpu.memory_space<vmem>>, vector<32x32xf32>
    %cst_17 = arith.constant dense<0.000000e+00> : vector<128x32xf32>
    %15 = tpu.matmul %13, %14, %cst_17 {dimension_numbers = #tpu.dot_dimension_numbers<[1], [0], [0], [1], [0, 0, 1, 1], [], []>} : vector<128x32xf32>, vector<32x32xf32>, vector<128x32xf32> -> vector<128x32xf32>
    %c0_18 = arith.constant 0 : index
    %c0_19 = arith.constant 0 : index
    %16 = vector.load %arg12[%c0_18, %c0_19] : memref<8x32xf32, #tpu.memory_space<vmem>>, vector<8x32xf32>
    tpu.vector_store %arg12[%c0_18, %c0_19], %5 {strides = array<i32>} : memref<8x32xf32, #tpu.memory_space<vmem>>, vector<8x32xf32>,
    %c0_20 = arith.constant 0 : index
    %c0_21 = arith.constant 0 : index
    %17 = vector.load %arg13[%c0_20, %c0_21] : memref<128x32xf32, #tpu.memory_space<vmem>>, vector<128x32xf32>
    tpu.vector_store %arg13[%c0_20, %c0_21], %11 {strides = array<i32>} : memref<128x32xf32, #tpu.memory_space<vmem>>, vector<128x32xf32>,
    %c0_22 = arith.constant 0 : index
    %c0_23 = arith.constant 0 : index
    %18 = vector.load %arg14[%c0_22, %c0_23] : memref<128x32xf32, #tpu.memory_space<vmem>>, vector<128x32xf32>
    tpu.vector_store %arg14[%c0_22, %c0_23], %15 {strides = array<i32>} : memref<128x32xf32, #tpu.memory_space<vmem>>, vector<128x32xf32>,
    %19 = tpu.iota {dimensions = array<i32: 1>} : vector<8x128xi32>
    %c8_i32 = arith.constant 8 : i32
    %20 = vector.broadcast %c8_i32 : i32 to vector<8x128xi32>
    %21 = arith.cmpi slt, %19, %20 : vector<8x128xi32>
    %c0_24 = arith.constant 0 : index
    %c0_25 = arith.constant 0 : index
    %22 = vector.load %arg12[%c0_24, %c0_25] : memref<8x32xf32, #tpu.memory_space<vmem>>, vector<8x8xf32>
    %c0_26 = arith.constant 0 : index
    %c0_27 = arith.constant 0 : index
    %23 = vector.load %arg13[%c0_26, %c0_27] : memref<128x32xf32, #tpu.memory_space<vmem>>, vector<128x8xf32>
    %c0_28 = arith.constant 0 : index
    %c0_29 = arith.constant 0 : index
    %24 = vector.load %arg14[%c0_28, %c0_29] : memref<128x32xf32, #tpu.memory_space<vmem>>, vector<128x8xf32>
    %cst_30 = arith.constant dense<0.000000e+00> : vector<8x128xf32>
    %25 = tpu.matmul %22, %23, %cst_30 {dimension_numbers = #tpu.dot_dimension_numbers<[1], [1], [0], [0], [0, 0, 1, 0], [], []>} : vector<8x8xf32>, vector<128x8xf32>, vector<8x128xf32> -> vector<8x128xf32>
    %cst_31 = arith.constant dense<0xFF800000> : vector<8xf32>
    %26 = vector.multi_reduction <maximumf>, %25, %cst_31 [1] : vector<8x128xf32> to vector<8xf32>
    %27 = vector.shape_cast %26 : vector<8xf32> to vector<8x1xf32>
    %28 = vector.broadcast %27 : vector<8x1xf32> to vector<8x128xf32>
    %29 = arith.subf %25, %28 : vector<8x128xf32>
    %30 = math.exp %29 : vector<8x128xf32>
    %cst_32 = arith.constant 0.000000e+00 : f32
    %31 = vector.broadcast %cst_32 : f32 to vector<8x128xf32>
    %32 = arith.select %21, %30, %31 : vector<8x128xi1>, vector<8x128xf32>
    %cst_33 = arith.constant dense<0.000000e+00> : vector<8xf32>
    %33 = vector.multi_reduction <add>, %32, %cst_33 [1] : vector<8x128xf32> to vector<8xf32>
    %34 = vector.shape_cast %33 : vector<8xf32> to vector<8x1xf32>
    %35 = tpu.reciprocal %34 : vector<8x1xf32> -> vector<8x1xf32>
    %36 = vector.broadcast %35 : vector<8x1xf32> to vector<8x128xf32>
    %37 = arith.mulf %32, %36 : vector<8x128xf32>
    %c0_34 = arith.constant 0 : index
    %c0_35 = arith.constant 0 : index
    %c0_36 = arith.constant 0 : index
    %c0_37 = arith.constant 0 : index
    %38 = vector.load %arg11[%c0_34, %c0_35, %c0_36, %c0_37] : memref<1x4x8x128xf32, #tpu.memory_space<vmem>>, vector<1x1x8x128xf32>
    %39 = vector.shape_cast %38 : vector<1x1x8x128xf32> to vector<8x128xf32>
    %40 = vector.shape_cast %37 : vector<8x128xf32> to vector<1x1x8x128xf32>
    tpu.vector_store %arg11[%c0_34, %c0_35, %c0_36, %c0_37], %40 {strides = array<i32>} : memref<1x4x8x128xf32, #tpu.memory_space<vmem>>, vector<1x1x8x128xf32>,
    %cst_38 = arith.constant dense<0.000000e+00> : vector<8x8xf32>
    %41 = tpu.matmul %37, %24, %cst_38 {dimension_numbers = #tpu.dot_dimension_numbers<[1], [0], [0], [1], [0, 0, 1, 1], [], []>} : vector<8x128xf32>, vector<128x8xf32>, vector<8x8xf32> -> vector<8x8xf32>
    %c0_39 = arith.constant 0 : index
    %c0_40 = arith.constant 0 : index
    %42 = vector.load %arg15[%c0_39, %c0_40] : memref<8x32xf32, #tpu.memory_space<vmem>>, vector<8x8xf32>
    tpu.vector_store %arg15[%c0_39, %c0_40], %41 {strides = array<i32>} : memref<8x32xf32, #tpu.memory_space<vmem>>, vector<8x8xf32>,
    %c0_41 = arith.constant 0 : index
    %c8 = arith.constant 8 : index
    %43 = vector.load %arg12[%c0_41, %c8] : memref<8x32xf32, #tpu.memory_space<vmem>>, vector<8x8xf32>
    %c0_42 = arith.constant 0 : index
    %c8_43 = arith.constant 8 : index
    %44 = vector.load %arg13[%c0_42, %c8_43] : memref<128x32xf32, #tpu.memory_space<vmem>>, vector<128x8xf32>
    %c0_44 = arith.constant 0 : index
    %c8_45 = arith.constant 8 : index
    %45 = vector.load %arg14[%c0_44, %c8_45] : memref<128x32xf32, #tpu.memory_space<vmem>>, vector<128x8xf32>
    %cst_46 = arith.constant dense<0.000000e+00> : vector<8x128xf32>
    %46 = tpu.matmul %43, %44, %cst_46 {dimension_numbers = #tpu.dot_dimension_numbers<[1], [1], [0], [0], [0, 0, 1, 0], [], []>} : vector<8x8xf32>, vector<128x8xf32>, vector<8x128xf32> -> vector<8x128xf32>
    %cst_47 = arith.constant dense<0xFF800000> : vector<8xf32>
    %47 = vector.multi_reduction <maximumf>, %46, %cst_47 [1] : vector<8x128xf32> to vector<8xf32>
    %48 = vector.shape_cast %47 : vector<8xf32> to vector<8x1xf32>
    %49 = vector.broadcast %48 : vector<8x1xf32> to vector<8x128xf32>
    %50 = arith.subf %46, %49 : vector<8x128xf32>
    %51 = math.exp %50 : vector<8x128xf32>
    %cst_48 = arith.constant 0.000000e+00 : f32
    %52 = vector.broadcast %cst_48 : f32 to vector<8x128xf32>
    %53 = arith.select %21, %51, %52 : vector<8x128xi1>, vector<8x128xf32>
    %cst_49 = arith.constant dense<0.000000e+00> : vector<8xf32>
    %54 = vector.multi_reduction <add>, %53, %cst_49 [1] : vector<8x128xf32> to vector<8xf32>
    %55 = vector.shape_cast %54 : vector<8xf32> to vector<8x1xf32>
    %56 = tpu.reciprocal %55 : vector<8x1xf32> -> vector<8x1xf32>
    %57 = vector.broadcast %56 : vector<8x1xf32> to vector<8x128xf32>
    %58 = arith.mulf %53, %57 : vector<8x128xf32>
    %c0_50 = arith.constant 0 : index
    %c1 = arith.constant 1 : index
    %c0_51 = arith.constant 0 : index
    %c0_52 = arith.constant 0 : index
    %59 = vector.load %arg11[%c0_50, %c1, %c0_51, %c0_52] : memref<1x4x8x128xf32, #tpu.memory_space<vmem>>, vector<1x1x8x128xf32>
    %60 = vector.shape_cast %59 : vector<1x1x8x128xf32> to vector<8x128xf32>
    %61 = vector.shape_cast %58 : vector<8x128xf32> to vector<1x1x8x128xf32>
    tpu.vector_store %arg11[%c0_50, %c1, %c0_51, %c0_52], %61 {strides = array<i32>} : memref<1x4x8x128xf32, #tpu.memory_space<vmem>>, vector<1x1x8x128xf32>,
    %cst_53 = arith.constant dense<0.000000e+00> : vector<8x8xf32>
    %62 = tpu.matmul %58, %45, %cst_53 {dimension_numbers = #tpu.dot_dimension_numbers<[1], [0], [0], [1], [0, 0, 1, 1], [], []>} : vector<8x128xf32>, vector<128x8xf32>, vector<8x8xf32> -> vector<8x8xf32>
    %c0_54 = arith.constant 0 : index
    %c8_55 = arith.constant 8 : index
    %63 = vector.load %arg15[%c0_54, %c8_55] : memref<8x32xf32, #tpu.memory_space<vmem>>, vector<8x8xf32>
    tpu.vector_store %arg15[%c0_54, %c8_55], %62 {strides = array<i32>} : memref<8x32xf32, #tpu.memory_space<vmem>>, vector<8x8xf32>,
    %c0_56 = arith.constant 0 : index
    %c16 = arith.constant 16 : index
    %64 = vector.load %arg12[%c0_56, %c16] : memref<8x32xf32, #tpu.memory_space<vmem>>, vector<8x8xf32>
    %c0_57 = arith.constant 0 : index
    %c16_58 = arith.constant 16 : index
    %65 = vector.load %arg13[%c0_57, %c16_58] : memref<128x32xf32, #tpu.memory_space<vmem>>, vector<128x8xf32>
    %c0_59 = arith.constant 0 : index
    %c16_60 = arith.constant 16 : index
    %66 = vector.load %arg14[%c0_59, %c16_60] : memref<128x32xf32, #tpu.memory_space<vmem>>, vector<128x8xf32>
    %cst_61 = arith.constant dense<0.000000e+00> : vector<8x128xf32>
    %67 = tpu.matmul %64, %65, %cst_61 {dimension_numbers = #tpu.dot_dimension_numbers<[1], [1], [0], [0], [0, 0, 1, 0], [], []>} : vector<8x8xf32>, vector<128x8xf32>, vector<8x128xf32> -> vector<8x128xf32>
    %cst_62 = arith.constant dense<0xFF800000> : vector<8xf32>
    %68 = vector.multi_reduction <maximumf>, %67, %cst_62 [1] : vector<8x128xf32> to vector<8xf32>
    %69 = vector.shape_cast %68 : vector<8xf32> to vector<8x1xf32>
    %70 = vector.broadcast %69 : vector<8x1xf32> to vector<8x128xf32>
    %71 = arith.subf %67, %70 : vector<8x128xf32>
    %72 = math.exp %71 : vector<8x128xf32>
    %cst_63 = arith.constant 0.000000e+00 : f32
    %73 = vector.broadcast %cst_63 : f32 to vector<8x128xf32>
    %74 = arith.select %21, %72, %73 : vector<8x128xi1>, vector<8x128xf32>
    %cst_64 = arith.constant dense<0.000000e+00> : vector<8xf32>
    %75 = vector.multi_reduction <add>, %74, %cst_64 [1] : vector<8x128xf32> to vector<8xf32>
    %76 = vector.shape_cast %75 : vector<8xf32> to vector<8x1xf32>
    %77 = tpu.reciprocal %76 : vector<8x1xf32> -> vector<8x1xf32>
    %78 = vector.broadcast %77 : vector<8x1xf32> to vector<8x128xf32>
    %79 = arith.mulf %74, %78 : vector<8x128xf32>
    %c0_65 = arith.constant 0 : index
    %c2 = arith.constant 2 : index
    %c0_66 = arith.constant 0 : index
    %c0_67 = arith.constant 0 : index
    %80 = vector.load %arg11[%c0_65, %c2, %c0_66, %c0_67] : memref<1x4x8x128xf32, #tpu.memory_space<vmem>>, vector<1x1x8x128xf32>
    %81 = vector.shape_cast %80 : vector<1x1x8x128xf32> to vector<8x128xf32>
    %82 = vector.shape_cast %79 : vector<8x128xf32> to vector<1x1x8x128xf32>
    tpu.vector_store %arg11[%c0_65, %c2, %c0_66, %c0_67], %82 {strides = array<i32>} : memref<1x4x8x128xf32, #tpu.memory_space<vmem>>, vector<1x1x8x128xf32>,
    %cst_68 = arith.constant dense<0.000000e+00> : vector<8x8xf32>
    %83 = tpu.matmul %79, %66, %cst_68 {dimension_numbers = #tpu.dot_dimension_numbers<[1], [0], [0], [1], [0, 0, 1, 1], [], []>} : vector<8x128xf32>, vector<128x8xf32>, vector<8x8xf32> -> vector<8x8xf32>
    %c0_69 = arith.constant 0 : index
    %c16_70 = arith.constant 16 : index
    %84 = vector.load %arg15[%c0_69, %c16_70] : memref<8x32xf32, #tpu.memory_space<vmem>>, vector<8x8xf32>
    tpu.vector_store %arg15[%c0_69, %c16_70], %83 {strides = array<i32>} : memref<8x32xf32, #tpu.memory_space<vmem>>, vector<8x8xf32>,
    %c0_71 = arith.constant 0 : index
    %c24 = arith.constant 24 : index
    %85 = vector.load %arg12[%c0_71, %c24] : memref<8x32xf32, #tpu.memory_space<vmem>>, vector<8x8xf32>
    %c0_72 = arith.constant 0 : index
    %c24_73 = arith.constant 24 : index
    %86 = vector.load %arg13[%c0_72, %c24_73] : memref<128x32xf32, #tpu.memory_space<vmem>>, vector<128x8xf32>
    %c0_74 = arith.constant 0 : index
    %c24_75 = arith.constant 24 : index
    %87 = vector.load %arg14[%c0_74, %c24_75] : memref<128x32xf32, #tpu.memory_space<vmem>>, vector<128x8xf32>
    %cst_76 = arith.constant dense<0.000000e+00> : vector<8x128xf32>
    %88 = tpu.matmul %85, %86, %cst_76 {dimension_numbers = #tpu.dot_dimension_numbers<[1], [1], [0], [0], [0, 0, 1, 0], [], []>} : vector<8x8xf32>, vector<128x8xf32>, vector<8x128xf32> -> vector<8x128xf32>
    %cst_77 = arith.constant dense<0xFF800000> : vector<8xf32>
    %89 = vector.multi_reduction <maximumf>, %88, %cst_77 [1] : vector<8x128xf32> to vector<8xf32>
    %90 = vector.shape_cast %89 : vector<8xf32> to vector<8x1xf32>
    %91 = vector.broadcast %90 : vector<8x1xf32> to vector<8x128xf32>
    %92 = arith.subf %88, %91 : vector<8x128xf32>
    %93 = math.exp %92 : vector<8x128xf32>
    %cst_78 = arith.constant 0.000000e+00 : f32
    %94 = vector.broadcast %cst_78 : f32 to vector<8x128xf32>
    %95 = arith.select %21, %93, %94 : vector<8x128xi1>, vector<8x128xf32>
    %cst_79 = arith.constant dense<0.000000e+00> : vector<8xf32>
    %96 = vector.multi_reduction <add>, %95, %cst_79 [1] : vector<8x128xf32> to vector<8xf32>
    %97 = vector.shape_cast %96 : vector<8xf32> to vector<8x1xf32>
    %98 = tpu.reciprocal %97 : vector<8x1xf32> -> vector<8x1xf32>
    %99 = vector.broadcast %98 : vector<8x1xf32> to vector<8x128xf32>
    %100 = arith.mulf %95, %99 : vector<8x128xf32>
    %c0_80 = arith.constant 0 : index
    %c3 = arith.constant 3 : index
    %c0_81 = arith.constant 0 : index
    %c0_82 = arith.constant 0 : index
    %101 = vector.load %arg11[%c0_80, %c3, %c0_81, %c0_82] : memref<1x4x8x128xf32, #tpu.memory_space<vmem>>, vector<1x1x8x128xf32>
    %102 = vector.shape_cast %101 : vector<1x1x8x128xf32> to vector<8x128xf32>
    %103 = vector.shape_cast %100 : vector<8x128xf32> to vector<1x1x8x128xf32>
    tpu.vector_store %arg11[%c0_80, %c3, %c0_81, %c0_82], %103 {strides = array<i32>} : memref<1x4x8x128xf32, #tpu.memory_space<vmem>>, vector<1x1x8x128xf32>,
    %cst_83 = arith.constant dense<0.000000e+00> : vector<8x8xf32>
    %104 = tpu.matmul %100, %87, %cst_83 {dimension_numbers = #tpu.dot_dimension_numbers<[1], [0], [0], [1], [0, 0, 1, 1], [], []>} : vector<8x128xf32>, vector<128x8xf32>, vector<8x8xf32> -> vector<8x8xf32>
    %c0_84 = arith.constant 0 : index
    %c24_85 = arith.constant 24 : index
    %105 = vector.load %arg15[%c0_84, %c24_85] : memref<8x32xf32, #tpu.memory_space<vmem>>, vector<8x8xf32>
    tpu.vector_store %arg15[%c0_84, %c24_85], %104 {strides = array<i32>} : memref<8x32xf32, #tpu.memory_space<vmem>>, vector<8x8xf32>,
    %c0_86 = arith.constant 0 : index
    %c0_87 = arith.constant 0 : index
    %106 = vector.load %arg15[%c0_86, %c0_87] : memref<8x32xf32, #tpu.memory_space<vmem>>, vector<8x32xf32>
    %c0_88 = arith.constant 0 : index
    %c0_89 = arith.constant 0 : index
    %107 = vector.load %arg8[%c0_88, %c0_89] : memref<32x32xf32, #tpu.memory_space<vmem>>, vector<32x32xf32>
    %cst_90 = arith.constant dense<0.000000e+00> : vector<8x32xf32>
    %108 = tpu.matmul %106, %107, %cst_90 {dimension_numbers = #tpu.dot_dimension_numbers<[1], [0], [0], [1], [0, 0, 1, 1], [], []>} : vector<8x32xf32>, vector<32x32xf32>, vector<8x32xf32> -> vector<8x32xf32>
    %c0_91 = arith.constant 0 : index
    %c0_92 = arith.constant 0 : index
    %109 = vector.load %arg9[%c0_91, %c0_92] : memref<1x32xf32, #tpu.memory_space<vmem>>, vector<1x32xf32>
    %110 = vector.shape_cast %109 : vector<1x32xf32> to vector<32xf32>
    %111 = vector.shape_cast %110 : vector<32xf32> to vector<1x32xf32>
    %112 = vector.broadcast %111 : vector<1x32xf32> to vector<8x32xf32>
    %113 = arith.addf %108, %112 : vector<8x32xf32>
    %c0_93 = arith.constant 0 : index
    %c0_94 = arith.constant 0 : index
    %c0_95 = arith.constant 0 : index
    %114 = vector.load %arg10[%c0_93, %c0_94, %c0_95] : memref<1x8x32xf32, #tpu.memory_space<vmem>>, vector<1x8x32xf32>
    %115 = vector.shape_cast %114 : vector<1x8x32xf32> to vector<8x32xf32>
    %116 = vector.shape_cast %113 : vector<8x32xf32> to vector<1x8x32xf32>
    tpu.vector_store %arg10[%c0_93, %c0_94, %c0_95], %116 {strides = array<i32>} : memref<1x8x32xf32, #tpu.memory_space<vmem>>, vector<1x8x32xf32>,
    return
  }
  func.func @transform_0(%arg0: i32, %arg1: i32) -> (i32, i32, i32) {
    %c0_i32 = arith.constant 0 : i32
    %c0_i32_0 = arith.constant 0 : i32
    return %arg0, %arg1, %c0_i32 : i32, i32, i32
  }
  func.func @transform_1(%arg0: i32, %arg1: i32) -> (i32, i32, i32) {
    %c0_i32 = arith.constant 0 : i32
    %c0_i32_0 = arith.constant 0 : i32
    %c0_i32_1 = arith.constant 0 : i32
    return %arg0, %c0_i32, %c0_i32_0 : i32, i32, i32
  }
  func.func @transform_2(%arg0: i32, %arg1: i32) -> (i32, i32, i32) {
    %c0_i32 = arith.constant 0 : i32
    %c0_i32_0 = arith.constant 0 : i32
    %c0_i32_1 = arith.constant 0 : i32
    return %arg0, %c0_i32, %c0_i32_0 : i32, i32, i32
  }
  func.func @transform_3(%arg0: i32, %arg1: i32) -> (i32, i32) {
    %c0_i32 = arith.constant 0 : i32
    %c0_i32_0 = arith.constant 0 : i32
    %c0_i32_1 = arith.constant 0 : i32
    return %c0_i32, %c0_i32_0 : i32, i32
  }
  func.func @transform_4(%arg0: i32, %arg1: i32) -> (i32, i32) {
    %c0_i32 = arith.constant 0 : i32
    %c0_i32_0 = arith.constant 0 : i32
    %c0_i32_1 = arith.constant 0 : i32
    return %c0_i32, %c0_i32_0 : i32, i32
  }
  func.func @transform_5(%arg0: i32, %arg1: i32) -> (i32, i32) {
    %c0_i32 = arith.constant 0 : i32
    %c0_i32_0 = arith.constant 0 : i32
    %c0_i32_1 = arith.constant 0 : i32
    return %c0_i32, %c0_i32_0 : i32, i32
  }
  func.func @transform_6(%arg0: i32, %arg1: i32) -> (i32, i32) {
    %c0_i32 = arith.constant 0 : i32
    %c0_i32_0 = arith.constant 0 : i32
    %c0_i32_1 = arith.constant 0 : i32
    return %c0_i32, %c0_i32_0 : i32, i32
  }
  func.func @transform_7(%arg0: i32, %arg1: i32) -> (i32, i32) {
    %c0_i32 = arith.constant 0 : i32
    %c0_i32_0 = arith.constant 0 : i32
    %c0_i32_1 = arith.constant 0 : i32
    return %c0_i32, %c0_i32_0 : i32, i32
  }
  func.func @transform_8(%arg0: i32, %arg1: i32) -> (i32, i32, i32) {
    %c0_i32 = arith.constant 0 : i32
    %c0_i32_0 = arith.constant 0 : i32
    return %arg0, %arg1, %c0_i32 : i32, i32, i32
  }
  func.func @transform_9(%arg0: i32, %arg1: i32) -> (i32, i32, i32, i32) {
    %c0_i32 = arith.constant 0 : i32
    %c0_i32_0 = arith.constant 0 : i32
    %c0_i32_1 = arith.constant 0 : i32
    return %arg0, %c0_i32, %arg1, %c0_i32_0 : i32, i32, i32, i32
  }
}

module attributes {stable_mosaic.version = 11 : i64} {
  func.func @mh_attn_kernel(%arg0: i32, %arg1: i32, %arg2: memref<1x8x32xf32, #tpu.memory_space<vmem>>, %arg3: memref<1x128x32xf32, #tpu.memory_space<vmem>>, %arg4: memref<1x128x32xf32, #tpu.memory_space<vmem>>, %arg5: memref<32x32xf32, #tpu.memory_space<vmem>>, %arg6: memref<32x32xf32, #tpu.memory_space<vmem>>, %arg7: memref<32x32xf32, #tpu.memory_space<vmem>>, %arg8: memref<32x32xf32, #tpu.memory_space<vmem>>, %arg9: memref<1x32xf32, #tpu.memory_space<vmem>>, %arg10: memref<1x8x32xf32, #tpu.memory_space<vmem>>, %arg11: memref<1x4x8x128xf32, #tpu.memory_space<vmem>>, %arg12: memref<8x32xf32, #tpu.memory_space<vmem>>, %arg13: memref<128x32xf32, #tpu.memory_space<vmem>>, %arg14: memref<128x32xf32, #tpu.memory_space<vmem>>, %arg15: memref<8x32xf32, #tpu.memory_space<vmem>>) attributes {dimension_semantics = [#tpu.dimension_semantics<parallel>, #tpu.dimension_semantics<parallel>], iteration_bounds = array<i64: 2, 1>, scalar_prefetch = 0 : i64, scratch_operands = 4 : i64, tpu.core_type = #tpu.core_type<tc>, window_params = [{transform_indices = @transform_0, window_bounds = array<i64: 1, 8, 32>}, {transform_indices = @transform_1, window_bounds = array<i64: 1, 128, 32>}, {transform_indices = @transform_2, window_bounds = array<i64: 1, 128, 32>}, {pipeline_mode = #tpu.pipeline_mode<synchronous>, transform_indices = @transform_3, window_bounds = array<i64: 32, 32>}, {pipeline_mode = #tpu.pipeline_mode<synchronous>, transform_indices = @transform_4, window_bounds = array<i64: 32, 32>}, {pipeline_mode = #tpu.pipeline_mode<synchronous>, transform_indices = @transform_5, window_bounds = array<i64: 32, 32>}, {pipeline_mode = #tpu.pipeline_mode<synchronous>, transform_indices = @transform_6, window_bounds = array<i64: 32, 32>}, {pipeline_mode = #tpu.pipeline_mode<synchronous>, transform_indices = @transform_7, window_bounds = array<i64: 1, 32>}, {transform_indices = @transform_8, window_bounds = array<i64: 1, 8, 32>}, {transform_indices = @transform_9, window_bounds = array<i64: 1, 4, 8, 128>}]} {
    %c0 = arith.constant 0 : index
    %c0_0 = arith.constant 0 : index
    %c0_1 = arith.constant 0 : index
    %0 = vector.load %arg2[%c0, %c0_0, %c0_1] : memref<1x8x32xf32, #tpu.memory_space<vmem>>, vector<1x8x32xf32>
    %1 = vector.shape_cast %0 : vector<1x8x32xf32> to vector<8x32xf32>
    %c0_2 = arith.constant 0 : index
    %c0_3 = arith.constant 0 : index
    %2 = vector.load %arg5[%c0_2, %c0_3] : memref<32x32xf32, #tpu.memory_space<vmem>>, vector<32x32xf32>
    %cst = arith.constant dense<0.000000e+00> : vector<8x32xf32>
    %3 = tpu.matmul %1, %2, %cst {dimension_numbers = #tpu.dot_dimension_numbers<[1], [0], [0], [1], [0, 0, 1, 1], [], []>} : vector<8x32xf32>, vector<32x32xf32>, vector<8x32xf32> -> vector<8x32xf32>
    %cst_4 = arith.constant 0.594603539 : f32
    %4 = vector.broadcast %cst_4 : f32 to vector<8x32xf32>
    %5 = arith.mulf %3, %4 : vector<8x32xf32>
    %c0_5 = arith.constant 0 : index
    %c0_6 = arith.constant 0 : index
    %c0_7 = arith.constant 0 : index
    %6 = vector.load %arg3[%c0_5, %c0_6, %c0_7] : memref<1x128x32xf32, #tpu.memory_space<vmem>>, vector<1x128x32xf32>
    %7 = vector.shape_cast %6 : vector<1x128x32xf32> to vector<128x32xf32>
    %c0_8 = arith.constant 0 : index
    %c0_9 = arith.constant 0 : index
    %8 = vector.load %arg6[%c0_8, %c0_9] : memref<32x32xf32, #tpu.memory_space<vmem>>, vector<32x32xf32>
    %cst_10 = arith.constant dense<0.000000e+00> : vector<128x32xf32>
    %9 = tpu.matmul %7, %8, %cst_10 {dimension_numbers = #tpu.dot_dimension_numbers<[1], [0], [0], [1], [0, 0, 1, 1], [], []>} : vector<128x32xf32>, vector<32x32xf32>, vector<128x32xf32> -> vector<128x32xf32>
    %cst_11 = arith.constant 0.594603539 : f32
    %10 = vector.broadcast %cst_11 : f32 to vector<128x32xf32>
    %11 = arith.mulf %9, %10 : vector<128x32xf32>
    %c0_12 = arith.constant 0 : index
    %c0_13 = arith.constant 0 : index
    %c0_14 = arith.constant 0 : index
    %12 = vector.load %arg4[%c0_12, %c0_13, %c0_14] : memref<1x128x32xf32, #tpu.memory_space<vmem>>, vector<1x128x32xf32>
    %13 = vector.shape_cast %12 : vector<1x128x32xf32> to vector<128x32xf32>
    %c0_15 = arith.constant 0 : index
    %c0_16 = arith.constant 0 : index
    %14 = vector.load %arg7[%c0_15, %c0_16] : memref<32x32xf32, #tpu.memory_space<vmem>>, vector<32x32xf32>
    %cst_17 = arith.constant dense<0.000000e+00> : vector<128x32xf32>
    %15 = tpu.matmul %13, %14, %cst_17 {dimension_numbers = #tpu.dot_dimension_numbers<[1], [0], [0], [1], [0, 0, 1, 1], [], []>} : vector<128x32xf32>, vector<32x32xf32>, vector<128x32xf32> -> vector<128x32xf32>
    %c0_18 = arith.constant 0 : index
    %c0_19 = arith.constant 0 : index
    %16 = vector.load %arg12[%c0_18, %c0_19] : memref<8x32xf32, #tpu.memory_space<vmem>>, vector<8x32xf32>
    tpu.vector_store %arg12[%c0_18, %c0_19], %5 {strides = array<i32>} : memref<8x32xf32, #tpu.memory_space<vmem>>, vector<8x32xf32>,
    %c0_20 = arith.constant 0 : index
    %c0_21 = arith.constant 0 : index
    %17 = vector.load %arg13[%c0_20, %c0_21] : memref<128x32xf32, #tpu.memory_space<vmem>>, vector<128x32xf32>
    tpu.vector_store %arg13[%c0_20, %c0_21], %11 {strides = array<i32>} : memref<128x32xf32, #tpu.memory_space<vmem>>, vector<128x32xf32>,
    %c0_22 = arith.constant 0 : index
    %c0_23 = arith.constant 0 : index
    %18 = vector.load %arg14[%c0_22, %c0_23] : memref<128x32xf32, #tpu.memory_space<vmem>>, vector<128x32xf32>
    tpu.vector_store %arg14[%c0_22, %c0_23], %15 {strides = array<i32>} : memref<128x32xf32, #tpu.memory_space<vmem>>, vector<128x32xf32>,
    %19 = tpu.iota {dimensions = array<i32: 1>} : vector<8x128xi32>
    %c8_i32 = arith.constant 8 : i32
    %20 = vector.broadcast %c8_i32 : i32 to vector<8x128xi32>
    %21 = arith.cmpi slt, %19, %20 : vector<8x128xi32>
    %c0_24 = arith.constant 0 : index
    %c0_25 = arith.constant 0 : index
    %22 = vector.load %arg12[%c0_24, %c0_25] : memref<8x32xf32, #tpu.memory_space<vmem>>, vector<8x8xf32>
    %c0_26 = arith.constant 0 : index
    %c0_27 = arith.constant 0 : index
    %23 = vector.load %arg13[%c0_26, %c0_27] : memref<128x32xf32, #tpu.memory_space<vmem>>, vector<128x8xf32>
    %c0_28 = arith.constant 0 : index
    %c0_29 = arith.constant 0 : index
    %24 = vector.load %arg14[%c0_28, %c0_29] : memref<128x32xf32, #tpu.memory_space<vmem>>, vector<128x8xf32>
    %cst_30 = arith.constant dense<0.000000e+00> : vector<8x128xf32>
    %25 = tpu.matmul %22, %23, %cst_30 {dimension_numbers = #tpu.dot_dimension_numbers<[1], [1], [0], [0], [0, 0, 1, 0], [], []>} : vector<8x8xf32>, vector<128x8xf32>, vector<8x128xf32> -> vector<8x128xf32>
    %cst_31 = arith.constant dense<0xFF800000> : vector<8xf32>
    %26 = vector.multi_reduction <maximumf>, %25, %cst_31 [1] : vector<8x128xf32> to vector<8xf32>
    %27 = vector.shape_cast %26 : vector<8xf32> to vector<8x1xf32>
    %28 = vector.broadcast %27 : vector<8x1xf32> to vector<8x128xf32>
    %29 = arith.subf %25, %28 : vector<8x128xf32>
    %30 = math.exp %29 : vector<8x128xf32>
    %cst_32 = arith.constant 0.000000e+00 : f32
    %31 = vector.broadcast %cst_32 : f32 to vector<8x128xf32>
    %32 = arith.select %21, %30, %31 : vector<8x128xi1>, vector<8x128xf32>
    %cst_33 = arith.constant dense<0.000000e+00> : vector<8xf32>
    %33 = vector.multi_reduction <add>, %32, %cst_33 [1] : vector<8x128xf32> to vector<8xf32>
    %34 = vector.shape_cast %33 : vector<8xf32> to vector<8x1xf32>
    %35 = tpu.reciprocal %34 : vector<8x1xf32> -> vector<8x1xf32>
    %36 = vector.broadcast %35 : vector<8x1xf32> to vector<8x128xf32>
    %37 = arith.mulf %32, %36 : vector<8x128xf32>
    %c0_34 = arith.constant 0 : index
    %c0_35 = arith.constant 0 : index
    %c0_36 = arith.constant 0 : index
    %c0_37 = arith.constant 0 : index
    %38 = vector.load %arg11[%c0_34, %c0_35, %c0_36, %c0_37] : memref<1x4x8x128xf32, #tpu.memory_space<vmem>>, vector<1x1x8x128xf32>
    %39 = vector.shape_cast %38 : vector<1x1x8x128xf32> to vector<8x128xf32>
    %40 = vector.shape_cast %37 : vector<8x128xf32> to vector<1x1x8x128xf32>
    tpu.vector_store %arg11[%c0_34, %c0_35, %c0_36, %c0_37], %40 {strides = array<i32>} : memref<1x4x8x128xf32, #tpu.memory_space<vmem>>, vector<1x1x8x128xf32>,
    %cst_38 = arith.constant dense<0.000000e+00> : vector<8x8xf32>
    %41 = tpu.matmul %37, %24, %cst_38 {dimension_numbers = #tpu.dot_dimension_numbers<[1], [0], [0], [1], [0, 0, 1, 1], [], []>} : vector<8x128xf32>, vector<128x8xf32>, vector<8x8xf32> -> vector<8x8xf32>
    %c0_39 = arith.constant 0 : index
    %c0_40 = arith.constant 0 : index
    %42 = vector.load %arg15[%c0_39, %c0_40] : memref<8x32xf32, #tpu.memory_space<vmem>>, vector<8x8xf32>
    tpu.vector_store %arg15[%c0_39, %c0_40], %41 {strides = array<i32>} : memref<8x32xf32, #tpu.memory_space<vmem>>, vector<8x8xf32>,
    %c0_41 = arith.constant 0 : index
    %c8 = arith.constant 8 : index
    %43 = vector.load %arg12[%c0_41, %c8] : memref<8x32xf32, #tpu.memory_space<vmem>>, vector<8x8xf32>
    %c0_42 = arith.constant 0 : index
    %c8_43 = arith.constant 8 : index
    %44 = vector.load %arg13[%c0_42, %c8_43] : memref<128x32xf32, #tpu.memory_space<vmem>>, vector<128x8xf32>
    %c0_44 = arith.constant 0 : index
    %c8_45 = arith.constant 8 : index
    %45 = vector.load %arg14[%c0_44, %c8_45] : memref<128x32xf32, #tpu.memory_space<vmem>>, vector<128x8xf32>
    %cst_46 = arith.constant dense<0.000000e+00> : vector<8x128xf32>
    %46 = tpu.matmul %43, %44, %cst_46 {dimension_numbers = #tpu.dot_dimension_numbers<[1], [1], [0], [0], [0, 0, 1, 0], [], []>} : vector<8x8xf32>, vector<128x8xf32>, vector<8x128xf32> -> vector<8x128xf32>
    %cst_47 = arith.constant dense<0xFF800000> : vector<8xf32>
    %47 = vector.multi_reduction <maximumf>, %46, %cst_47 [1] : vector<8x128xf32> to vector<8xf32>
    %48 = vector.shape_cast %47 : vector<8xf32> to vector<8x1xf32>
    %49 = vector.broadcast %48 : vector<8x1xf32> to vector<8x128xf32>
    %50 = arith.subf %46, %49 : vector<8x128xf32>
    %51 = math.exp %50 : vector<8x128xf32>
    %cst_48 = arith.constant 0.000000e+00 : f32
    %52 = vector.broadcast %cst_48 : f32 to vector<8x128xf32>
    %53 = arith.select %21, %51, %52 : vector<8x128xi1>, vector<8x128xf32>
    %cst_49 = arith.constant dense<0.000000e+00> : vector<8xf32>
    %54 = vector.multi_reduction <add>, %53, %cst_49 [1] : vector<8x128xf32> to vector<8xf32>
    %55 = vector.shape_cast %54 : vector<8xf32> to vector<8x1xf32>
    %56 = tpu.reciprocal %55 : vector<8x1xf32> -> vector<8x1xf32>
    %57 = vector.broadcast %56 : vector<8x1xf32> to vector<8x128xf32>
    %58 = arith.mulf %53, %57 : vector<8x128xf32>
    %c0_50 = arith.constant 0 : index
    %c1 = arith.constant 1 : index
    %c0_51 = arith.constant 0 : index
    %c0_52 = arith.constant 0 : index
    %59 = vector.load %arg11[%c0_50, %c1, %c0_51, %c0_52] : memref<1x4x8x128xf32, #tpu.memory_space<vmem>>, vector<1x1x8x128xf32>
    %60 = vector.shape_cast %59 : vector<1x1x8x128xf32> to vector<8x128xf32>
    %61 = vector.shape_cast %58 : vector<8x128xf32> to vector<1x1x8x128xf32>
    tpu.vector_store %arg11[%c0_50, %c1, %c0_51, %c0_52], %61 {strides = array<i32>} : memref<1x4x8x128xf32, #tpu.memory_space<vmem>>, vector<1x1x8x128xf32>,
    %cst_53 = arith.constant dense<0.000000e+00> : vector<8x8xf32>
    %62 = tpu.matmul %58, %45, %cst_53 {dimension_numbers = #tpu.dot_dimension_numbers<[1], [0], [0], [1], [0, 0, 1, 1], [], []>} : vector<8x128xf32>, vector<128x8xf32>, vector<8x8xf32> -> vector<8x8xf32>
    %c0_54 = arith.constant 0 : index
    %c8_55 = arith.constant 8 : index
    %63 = vector.load %arg15[%c0_54, %c8_55] : memref<8x32xf32, #tpu.memory_space<vmem>>, vector<8x8xf32>
    tpu.vector_store %arg15[%c0_54, %c8_55], %62 {strides = array<i32>} : memref<8x32xf32, #tpu.memory_space<vmem>>, vector<8x8xf32>,
    %c0_56 = arith.constant 0 : index
    %c16 = arith.constant 16 : index
    %64 = vector.load %arg12[%c0_56, %c16] : memref<8x32xf32, #tpu.memory_space<vmem>>, vector<8x8xf32>
    %c0_57 = arith.constant 0 : index
    %c16_58 = arith.constant 16 : index
    %65 = vector.load %arg13[%c0_57, %c16_58] : memref<128x32xf32, #tpu.memory_space<vmem>>, vector<128x8xf32>
    %c0_59 = arith.constant 0 : index
    %c16_60 = arith.constant 16 : index
    %66 = vector.load %arg14[%c0_59, %c16_60] : memref<128x32xf32, #tpu.memory_space<vmem>>, vector<128x8xf32>
    %cst_61 = arith.constant dense<0.000000e+00> : vector<8x128xf32>
    %67 = tpu.matmul %64, %65, %cst_61 {dimension_numbers = #tpu.dot_dimension_numbers<[1], [1], [0], [0], [0, 0, 1, 0], [], []>} : vector<8x8xf32>, vector<128x8xf32>, vector<8x128xf32> -> vector<8x128xf32>
    %cst_62 = arith.constant dense<0xFF800000> : vector<8xf32>
    %68 = vector.multi_reduction <maximumf>, %67, %cst_62 [1] : vector<8x128xf32> to vector<8xf32>
    %69 = vector.shape_cast %68 : vector<8xf32> to vector<8x1xf32>
    %70 = vector.broadcast %69 : vector<8x1xf32> to vector<8x128xf32>
    %71 = arith.subf %67, %70 : vector<8x128xf32>
    %72 = math.exp %71 : vector<8x128xf32>
    %cst_63 = arith.constant 0.000000e+00 : f32
    %73 = vector.broadcast %cst_63 : f32 to vector<8x128xf32>
    %74 = arith.select %21, %72, %73 : vector<8x128xi1>, vector<8x128xf32>
    %cst_64 = arith.constant dense<0.000000e+00> : vector<8xf32>
    %75 = vector.multi_reduction <add>, %74, %cst_64 [1] : vector<8x128xf32> to vector<8xf32>
    %76 = vector.shape_cast %75 : vector<8xf32> to vector<8x1xf32>
    %77 = tpu.reciprocal %76 : vector<8x1xf32> -> vector<8x1xf32>
    %78 = vector.broadcast %77 : vector<8x1xf32> to vector<8x128xf32>
    %79 = arith.mulf %74, %78 : vector<8x128xf32>
    %c0_65 = arith.constant 0 : index
    %c2 = arith.constant 2 : index
    %c0_66 = arith.constant 0 : index
    %c0_67 = arith.constant 0 : index
    %80 = vector.load %arg11[%c0_65, %c2, %c0_66, %c0_67] : memref<1x4x8x128xf32, #tpu.memory_space<vmem>>, vector<1x1x8x128xf32>
    %81 = vector.shape_cast %80 : vector<1x1x8x128xf32> to vector<8x128xf32>
    %82 = vector.shape_cast %79 : vector<8x128xf32> to vector<1x1x8x128xf32>
    tpu.vector_store %arg11[%c0_65, %c2, %c0_66, %c0_67], %82 {strides = array<i32>} : memref<1x4x8x128xf32, #tpu.memory_space<vmem>>, vector<1x1x8x128xf32>,
    %cst_68 = arith.constant dense<0.000000e+00> : vector<8x8xf32>
    %83 = tpu.matmul %79, %66, %cst_68 {dimension_numbers = #tpu.dot_dimension_numbers<[1], [0], [0], [1], [0, 0, 1, 1], [], []>} : vector<8x128xf32>, vector<128x8xf32>, vector<8x8xf32> -> vector<8x8xf32>
    %c0_69 = arith.constant 0 : index
    %c16_70 = arith.constant 16 : index
    %84 = vector.load %arg15[%c0_69, %c16_70] : memref<8x32xf32, #tpu.memory_space<vmem>>, vector<8x8xf32>
    tpu.vector_store %arg15[%c0_69, %c16_70], %83 {strides = array<i32>} : memref<8x32xf32, #tpu.memory_space<vmem>>, vector<8x8xf32>,
    %c0_71 = arith.constant 0 : index
    %c24 = arith.constant 24 : index
    %85 = vector.load %arg12[%c0_71, %c24] : memref<8x32xf32, #tpu.memory_space<vmem>>, vector<8x8xf32>
    %c0_72 = arith.constant 0 : index
    %c24_73 = arith.constant 24 : index
    %86 = vector.load %arg13[%c0_72, %c24_73] : memref<128x32xf32, #tpu.memory_space<vmem>>, vector<128x8xf32>
    %c0_74 = arith.constant 0 : index
    %c24_75 = arith.constant 24 : index
    %87 = vector.load %arg14[%c0_74, %c24_75] : memref<128x32xf32, #tpu.memory_space<vmem>>, vector<128x8xf32>
    %cst_76 = arith.constant dense<0.000000e+00> : vector<8x128xf32>
    %88 = tpu.matmul %85, %86, %cst_76 {dimension_numbers = #tpu.dot_dimension_numbers<[1], [1], [0], [0], [0, 0, 1, 0], [], []>} : vector<8x8xf32>, vector<128x8xf32>, vector<8x128xf32> -> vector<8x128xf32>
    %cst_77 = arith.constant dense<0xFF800000> : vector<8xf32>
    %89 = vector.multi_reduction <maximumf>, %88, %cst_77 [1] : vector<8x128xf32> to vector<8xf32>
    %90 = vector.shape_cast %89 : vector<8xf32> to vector<8x1xf32>
    %91 = vector.broadcast %90 : vector<8x1xf32> to vector<8x128xf32>
    %92 = arith.subf %88, %91 : vector<8x128xf32>
    %93 = math.exp %92 : vector<8x128xf32>
    %cst_78 = arith.constant 0.000000e+00 : f32
    %94 = vector.broadcast %cst_78 : f32 to vector<8x128xf32>
    %95 = arith.select %21, %93, %94 : vector<8x128xi1>, vector<8x128xf32>
    %cst_79 = arith.constant dense<0.000000e+00> : vector<8xf32>
    %96 = vector.multi_reduction <add>, %95, %cst_79 [1] : vector<8x128xf32> to vector<8xf32>
    %97 = vector.shape_cast %96 : vector<8xf32> to vector<8x1xf32>
    %98 = tpu.reciprocal %97 : vector<8x1xf32> -> vector<8x1xf32>
    %99 = vector.broadcast %98 : vector<8x1xf32> to vector<8x128xf32>
    %100 = arith.mulf %95, %99 : vector<8x128xf32>
    %c0_80 = arith.constant 0 : index
    %c3 = arith.constant 3 : index
    %c0_81 = arith.constant 0 : index
    %c0_82 = arith.constant 0 : index
    %101 = vector.load %arg11[%c0_80, %c3, %c0_81, %c0_82] : memref<1x4x8x128xf32, #tpu.memory_space<vmem>>, vector<1x1x8x128xf32>
    %102 = vector.shape_cast %101 : vector<1x1x8x128xf32> to vector<8x128xf32>
    %103 = vector.shape_cast %100 : vector<8x128xf32> to vector<1x1x8x128xf32>
    tpu.vector_store %arg11[%c0_80, %c3, %c0_81, %c0_82], %103 {strides = array<i32>} : memref<1x4x8x128xf32, #tpu.memory_space<vmem>>, vector<1x1x8x128xf32>,
    %cst_83 = arith.constant dense<0.000000e+00> : vector<8x8xf32>
    %104 = tpu.matmul %100, %87, %cst_83 {dimension_numbers = #tpu.dot_dimension_numbers<[1], [0], [0], [1], [0, 0, 1, 1], [], []>} : vector<8x128xf32>, vector<128x8xf32>, vector<8x8xf32> -> vector<8x8xf32>
    %c0_84 = arith.constant 0 : index
    %c24_85 = arith.constant 24 : index
    %105 = vector.load %arg15[%c0_84, %c24_85] : memref<8x32xf32, #tpu.memory_space<vmem>>, vector<8x8xf32>
    tpu.vector_store %arg15[%c0_84, %c24_85], %104 {strides = array<i32>} : memref<8x32xf32, #tpu.memory_space<vmem>>, vector<8x8xf32>,
    %c0_86 = arith.constant 0 : index
    %c0_87 = arith.constant 0 : index
    %106 = vector.load %arg15[%c0_86, %c0_87] : memref<8x32xf32, #tpu.memory_space<vmem>>, vector<8x32xf32>
    %c0_88 = arith.constant 0 : index
    %c0_89 = arith.constant 0 : index
    %107 = vector.load %arg8[%c0_88, %c0_89] : memref<32x32xf32, #tpu.memory_space<vmem>>, vector<32x32xf32>
    %cst_90 = arith.constant dense<0.000000e+00> : vector<8x32xf32>
    %108 = tpu.matmul %106, %107, %cst_90 {dimension_numbers = #tpu.dot_dimension_numbers<[1], [0], [0], [1], [0, 0, 1, 1], [], []>} : vector<8x32xf32>, vector<32x32xf32>, vector<8x32xf32> -> vector<8x32xf32>
    %c0_91 = arith.constant 0 : index
    %c0_92 = arith.constant 0 : index
    %109 = vector.load %arg9[%c0_91, %c0_92] : memref<1x32xf32, #tpu.memory_space<vmem>>, vector<1x32xf32>
    %110 = vector.shape_cast %109 : vector<1x32xf32> to vector<32xf32>
    %111 = vector.shape_cast %110 : vector<32xf32> to vector<1x32xf32>
    %112 = vector.broadcast %111 : vector<1x32xf32> to vector<8x32xf32>
    %113 = arith.addf %108, %112 : vector<8x32xf32>
    %c0_93 = arith.constant 0 : index
    %c0_94 = arith.constant 0 : index
    %c0_95 = arith.constant 0 : index
    %114 = vector.load %arg10[%c0_93, %c0_94, %c0_95] : memref<1x8x32xf32, #tpu.memory_space<vmem>>, vector<1x8x32xf32>
    %115 = vector.shape_cast %114 : vector<1x8x32xf32> to vector<8x32xf32>
    %116 = vector.shape_cast %113 : vector<8x32xf32> to vector<1x8x32xf32>
    tpu.vector_store %arg10[%c0_93, %c0_94, %c0_95], %116 {strides = array<i32>} : memref<1x8x32xf32, #tpu.memory_space<vmem>>, vector<1x8x32xf32>,
    return
  }
  func.func @transform_0(%arg0: i32, %arg1: i32) -> (i32, i32, i32) {
    %c0_i32 = arith.constant 0 : i32
    %c0_i32_0 = arith.constant 0 : i32
    return %arg0, %arg1, %c0_i32 : i32, i32, i32
  }
  func.func @transform_1(%arg0: i32, %arg1: i32) -> (i32, i32, i32) {
    %c0_i32 = arith.constant 0 : i32
    %c0_i32_0 = arith.constant 0 : i32
    %c0_i32_1 = arith.constant 0 : i32
    return %arg0, %c0_i32, %c0_i32_0 : i32, i32, i32
  }
  func.func @transform_2(%arg0: i32, %arg1: i32) -> (i32, i32, i32) {
    %c0_i32 = arith.constant 0 : i32
    %c0_i32_0 = arith.constant 0 : i32
    %c0_i32_1 = arith.constant 0 : i32
    return %arg0, %c0_i32, %c0_i32_0 : i32, i32, i32
  }
  func.func @transform_3(%arg0: i32, %arg1: i32) -> (i32, i32) {
    %c0_i32 = arith.constant 0 : i32
    %c0_i32_0 = arith.constant 0 : i32
    %c0_i32_1 = arith.constant 0 : i32
    return %c0_i32, %c0_i32_0 : i32, i32
  }
  func.func @transform_4(%arg0: i32, %arg1: i32) -> (i32, i32) {
    %c0_i32 = arith.constant 0 : i32
    %c0_i32_0 = arith.constant 0 : i32
    %c0_i32_1 = arith.constant 0 : i32
    return %c0_i32, %c0_i32_0 : i32, i32
  }
  func.func @transform_5(%arg0: i32, %arg1: i32) -> (i32, i32) {
    %c0_i32 = arith.constant 0 : i32
    %c0_i32_0 = arith.constant 0 : i32
    %c0_i32_1 = arith.constant 0 : i32
    return %c0_i32, %c0_i32_0 : i32, i32
  }
  func.func @transform_6(%arg0: i32, %arg1: i32) -> (i32, i32) {
    %c0_i32 = arith.constant 0 : i32
    %c0_i32_0 = arith.constant 0 : i32
    %c0_i32_1 = arith.constant 0 : i32
    return %c0_i32, %c0_i32_0 : i32, i32
  }
  func.func @transform_7(%arg0: i32, %arg1: i32) -> (i32, i32) {
    %c0_i32 = arith.constant 0 : i32
    %c0_i32_0 = arith.constant 0 : i32
    %c0_i32_1 = arith.constant 0 : i32
    return %c0_i32, %c0_i32_0 : i32, i32
  }
  func.func @transform_8(%arg0: i32, %arg1: i32) -> (i32, i32, i32) {
    %c0_i32 = arith.constant 0 : i32
    %c0_i32_0 = arith.constant 0 : i32
    return %arg0, %arg1, %c0_i32 : i32, i32, i32
  }
  func.func @transform_9(%arg0: i32, %arg1: i32) -> (i32, i32, i32, i32) {
    %c0_i32 = arith.constant 0 : i32
    %c0_i32_0 = arith.constant 0 : i32
    %c0_i32_1 = arith.constant 0 : i32
    return %arg0, %c0_i32, %arg1, %c0_i32_0 : i32, i32, i32, i32
  }
}

</mosaic_0001>

<bundles_post_ra>
// kernel: tpu_custom_call.1
= control target key start
LH: loop header
LB: loop body
LE: loop exit
PB: predicated region body
PF: predicated region fallthrough
CT: control target
= control target key end

     0   :  { %s3041_s0 = inlined_call_operand.vmem [shape: f32[2,8,32], index: 0, kind: input, shape index: {}]   ;;  %s3042_s1 = inlined_call_operand.vmem [shape: f32[2,128,32], index: 1, kind: input, shape index: {}]   ;;  %s3043_s2 = inlined_call_operand.vmem [shape: f32[2,128,32], index: 2, kind: input, shape index: {}]   ;;  %s3044_s3 = inlined_call_operand.vmem [shape: f32[32,32], index: 3, kind: input, shape index: {}]   ;;  %s3045_s4 = inlined_call_operand.vmem [shape: f32[32,32], index: 4, kind: input, shape index: {}]   ;;  %s3046_s5 = inlined_call_operand.vmem [shape: f32[32,32], index: 5, kind: input, shape index: {}]   ;;  %s3047_s6 = inlined_call_operand.vmem [shape: f32[32,32], index: 6, kind: input, shape index: {}]   ;;  %s3048_s7 = inlined_call_operand.vmem [shape: f32[1,32], index: 7, kind: input, shape index: {}]   ;;  %s3049_s8 = inlined_call_operand.hbm [shape: f32[2,8,32], index: 8, kind: output, shape index: {0}]   ;;  %s3050_s9 = inlined_call_operand.hbm [shape: f32[2,4,8,128], index: 9, kind: output, shape index: {1}]  }
   0x1   :  { %3052 = sst [smem:[#allocation12_spill]] %s3041_s0 }
   0x2   :  { %3053 = sst [smem:[#allocation13_spill]] %s3042_s1 }
   0x3   :  { %3054 = sst [smem:[#allocation14_spill]] %s3043_s2 }
   0x4   :  { %3055 = sst [smem:[#allocation15_spill]] %s3044_s3 }
   0x5   :  { %3056 = sst [smem:[#allocation16_spill]] %s3045_s4 }
   0x6   :  { %15 = vsyncpa [#allocation7], 0 }
   0x7   :  { %17 = vsyncpa [#allocation7 + $0x1], 0 }
   0x8   :  { %18 = vsyncpa [#allocation9], 0 }
   0x9   :  { %20 = vsyncpa [#allocation9 + $0x1], 0  ;;  %s2366_s30 = smov 0   ;;  %s2368_s10 = smov 0  }
   0xa   :  { %s2370_s11 = smov 0   ;;  %s2372_s12 = smov 0  }
   0xb   :  { %s2374_s13 = smov 0   ;;  %s2376_s14 = smov 0  }
   0xc LB: > { %s1866_s15 = sadd.s32 4294967295, %s2307_s14   ;;  %s1867_s16 = sadd.s32 4294967294, %s2307_s14   ;;  %s2307_s14 = sphi %s2376_s14, %s26_s14   ;;  %s2303_s13 = sphi %s2374_s13, %s3069_s13   ;;  %s2299_s12 = sphi %s2372_s12, %s3068_s12   ;;  %s2295_s11 = sphi %s2370_s11, %s3067_s11   ;;  %s2291_s10 = sphi %s2368_s10, %s3066_s10   ;;  %s2287_s30 = sphi %s2366_s30, %s3065_s30  }
   0xd   : > { %s38_s17 = sadd.s32 1, %s2303_s13  ;;  %s232_s18 = sadd.s32 1, %s2295_s11 }
   0xe   : > { %p40_p0 = scmp.ge.s32.totalorder %s38_s17, 2  ;;  %p242_p1 = scmp.ne.s32.totalorder %s2295_s11, %s2291_s10 }
   0xf   : > { %p243_p2 = scmp.eq.s32.totalorder %s1866_s15, 1  ;;  %p248_p3 = scmp.ne.s32.totalorder %s2291_s10, %s2287_s30 }
  0x10   : > { %s3071_s17 = smov (%p40_p0, %s38_s17), 0  ;;  %p249_p5 = scmp.eq.s32.totalorder %s1867_s16, 1 }
  0x11   : > { %p2406_p4 = por %p243_p2, %p242_p1  ;;  %s227_s20 = ssub.s32 %s2303_s13, %s3071_s17 }
  0x12   : > { %p1870_p6 = scmp.ge.s32.totalorder %s2307_s14, 1  ;;  %p230_p7 = scmp.eq.s32.totalorder %s227_s20, 0 }
  0x13   : > { %p2413_p8 = por %p249_p5, %p248_p3  ;;  %p336_p9 = scmp.lt.s32.totalorder %s2307_s14, 3 }
  0x14   : > { %s2419_s22 = scalar_select %p230_p7, %s2295_s11, %s232_s18  }
  0x15   : > { %p337_p10 = pnand %p1870_p6, %p336_p9 }
  0x16   : > { %s3059_s4 = sld [smem:[#allocation16_spill]] (!%p337_p10)  ;;  %p389_p11 = scmp.lt.s32.totalorder (!%p337_p10), %s2299_s12, 1 }
  0x17   : > { %340 = sbr.rel (%p337_p10) target bundleno = 1559 (0x617), region = 52  ;;  %s3060_s1 = sld [smem:[#allocation13_spill]] (!%p337_p10) }
  0x18   : > { %s3061_s2 = sld [smem:[#allocation14_spill]] (!%p337_p10)  ;;  %s3051_s27 = smov (!%p337_p10), 8  }
  0x19   : > { %s3062_s3 = sld [smem:[#allocation15_spill]] (!%p337_p10)  ;;  %s2313_s28 = smov (!%p337_p10), 24  }
  0x1a   : > { %s3063_s0 = sld [smem:[#allocation12_spill]] (!%p337_p10)  ;;  %s2314_s15 = smov (!%p337_p10), 16  }
  0x1c   : > { %v455_v0 = vld [vmem:[%s3059_s4 + $0x18] sm:$0xff]  ;;  %v454_v1 = vld [vmem:[%s3059_s4 + $0x10] sm:$0xff]  ;;  %v453_v2 = vld [vmem:[%s3059_s4 + $0x8] sm:$0xff]  ;;  %s2432_s29 = scalar_select %p389_p11, %s2299_s12, 1  ;;  %vm411_vm0 = vcmask 261120   ;;  %vm787_vm1 = vcmask 64512  }
  0x1d   : > { %516 = vmatpush.msra.mxu1 %v455_v0  ;;  %v452_v3 = vld [vmem:[%s3059_s4] sm:$0xff]  ;;  %v604_v10 = vld [vmem:[%s3046_s5 + $0x18] sm:$0xff]  ;;  %v603_v11 = vld [vmem:[%s3046_s5 + $0x10] sm:$0xff]  ;;  %s2311_s4 = smov 112  }
  0x1e   : > { %s1990_s18 = sshll.u32 %s2432_s29, 7  ;;  %665 = vmatpush.msra.mxu2 %v604_v10  ;;  %v602_v12 = vld [vmem:[%s3046_s5 + $0x8] sm:$0xff]  ;;  %v601_v13 = vld [vmem:[%s3046_s5] sm:$0xff]  ;;  %s1873_s26 = sshll.u32 %s2432_s29, 3 }
  0x1f   : > { %517 = vmatpush.msra.mxu1 %v454_v1  ;;  %s2441_s24 = scalar_lea.vmem %s3060_s1, %s1990_s18  ;;  %s2470_s25 = scalar_lea.vmem %s3061_s2, %s1990_s18  ;;  %v410_v42 = vld [vmem:[%s3062_s3 + $0x18] sm:$0xff]  ;;  %v409_v44 = vld [vmem:[%s3062_s3 + $0x10] sm:$0xff]  ;;  %v408_v45 = vld [vmem:[%s3062_s3 + $0x8] sm:$0xff] }
  0x20   : > { %v436_v4 = vld [vmem:[%s2441_s24] sm:$0xff]  ;;  %v437_v5 = vld [vmem:[%s2441_s24 + $0x8] sm:$0xff]  ;;  %v438_v6 = vld [vmem:[%s2441_s24 + $0x10] sm:$0xff]  ;;  %666 = vmatpush.msra.mxu2 %v603_v11  ;;  %427 = vmatpush.msra.mxu0 %v410_v42  ;;  %s395_s20 = scalar_lea.vmem %s3063_s0, %s1873_s26  ;;  %s2309_s29 = smov 120  }
  0x21   : > { %518 = vmatpush.msra.mxu1 %v453_v2  ;;  %v439_v7 = vld [vmem:[%s2441_s24 + $0x18] sm:$0xff]  ;;  %v440_v8 = vld [vmem:[%s2441_s24 + $0x20] sm:$0xff]  ;;  %v441_v9 = vld [vmem:[%s2441_s24 + $0x28] sm:$0xff]  ;;  %s2877_s18 = sand.u32 1, %s2291_s10  }
  0x22   : > { %v442_v14 = vld [vmem:[%s2441_s24 + $0x30] sm:$0xff]  ;;  %667 = vmatpush.msra.mxu2 %v602_v12  ;;  %v585_v15 = vld [vmem:[%s2470_s25] sm:$0xff]  ;;  %v443_v16 = vld [vmem:[%s2441_s24 + $0x38] sm:$0xff]  ;;  %428 = vmatpush.msra.mxu0 %v409_v44 }
  0x23   : > { %519 = vmatpush.msra.mxu1 %v452_v3  ;;  %v586_v17 = vld [vmem:[%s2470_s25 + $0x8] sm:$0xff]  ;;  %v444_v18 = vld [vmem:[%s2441_s24 + $0x40] sm:$0xff]  ;;  %v587_v19 = vld [vmem:[%s2470_s25 + $0x10] sm:$0xff] }
  0x24   : > { %1879 = vmatmul.msk.f32.vlgmr.msra.gmra.mxu1 %vm411_vm0, %v436_v4  ;;  %668 = vmatpush.msra.mxu2 %v601_v13  ;;  %v445_v20 = vld [vmem:[%s2441_s24 + $0x48] sm:$0xff]  ;;  %v588_v21 = vld [vmem:[%s2470_s25 + $0x18] sm:$0xff]  ;;  %v446_v22 = vld [vmem:[%s2441_s24 + $0x50] sm:$0xff] }
  0x25   : > { %1895 = vmatmul.msk.f32.vlgmr.msra.gmra.mxu2 %vm411_vm0, %v585_v15  ;;  %v589_v23 = vld [vmem:[%s2470_s25 + $0x20] sm:$0xff]  ;;  %v447_v24 = vld [vmem:[%s2441_s24 + $0x58] sm:$0xff]  ;;  %v590_v25 = vld [vmem:[%s2470_s25 + $0x28] sm:$0xff]  ;;  %429 = vmatpush.msra.mxu0 %v408_v45 }
  0x26   : > { %v448_v26 = vld [vmem:[%s2441_s24 + $0x60] sm:$0xff]  ;;  %v591_v27 = vld [vmem:[%s2470_s25 + $0x30] sm:$0xff]  ;;  %v449_v28 = vld [vmem:[%s2441_s24 + $0x68] sm:$0xff] }
  0x27   : > { %v592_v29 = vld [vmem:[%s2470_s25 + $0x38] sm:$0xff]  ;;  %v450_v30 = vld [vmem:[%s2441_s24 + $0x70] sm:$0xff]  ;;  %v593_v31 = vld [vmem:[%s2470_s25 + $0x40] sm:$0xff] }
  0x28   : > { %v451_v32 = vld [vmem:[%s2441_s24 + $0x78] sm:$0xff]  ;;  %v594_v33 = vld [vmem:[%s2470_s25 + $0x48] sm:$0xff]  ;;  %v595_v36 = vld [vmem:[%s2470_s25 + $0x50] sm:$0xff]  ;;  %s1872_s24 = sshll.u32 %s2877_s18, 5 }
  0x29   : > { %v596_v39 = vld [vmem:[%s2470_s25 + $0x58] sm:$0xff]  ;;  %v597_v43 = vld [vmem:[%s2470_s25 + $0x60] sm:$0xff]  ;;  %v598_v50 = vld [vmem:[%s2470_s25 + $0x68] sm:$0xff]  ;;  %s2880_s26 = scalar_lea.vmem [#allocation8], %s1872_s24 }
  0x2a   : > { %v407_v47 = vld [vmem:[%s3062_s3] sm:$0xff]  ;;  %v599_v53 = vld [vmem:[%s2470_s25 + $0x70] sm:$0xff]  ;;  %v600_v57 = vld [vmem:[%s2470_s25 + $0x78] sm:$0xff]  ;;  %s2310_s25 = smov 104  }
  0x2b   : > { %430 = vmatpush.msra.mxu0 %v407_v47  ;;  %v406_v49 = vld [vmem:[%s395_s20] sm:$0xff] }
  0x2c   : > { %1880 = vmatmul.msk.f32.gmra.mxu1 %vm411_vm0, %v437_v5  ;;  %1878 = vmatmul.msk.f32.vlgmr.msra.gmra.mxu0 %vm411_vm0, %v406_v49 }
  0x2d   : > { %1896 = vmatmul.msk.f32.gmra.mxu2 %vm411_vm0, %v586_v17 }
  0x34   : > { %1881 = vmatmul.msk.f32.gmra.mxu1 %vm411_vm0, %v438_v6 }
  0x35   : > { %1897 = vmatmul.msk.f32.gmra.mxu2 %vm411_vm0, %v587_v19 }
  0x3c   : > { %1882 = vmatmul.msk.f32.gmra.mxu1 %vm411_vm0, %v439_v7 }
  0x3d   : > { %1898 = vmatmul.msk.f32.gmra.mxu2 %vm411_vm0, %v588_v21 }
  0x44   : > { %1883 = vmatmul.msk.f32.gmra.mxu1 %vm411_vm0, %v440_v8 }
  0x45   : > { %1899 = vmatmul.msk.f32.gmra.mxu2 %vm411_vm0, %v589_v23 }
  0x4c   : > { %1884 = vmatmul.msk.f32.gmra.mxu1 %vm411_vm0, %v441_v9 }
  0x4d   : > { %1900 = vmatmul.msk.f32.gmra.mxu2 %vm411_vm0, %v590_v25 }
  0x54   : > { %1885 = vmatmul.msk.f32.gmra.mxu1 %vm411_vm0, %v442_v14 }
  0x55   : > { %1901 = vmatmul.msk.f32.gmra.mxu2 %vm411_vm0, %v591_v27 }
  0x5c   : > { %1886 = vmatmul.msk.f32.gmra.mxu1 %vm411_vm0, %v443_v16 }
  0x5d   : > { %1902 = vmatmul.msk.f32.gmra.mxu2 %vm411_vm0, %v592_v29 }
  0x64   : > { %1887 = vmatmul.msk.f32.gmra.mxu1 %vm411_vm0, %v444_v18 }
  0x65   : > { %1903 = vmatmul.msk.f32.gmra.mxu2 %vm411_vm0, %v593_v31 }
  0x6c   : > { %1888 = vmatmul.msk.f32.gmra.mxu1 %vm411_vm0, %v445_v20 }
  0x6d   : > { %1904 = vmatmul.msk.f32.gmra.mxu2 %vm411_vm0, %v594_v33 }
  0x74   : > { %1889 = vmatmul.msk.f32.gmra.mxu1 %vm411_vm0, %v446_v22 }
  0x75   : > { %1905 = vmatmul.msk.f32.gmra.mxu2 %vm411_vm0, %v595_v36 }
  0x7c   : > { %1890 = vmatmul.msk.f32.gmra.mxu1 %vm411_vm0, %v447_v24 }
  0x7d   : > { %1906 = vmatmul.msk.f32.gmra.mxu2 %vm411_vm0, %v596_v39 }
  0x84   : > { %1891 = vmatmul.msk.f32.gmra.mxu1 %vm411_vm0, %v448_v26 }
  0x85   : > { %1907 = vmatmul.msk.f32.gmra.mxu2 %vm411_vm0, %v597_v43 }
  0x8c   : > { %1892 = vmatmul.msk.f32.gmra.mxu1 %vm411_vm0, %v449_v28 }
  0x8d   : > { %1908 = vmatmul.msk.f32.gmra.mxu2 %vm411_vm0, %v598_v50 }
  0x94   : > { %1893 = vmatmul.msk.f32.gmra.mxu1 %vm411_vm0, %v450_v30 }
  0x95   : > { %1909 = vmatmul.msk.f32.gmra.mxu2 %vm411_vm0, %v599_v53 }
  0x9c   : > { %1894 = vmatmul.msk.f32.gmra.mxu1 %vm411_vm0, %v451_v32 }
  0x9d   : > { %1910 = vmatmul.msk.f32.gmra.mxu2 %vm411_vm0, %v600_v57 }
  0xa1   : > { %v521_v34 = vpop.f32.mrf.mxu1 }
  0xa2   : > { %v569_v35 = vmul.f32 0.59460354, %v521_v34 }
  0xa4   : > { %719 = vst.msk [vmem:[#allocation3] sm:$0xff] %vm411_vm0, %v569_v35 }
  0xa8   : > { %v670_v61 = vpop.f32.mrf.mxu2 }
  0xa9   : > { %v524_v37 = vpop.f32.mrf.mxu1  ;;  %735 = vst.msk [vmem:[#allocation4] sm:$0xff] %vm411_vm0, %v670_v61 }
  0xaa   : > { %v570_v38 = vmul.f32 0.59460354, %v524_v37 }
  0xac   : > { %720 = vst.msk [vmem:[#allocation3 + $0x8] sm:$0xff] %vm411_vm0, %v570_v38  ;;  %v432_v38 = vpop.f32.mrf.mxu0 }
  0xad   : > { %v435_v39 = vmul.f32 0.59460354, %v432_v38 }
  0xaf   : > { %718 = vst.msk [vmem:[#allocation2] sm:$0xff] %vm411_vm0, %v435_v39 }
  0xb0   : > { %v673_v1 = vpop.f32.mrf.mxu2 }
  0xb1   : > { %v527_v40 = vpop.f32.mrf.mxu1  ;;  %736 = vst.msk [vmem:[#allocation4 + $0x8] sm:$0xff] %vm411_vm0, %v673_v1 }
  0xb2   : > { %v571_v41 = vmul.f32 0.59460354, %v527_v40 }
  0xb4   : > { %721 = vst.msk [vmem:[#allocation3 + $0x10] sm:$0xff] %vm411_vm0, %v571_v41 }
  0xb6   : > { %v2707_v1 = vld [vmem:[#allocation2] sm:$0xff] }
  0xb8   : > { %v676_v5 = vpop.f32.mrf.mxu2 }
  0xb9   : > { %v530_v46 = vpop.f32.mrf.mxu1  ;;  %737 = vst.msk [vmem:[#allocation4 + $0x10] sm:$0xff] %vm411_vm0, %v676_v5 }
  0xba   : > { %v572_v48 = vmul.f32 0.59460354, %v530_v46  ;;  %v2655_v46 = vld [vmem:[#allocation3 + $0x8] sm:$0xff] }
  0xbb   : > { %v1413_v42 = vld [vmem:[#allocation3 + $0x10] sm:$0xff] }
  0xbc   : > { %722 = vst.msk [vmem:[#allocation3 + $0x18] sm:$0xff] %vm411_vm0, %v572_v48 }
  0xc0   : > { %v679_v9 = vpop.f32.mrf.mxu2 }
  0xc1   : > { %v533_v51 = vpop.f32.mrf.mxu1  ;;  %738 = vst.msk [vmem:[#allocation4 + $0x18] sm:$0xff] %vm411_vm0, %v679_v9 }
  0xc2   : > { %v573_v52 = vmul.f32 0.59460354, %v533_v51 }
  0xc3   : > { %v1414_v40 = vld [vmem:[#allocation3 + $0x18] sm:$0xff] }
  0xc4   : > { %723 = vst.msk [vmem:[#allocation3 + $0x20] sm:$0xff] %vm411_vm0, %v573_v52 }
  0xc8   : > { %v682_v13 = vpop.f32.mrf.mxu2 }
  0xc9   : > { %v536_v54 = vpop.f32.mrf.mxu1  ;;  %739 = vst.msk [vmem:[#allocation4 + $0x20] sm:$0xff] %vm411_vm0, %v682_v13 }
  0xca   : > { %v574_v55 = vmul.f32 0.59460354, %v536_v54 }
  0xcb   : > { %v2544_v56 = vld [vmem:[#allocation3 + $0x20] sm:$0xff] }
  0xcc   : > { %724 = vst.msk [vmem:[#allocation3 + $0x28] sm:$0xff] %vm411_vm0, %v574_v55  ;;  %964 = vrot.lane.b32.xlu0 %v2544_v56, %s2309_s29 }
  0xd0   : > { %v685_v17 = vpop.f32.mrf.mxu2 }
  0xd1   : > { %v539_v58 = vpop.f32.mrf.mxu1  ;;  %740 = vst.msk [vmem:[#allocation4 + $0x28] sm:$0xff] %vm411_vm0, %v685_v17  ;;  %v2746_v17 = vld [vmem:[#allocation4] sm:$0xff] }
  0xd2   : > { %v575_v59 = vmul.f32 0.59460354, %v539_v58 }
  0xd3   : > { %v2551_v60 = vld [vmem:[#allocation3 + $0x28] sm:$0xff] }
  0xd4   : > { %725 = vst.msk [vmem:[#allocation3 + $0x30] sm:$0xff] %vm411_vm0, %v575_v59  ;;  %966 = vrot.lane.b32.xlu1 %v2551_v60, %s2309_s29 }
  0xd8   : > { %v688_v21 = vpop.f32.mrf.mxu2  ;;  %v2730_v9 = vld [vmem:[#allocation4 + $0x28] sm:$0xff] }
  0xd9   : > { %v542_v62 = vpop.f32.mrf.mxu1  ;;  %741 = vst.msk [vmem:[#allocation4 + $0x30] sm:$0xff] %vm411_vm0, %v688_v21 }
  0xda   : > { %v576_v63 = vmul.f32 0.59460354, %v542_v62 }
  0xdb   : > { %v2557_v0 = vld [vmem:[#allocation3 + $0x30] sm:$0xff] }
  0xdc   : > { %726 = vst.msk [vmem:[#allocation3 + $0x38] sm:$0xff] %vm411_vm0, %v576_v63  ;;  %968 = vrot.lane.b32.xlu0 %v2557_v0, %s2309_s29  ;;  %v2701_v63 = vld [vmem:[#allocation3] sm:$0xff] }
  0xe0   : > { %v691_v25 = vpop.f32.mrf.mxu2 }
  0xe1   : > { %v545_v2 = vpop.f32.mrf.mxu1  ;;  %742 = vst.msk [vmem:[#allocation4 + $0x38] sm:$0xff] %vm411_vm0, %v691_v25 }
  0xe2   : > { %v577_v3 = vmul.f32 0.59460354, %v545_v2 }
  0xe3   : > { %v2563_v4 = vld [vmem:[#allocation3 + $0x38] sm:$0xff] }
  0xe4   : > { %727 = vst.msk [vmem:[#allocation3 + $0x40] sm:$0xff] %vm411_vm0, %v577_v3  ;;  %1476 = vrot.lane.b32.xlu1 %v2563_v4, %s2310_s25  ;;  %1223 = vrot.lane.b32.xlu0 %v2563_v4, %s2311_s4 }
  0xe5   : > { %970 = vrot.lane.b32.xlu2 %v2563_v4, %s2309_s29 }
  0xe8   : > { %v694_v29 = vpop.f32.mrf.mxu2 }
  0xe9   : > { %v548_v6 = vpop.f32.mrf.mxu1  ;;  %743 = vst.msk [vmem:[#allocation4 + $0x40] sm:$0xff] %vm411_vm0, %v694_v29 }
  0xea   : > { %v578_v7 = vmul.f32 0.59460354, %v548_v6 }
  0xeb   : > { %v2573_v8 = vld [vmem:[#allocation3 + $0x40] sm:$0xff] }
  0xec   : > { %728 = vst.msk [vmem:[#allocation3 + $0x48] sm:$0xff] %vm411_vm0, %v578_v7  ;;  %1478 = vrot.lane.b32.xlu0 %v2573_v8, %s2310_s25  ;;  %1225 = vrot.lane.b32.xlu1 %v2573_v8, %s2311_s4  ;;  %v2722_v7 = vld [vmem:[#allocation4 + $0x38] sm:$0xff] }
  0xed   : > { %972 = vrot.lane.b32.xlu2 %v2573_v8, %s2309_s29 }
  0xf0   : > { %v697_v33 = vpop.f32.mrf.mxu2  ;;  %v2716_v3 = vld [vmem:[#allocation4 + $0x40] sm:$0xff] }
  0xf1   : > { %v551_v10 = vpop.f32.mrf.mxu1  ;;  %744 = vst.msk [vmem:[#allocation4 + $0x48] sm:$0xff] %vm411_vm0, %v697_v33 }
  0xf2   : > { %v579_v11 = vmul.f32 0.59460354, %v551_v10  ;;  %v2732_v10 = vld [vmem:[#allocation4 + $0x20] sm:$0xff] }
  0xf3   : > { %v2583_v12 = vld [vmem:[#allocation3 + $0x48] sm:$0xff] }
  0xf4   : > { %729 = vst.msk [vmem:[#allocation3 + $0x50] sm:$0xff] %vm411_vm0, %v579_v11  ;;  %1480 = vrot.lane.b32.xlu1 %v2583_v12, %s2310_s25  ;;  %1227 = vrot.lane.b32.xlu0 %v2583_v12, %s2311_s4 }
  0xf5   : > { %974 = vrot.lane.b32.xlu2 %v2583_v12, %s2309_s29 }
  0xf8   : > { %v700_v35 = vpop.f32.mrf.mxu2  ;;  %v2710_v2 = vld [vmem:[#allocation4 + $0x48] sm:$0xff] }
  0xf9   : > { %v554_v14 = vpop.f32.mrf.mxu1  ;;  %745 = vst.msk [vmem:[#allocation4 + $0x50] sm:$0xff] %vm411_vm0, %v700_v35  ;;  %v2804_v38 = vpack.i.bf16 %v2716_v3, %v2710_v2 }
  0xfa   : > { %v580_v15 = vmul.f32 0.59460354, %v554_v14  ;;  %v2736_v14 = vld [vmem:[#allocation4 + $0x18] sm:$0xff] }
  0xfb   : > { %v1421_v16 = vld [vmem:[#allocation3 + $0x50] sm:$0xff] }
  0xfc   : > { %730 = vst.msk [vmem:[#allocation3 + $0x58] sm:$0xff] %vm411_vm0, %v580_v15  ;;  %1482 = vrot.lane.b32.xlu1 %v1421_v16, %s2310_s25  ;;  %1229 = vrot.lane.b32.xlu0 %v1421_v16, %s2311_s4  ;;  %v2738_v15 = vld [vmem:[#allocation4 + $0x10] sm:$0xff] }
  0xfd   : > { %976 = vrot.lane.b32.xlu2 %v1421_v16, %s2309_s29 }
 0x100   : > { %v703_v36 = vpop.f32.mrf.mxu2 }
 0x101   : > { %v557_v18 = vpop.f32.mrf.mxu1  ;;  %746 = vst.msk [vmem:[#allocation4 + $0x58] sm:$0xff] %vm411_vm0, %v703_v36 }
 0x102   : > { %v581_v19 = vmul.f32 0.59460354, %v557_v18 }
 0x103   : > { %v1422_v20 = vld [vmem:[#allocation3 + $0x58] sm:$0xff] }
 0x104   : > { %731 = vst.msk [vmem:[#allocation3 + $0x60] sm:$0xff] %vm411_vm0, %v581_v19  ;;  %1484 = vrot.lane.b32.xlu1 %v1422_v20, %s2310_s25  ;;  %1231 = vrot.lane.b32.xlu0 %v1422_v20, %s2311_s4 }
 0x105   : > { %978 = vrot.lane.b32.xlu2 %v1422_v20, %s2309_s29 }
 0x108   : > { %v706_v37 = vpop.f32.mrf.mxu2  ;;  %v2699_v62 = vld [vmem:[#allocation4 + $0x58] sm:$0xff] }
 0x109   : > { %v560_v22 = vpop.f32.mrf.mxu1  ;;  %747 = vst.msk [vmem:[#allocation4 + $0x60] sm:$0xff] %vm411_vm0, %v706_v37 }
 0x10a   : > { %v582_v23 = vmul.f32 0.59460354, %v560_v22 }
 0x10b   : > { %v1170_v24 = vld [vmem:[#allocation3 + $0x60] sm:$0xff] }
 0x10c   : > { %732 = vst.msk [vmem:[#allocation3 + $0x68] sm:$0xff] %vm411_vm0, %v582_v23  ;;  %1233 = vrot.lane.b32.xlu0 %v1170_v24, %s2311_s4  ;;  %980 = vrot.lane.b32.xlu1 %v1170_v24, %s2309_s29 }
 0x110   : > { %v709_v41 = vpop.f32.mrf.mxu2  ;;  %v2689_v58 = vld [vmem:[#allocation4 + $0x60] sm:$0xff] }
 0x111   : > { %v563_v26 = vpop.f32.mrf.mxu1  ;;  %748 = vst.msk [vmem:[#allocation4 + $0x68] sm:$0xff] %vm411_vm0, %v709_v41 }
 0x112   : > { %v583_v27 = vmul.f32 0.59460354, %v563_v26 }
 0x113   : > { %v1171_v28 = vld [vmem:[#allocation3 + $0x68] sm:$0xff] }
 0x114   : > { %733 = vst.msk [vmem:[#allocation3 + $0x70] sm:$0xff] %vm411_vm0, %v583_v27  ;;  %1486 = vrot.lane.b32.xlu1 %v1170_v24, %s2310_s25  ;;  %1235 = vrot.lane.b32.xlu0 %v1171_v28, %s2311_s4 }
 0x118   : > { %v712_v45 = vpop.f32.mrf.mxu2  ;;  %v2683_v55 = vld [vmem:[#allocation4 + $0x68] sm:$0xff] }
 0x119   : > { %v566_v30 = vpop.f32.mrf.mxu1  ;;  %749 = vst.msk [vmem:[#allocation4 + $0x70] sm:$0xff] %vm411_vm0, %v712_v45  ;;  %v2820_v41 = vpack.i.bf16 %v2689_v58, %v2683_v55  ;;  %v751_v45 = vlaneseq }
 0x11a   : > { %v584_v31 = vmul.f32 0.59460354, %v566_v30 }
 0x11b   : > { %v1172_v32 = vld [vmem:[#allocation3 + $0x70] sm:$0xff] }
 0x11c   : > { %734 = vst.msk [vmem:[#allocation3 + $0x78] sm:$0xff] %vm411_vm0, %v584_v31  ;;  %1474 = vrot.lane.b32.xlu0 %v2557_v0, %s2310_s25  ;;  %982 = vrot.lane.b32.xlu1 %v1171_v28, %s2309_s29 }
 0x11d   : > { %1237 = vrot.lane.b32.xlu2 %v1172_v32, %s2311_s4 }
 0x120   : > { %v715_v49 = vpop.f32.mrf.mxu2  ;;  %v2679_v54 = vld [vmem:[#allocation4 + $0x70] sm:$0xff] }
 0x121   : > { %750 = vst.msk [vmem:[#allocation4 + $0x78] sm:$0xff] %vm411_vm0, %v715_v49 }
 0x123   : > { %v920_v34 = vld [vmem:[#allocation3 + $0x78] sm:$0xff] }
 0x124   : > { %1488 = vrot.lane.b32.xlu1 %v1171_v28, %s2310_s25  ;;  %986 = vrot.lane.b32.xlu0 %v920_v34, %s2309_s29 }
 0x125   : > { %1219 = vrot.lane.b32.xlu2 %v2551_v60, %s2311_s4  ;;  %1911 = vmatpush.xpose.msk.msra.mxu3 %vm787_vm1, %v920_v34 }
 0x128   : > { %v2677_v53 = vld [vmem:[#allocation4 + $0x78] sm:$0xff] }
 0x129   : > { %1912 = vmatpush.xpose.msk.msra.mxu3 %vm787_vm1, %v1172_v32  ;;  %883 = vmatpush.msrb.mxu0 %v2677_v53  ;;  %v2798_v37 = vpack.i.bf16 %v2679_v54, %v2677_v53 }
 0x12b   : > { %884 = vmatpush.msrb.mxu0 %v2679_v54 }
 0x12c   : > { %984 = vrot.lane.b32.xlu1 %v1172_v32, %s2309_s29 }
 0x12d   : > { %1239 = vrot.lane.b32.xlu2 %v920_v34, %s2311_s4  ;;  %1913 = vmatpush.xpose.msk.msra.mxu3 %vm787_vm1, %v1171_v28 }
 0x12e   : > { %885 = vmatpush.msrb.mxu0 %v2683_v55 }
 0x130   : > { %886 = vmatpush.msrb.mxu0 %v2689_v58 }
 0x131   : > { %1914 = vmatpush.xpose.msk.msra.mxu3 %vm787_vm1, %v1170_v24 }
 0x132   : > { %887 = vmatpush.msrb.mxu0 %v2699_v62 }
 0x134   : > { %1221 = vrot.lane.b32.xlu1 %v2557_v0, %s2311_s4 }
 0x135   : > { %1492 = vrot.lane.b32.xlu2 %v920_v34, %s2310_s25  ;;  %1915 = vmatpush.xpose.msk.msra.mxu3 %vm787_vm1, %v1422_v20 }
 0x139   : > { %1916 = vmatpush.xpose.msk.msra.mxu3 %vm787_vm1, %v1421_v16  ;;  %v2744_v16 = vld [vmem:[#allocation4 + $0x8] sm:$0xff] }
 0x13c   : > { %1490 = vrot.lane.b32.xlu1 %v1172_v32, %s2310_s25 }
 0x13d   : > { %1468 = vrot.lane.b32.xlu2 %v1414_v40, %s2310_s25  ;;  %1917 = vmatpush.xpose.msk.msra.mxu3 %vm787_vm1, %v2583_v12 }
 0x13e   : > { %v2647_v43 = vpop.permute.xlu0 %964 }
 0x13f   : > { %v2649_v44 = vpop.permute.xlu2 %970 }
 0x141   : > { %1918 = vmatpush.xpose.msk.msra.mxu3 %vm787_vm1, %v2573_v8  ;;  %v2724_v8 = vld [vmem:[#allocation4 + $0x30] sm:$0xff] }
 0x144   : > { %962 = vrot.lane.b32.xlu1 %v1414_v40, %s2309_s29 }
 0x145   : > { %1466 = vrot.lane.b32.xlu2 %v1413_v42, %s2310_s25  ;;  %1919 = vmatpush.xpose.msk.msra.mxu3 %vm787_vm1, %v2563_v4 }
 0x146   : > { %v2661_v47 = vpop.permute.xlu1 %966 }
 0x147   : > { %v2665_v50 = vpop.permute.xlu2 %972 }
 0x149   : > { %1920 = vmatpush.xpose.msk.msra.mxu3 %vm787_vm1, %v2557_v0  ;;  %v2703_v0 = vld [vmem:[#allocation4 + $0x50] sm:$0xff] }
 0x14a   : > { %888 = vmatpush.msrb.mxu0 %v2703_v0 }
 0x14c   : > { %960 = vrot.lane.b32.xlu1 %v1413_v42, %s2309_s29  ;;  %889 = vmatpush.msrb.mxu0 %v2710_v2 }
 0x14d   : > { %1464 = vrot.lane.b32.xlu2 %v2655_v46, %s2310_s25  ;;  %1921 = vmatpush.xpose.msk.msra.mxu3 %vm787_vm1, %v2551_v60 }
 0x14e   : > { %v2663_v48 = vpop.permute.xlu0 %968  ;;  %890 = vmatpush.msrb.mxu0 %v2716_v3 }
 0x14f   : > { %v2685_v57 = vpop.permute.xlu2 %974 }
 0x150   : > { %891 = vmatpush.msrb.mxu0 %v2722_v7 }
 0x151   : > { %1922 = vmatpush.xpose.msk.msra.mxu3 %vm787_vm1, %v2544_v56 }
 0x152   : > { %892 = vmatpush.msrb.mxu0 %v2724_v8 }
 0x154   : > { %1470 = vrot.lane.b32.xlu1 %v2544_v56, %s2310_s25  ;;  %893 = vmatpush.msrb.mxu0 %v2730_v9 }
 0x155   : > { %1923 = vmatpush.xpose.msk.msra.mxu3 %vm787_vm1, %v1414_v40 }
 0x156   : > { %v2673_v51 = vpop.permute.xlu1 %1476  ;;  %v2675_v52 = vpop.permute.xlu0 %1223  ;;  %894 = vmatpush.msrb.mxu0 %v2732_v10 }
 0x157   : > { %v977_v4 = vpop.permute.xlu2 %976 }
 0x158   : > { %895 = vmatpush.msrb.mxu0 %v2736_v14 }
 0x159   : > { %1924 = vmatpush.xpose.msk.msra.mxu3 %vm787_vm1, %v1413_v42 }
 0x15a   : > { %896 = vmatpush.msrb.mxu0 %v2738_v15 }
 0x15c   : > { %1215 = vrot.lane.b32.xlu1 %v1414_v40, %s2311_s4  ;;  %897 = vmatpush.msrb.mxu0 %v2744_v16  ;;  %v2812_v40 = vpack.i.bf16 %v2703_v0, %v2699_v62 }
 0x15d   : > { %1925 = vmatpush.xpose.msk.msra.mxu3 %vm787_vm1, %v2655_v46 }
 0x15e   : > { %v2694_v59 = vpop.permute.xlu0 %1478  ;;  %v2696_v61 = vpop.permute.xlu1 %1225  ;;  %898 = vmatpush.msrb.mxu0 %v2746_v17 }
 0x15f   : > { %v979_v13 = vpop.permute.xlu2 %978 }
 0x161   : > { %1926 = vmatpush.xpose.msk.msra.mxu3 %vm787_vm1, %v2701_v63 }
 0x164   : > { %1927 = vmatmul.msk.f32.vlgmr.msra.gmra.mxu3 %vm787_vm1, %v2707_v1  ;;  %1213 = vrot.lane.b32.xlu1 %v1413_v42, %s2311_s4  ;;  %v2828_v42 = vpack.i.bf16 %v2732_v10, %v2730_v9 }
 0x166   : > { %v2719_v5 = vpop.permute.xlu1 %1480  ;;  %v1228_v6 = vpop.permute.xlu0 %1227 }
 0x16c   : > { %1211 = vrot.lane.b32.xlu1 %v2655_v46, %s2311_s4 }
 0x16e   : > { %v1483_v11 = vpop.permute.xlu1 %1482  ;;  %v1230_v12 = vpop.permute.xlu0 %1229 }
 0x174   : > { %1462 = vrot.lane.b32.xlu1 %v2701_v63, %s2310_s25 }
 0x176   : > { %v1485_v18 = vpop.permute.xlu1 %1484  ;;  %v1232_v19 = vpop.permute.xlu0 %1231 }
 0x177   : > { %v1238_v20 = vpop.permute.xlu2 %1237 }
 0x17c   : > { %2061 = vrot.lane.b32.xlu1 %v2798_v37, %s2309_s29 }
 0x17e   : > { %v1234_v21 = vpop.permute.xlu0 %1233  ;;  %v981_v22 = vpop.permute.xlu1 %980 }
 0x17f   : > { %v1220_v23 = vpop.permute.xlu2 %1219 }
 0x184   : > { %2081 = vrot.lane.b32.xlu1 %v2804_v38, %s2309_s29 }
 0x186   : > { %v1487_v24 = vpop.permute.xlu1 %1486  ;;  %v1236_v25 = vpop.permute.xlu0 %1235 }
 0x187   : > { %v1240_v26 = vpop.permute.xlu2 %1239 }
 0x188   : > { %1946 = vmatpush.xpose.msk.msrb.mxu1 %vm787_vm1, %v1240_v26 }
 0x18c   : > { %1947 = vmatpush.xpose.msk.msrb.mxu1 %vm787_vm1, %v1238_v20  ;;  %2091 = vrot.lane.b32.xlu1 %v2798_v37, %s2310_s25 }
 0x18e   : > { %v1475_v27 = vpop.permute.xlu0 %1474  ;;  %v983_v28 = vpop.permute.xlu1 %982 }
 0x18f   : > { %v1493_v29 = vpop.permute.xlu2 %1492 }
 0x190   : > { %1948 = vmatpush.xpose.msk.msrb.mxu1 %vm787_vm1, %v1236_v25  ;;  %1964 = vmatpush.xpose.msk.msrb.mxu2 %vm787_vm1, %v1493_v29 }
 0x194   : > { %1949 = vmatpush.xpose.msk.msrb.mxu1 %vm787_vm1, %v1234_v21  ;;  %2101 = vrot.lane.b32.xlu1 %v2812_v40, %s2311_s4 }
 0x196   : > { %v1489_v30 = vpop.permute.xlu1 %1488  ;;  %v987_v31 = vpop.permute.xlu0 %986 }
 0x197   : > { %1928 = vmatpush.xpose.msk.msra.mxu0 %vm787_vm1, %v987_v31  ;;  %v2095_v31 = vpack.i.bf16 %v2724_v8, %v2722_v7 }
 0x198   : > { %1950 = vmatpush.xpose.msk.msrb.mxu1 %vm787_vm1, %v1232_v19 }
 0x19c   : > { %1951 = vmatpush.xpose.msk.msrb.mxu1 %vm787_vm1, %v1230_v12  ;;  %2106 = vrot.lane.b32.xlu1 %v2820_v41, %s2310_s25 }
 0x19e   : > { %v985_v32 = vpop.permute.xlu1 %984 }
 0x19f   : > { %1929 = vmatpush.xpose.msk.msra.mxu0 %vm787_vm1, %v985_v32 }
 0x1a0   : > { %1952 = vmatpush.xpose.msk.msrb.mxu1 %vm787_vm1, %v1228_v6 }
 0x1a3   : > { %1930 = vmatpush.xpose.msk.msra.mxu0 %vm787_vm1, %v983_v28 }
 0x1a4   : > { %1953 = vmatpush.xpose.msk.msrb.mxu1 %vm787_vm1, %v2696_v61  ;;  %2111 = vrot.lane.b32.xlu1 %v2828_v42, %s2309_s29 }
 0x1a6   : > { %v1222_v33 = vpop.permute.xlu1 %1221 }
 0x1a7   : > { %1931 = vmatpush.xpose.msk.msra.mxu0 %vm787_vm1, %v981_v22 }
 0x1a8   : > { %1954 = vmatpush.xpose.msk.msrb.mxu1 %vm787_vm1, %v2675_v52 }
 0x1ab   : > { %1932 = vmatpush.xpose.msk.msra.mxu0 %vm787_vm1, %v979_v13 }
 0x1ac   : > { %1955 = vmatpush.xpose.msk.msrb.mxu1 %vm787_vm1, %v1222_v33  ;;  %2116 = vrot.lane.b32.xlu1 %v2804_v38, %s2311_s4 }
 0x1ae   : > { %v1491_v34 = vpop.permute.xlu1 %1490 }
 0x1af   : > { %1933 = vmatpush.xpose.msk.msra.mxu0 %vm787_vm1, %v977_v4  ;;  %1965 = vmatpush.xpose.msk.msrb.mxu2 %vm787_vm1, %v1491_v34 }
 0x1b0   : > { %1956 = vmatpush.xpose.msk.msrb.mxu1 %vm787_vm1, %v1220_v23 }
 0x1b3   : > { %1934 = vmatpush.xpose.msk.msra.mxu0 %vm787_vm1, %v2685_v57  ;;  %1966 = vmatpush.xpose.msk.msrb.mxu2 %vm787_vm1, %v1489_v30 }
 0x1b6   : > { %v963_v35 = vpop.permute.xlu1 %962 }
 0x1b7   : > { %1935 = vmatpush.xpose.msk.msra.mxu0 %vm787_vm1, %v2665_v50  ;;  %1967 = vmatpush.xpose.msk.msrb.mxu2 %vm787_vm1, %v1487_v24 }
 0x1bb   : > { %1936 = vmatpush.xpose.msk.msra.mxu0 %vm787_vm1, %v2649_v44  ;;  %1968 = vmatpush.xpose.msk.msrb.mxu2 %vm787_vm1, %v1485_v18 }
 0x1be   : > { %v961_v36 = vpop.permute.xlu1 %960 }
 0x1bf   : > { %1937 = vmatpush.xpose.msk.msra.mxu0 %vm787_vm1, %v2663_v48  ;;  %1969 = vmatpush.xpose.msk.msrb.mxu2 %vm787_vm1, %v1483_v11 }
 0x1c3   : > { %1938 = vmatpush.xpose.msk.msra.mxu0 %vm787_vm1, %v2661_v47  ;;  %1970 = vmatpush.xpose.msk.msrb.mxu2 %vm787_vm1, %v2719_v5  ;;  %v2850_v47 = vand.u32 127, %v751_v45 }
 0x1c5   : > { %vm753_vm2 = vcmp.lt.s32.totalorder %v2850_v47, 8 }
 0x1c7   : > { %1939 = vmatpush.xpose.msk.msra.mxu0 %vm787_vm1, %v2647_v43  ;;  %1971 = vmatpush.xpose.msk.msrb.mxu2 %vm787_vm1, %v2694_v59 }
 0x1cb   : > { %1940 = vmatpush.xpose.msk.msra.mxu0 %vm787_vm1, %v963_v35  ;;  %1972 = vmatpush.xpose.msk.msrb.mxu2 %vm787_vm1, %v2673_v51  ;;  %v1469_v51 = vpop.permute.xlu2 %1468 }
 0x1cf   : > { %1941 = vmatpush.xpose.msk.msra.mxu0 %vm787_vm1, %v961_v36  ;;  %1973 = vmatpush.xpose.msk.msrb.mxu2 %vm787_vm1, %v1475_v27 }
 0x1d3   : > { %v1467_v54 = vpop.permute.xlu2 %1466 }
 0x1db   : > { %v1465_v59 = vpop.permute.xlu2 %1464 }
 0x1e7   : > { %v856_v39 = vpop.f32.mrf.mxu3 }
 0x1e8   : > { %859 = vmax.xlane.f32.xlu0 %v856_v39 }
 0x1fc   : > { %1472 = vrot.lane.b32.xlu0 %v2551_v60, %s2310_s25  ;;  %v2838_v60 = vpack.i.bf16 %v2738_v15, %v2736_v14 }
 0x1fe   : > { %2126 = vrot.lane.b32.xlu1 %v2838_v60, %s2309_s29 }
 0x204   : > { %1217 = vrot.lane.b32.xlu0 %v2544_v56, %s2311_s4  ;;  %v1471_v56 = vpop.permute.xlu1 %1470 }
 0x20c   : > { %958 = vrot.lane.b32.xlu0 %v2655_v46, %s2309_s29  ;;  %v1216_v48 = vpop.permute.xlu1 %1215 }
 0x214   : > { %956 = vrot.lane.b32.xlu0 %v2701_v63, %s2309_s29  ;;  %v1214_v53 = vpop.permute.xlu1 %1213 }
 0x21c   : > { %938 = vrot.lane.b32.xlu0 %v2707_v1, %s2309_s29  ;;  %v1212_v57 = vpop.permute.xlu1 %1211 }
 0x224   : > { %1209 = vrot.lane.b32.xlu0 %v2701_v63, %s2311_s4  ;;  %v1463_v61 = vpop.permute.xlu1 %1462 }
 0x22c   : > { %1444 = vrot.lane.b32.xlu0 %v2707_v1, %s2310_s25  ;;  %v2062_v3 = vpop.permute.xlu1 %2061 }
 0x22d   : > { %v2064_v5 = vunpack.i.h.bf16 %v2062_v3 }
 0x234   : > { %v2871_v4 = vpop.permute.xlu1 %2081 }
 0x23c   : > { %v2092_v6 = vpop.permute.xlu1 %2091 }
 0x23d   : > { %v2093_v23 = vunpack.i.l.bf16 %v2092_v6  ;;  %v2094_v26 = vunpack.i.h.bf16 %v2092_v6 }
 0x244   : > { %v2874_v13 = vpop.permute.xlu1 %2101 }
 0x24c   : > { %v2107_v27 = vpop.permute.xlu1 %2106 }
 0x24d   : > { %v2108_v28 = vunpack.i.l.bf16 %v2107_v27  ;;  %v2109_v29 = vunpack.i.h.bf16 %v2107_v27 }
 0x25b   : > { %v860_v43 = vpop.xlane.xlu0 %859 }
 0x25c   : > { %v861_v44 = vsub.f32 %v856_v39, %v860_v43  ;;  %v2112_v39 = vpop.permute.xlu1 %2111 }
 0x25d   : > { %v2113_v6 = vunpack.i.l.bf16 %v2112_v39 }
 0x25e   : > { %v862_v46 = vmul.f32 1.442695, %v861_v44 }
 0x260   : > { %2181 = vpow2.f32 %v862_v46 }
 0x266   : > { %v2182_v49 = vpop.eup %2181 }
 0x267   : > { %v864_v50 = vsel %vm753_vm2, %v2182_v49, 0.0 }
 0x268   : > { %865 = vadd.xlane.f32.xlu2 %v864_v50 }
 0x26e   : > { %v1473_v52 = vpop.permute.xlu0 %1472 }
 0x26f   : > { %1974 = vmatpush.xpose.msk.msrb.mxu2 %vm787_vm1, %v1473_v52 }
 0x273   : > { %1975 = vmatpush.xpose.msk.msrb.mxu2 %vm787_vm1, %v1471_v56  ;;  %v2913_v56 = vpop.permute.xlu1 %2116 }
 0x276   : > { %v1218_v55 = vpop.permute.xlu0 %1217 }
 0x277   : > { %1957 = vmatpush.xpose.msk.msrb.mxu1 %vm787_vm1, %v1218_v55  ;;  %1976 = vmatpush.xpose.msk.msrb.mxu2 %vm787_vm1, %v1469_v51 }
 0x27b   : > { %1958 = vmatpush.xpose.msk.msrb.mxu1 %vm787_vm1, %v1216_v48  ;;  %1977 = vmatpush.xpose.msk.msrb.mxu2 %vm787_vm1, %v1467_v54  ;;  %v2127_v49 = vpop.permute.xlu1 %2126 }
 0x27e   : > { %v959_v58 = vpop.permute.xlu0 %958 }
 0x27f   : > { %1942 = vmatpush.xpose.msk.msra.mxu0 %vm787_vm1, %v959_v58  ;;  %1959 = vmatpush.xpose.msk.msrb.mxu1 %vm787_vm1, %v1214_v53 }
 0x280   : > { %1978 = vmatpush.xpose.msk.msrb.mxu2 %vm787_vm1, %v1465_v59  ;;  %1191 = vrot.lane.b32.xlu2 %v2707_v1, %s2311_s4  ;;  %v2063_v1 = vunpack.i.l.bf16 %v2062_v3 }
 0x282   : > { %1131 = vmatpush.msrb.mxu3 %v2063_v1 }
 0x283   : > { %1960 = vmatpush.xpose.msk.msrb.mxu1 %vm787_vm1, %v1212_v57  ;;  %v2083_v57 = vunpack.i.l.bf16 %v2871_v4 }
 0x284   : > { %1979 = vmatpush.xpose.msk.msrb.mxu2 %vm787_vm1, %v1463_v61  ;;  %1132 = vmatpush.msrb.mxu3 %v2064_v5 }
 0x286   : > { %v957_v62 = vpop.permute.xlu0 %956 }
 0x287   : > { %1943 = vmatpush.xpose.msk.msra.mxu0 %vm787_vm1, %v957_v62  ;;  %v2084_v62 = vunpack.i.h.bf16 %v2871_v4 }
 0x28e   : > { %v939_v63 = vpop.permute.xlu0 %938 }
 0x296   : > { %v1210_v0 = vpop.permute.xlu0 %1209 }
 0x297   : > { %1961 = vmatpush.xpose.msk.msrb.mxu1 %vm787_vm1, %v1210_v0 }
 0x29e   : > { %v1445_v2 = vpop.permute.xlu0 %1444 }
 0x29f   : > { %1980 = vmatmul.msk.f32.vlgmr.msrb.gmra.mxu2 %vm787_vm1, %v1445_v2 }
 0x2db   : > { %v866_v9 = vpop.xlane.xlu2 %865 }
 0x2dc   : > { %2183 = vrcp.f32 %v866_v9  ;;  %v878_v15 = vand.u32 2147483648, %v866_v9  ;;  %v876_v19 = vand.u32 2147483647, %v866_v9  ;;  %vm872_vm4 = vweird.f32 %v866_v9 }
 0x2de   : > { %v879_v21 = vor.u32 1.1754944e-38, %v878_v15  ;;  %vm877_vm6 = vcmp.eq.f32.partialorder %v876_v19, 8.507059e+37  ;;  %v2129_v15 = vunpack.i.h.bf16 %v2127_v49 }
 0x2e2   : > { %v2184_v10 = vpop.eup %2183 }
 0x2e3   : > { %v868_v11 = vmul.f32 %v2184_v10, %v866_v9  ;;  %v1192_v12 = vpop.permute.xlu2 %1191  ;;  %vm873_vm3 = vweird.f32 %v2184_v10 }
 0x2e4   : > { %1962 = vmatmul.msk.f32.vlgmr.msrb.gmra.mxu1 %vm787_vm1, %v1192_v12  ;;  %vm874_vm5 = vmor %vm872_vm4, %vm873_vm3  ;;  %vm1155_vm4 = vcmask 130112  }
 0x2e5   : > { %v869_v14 = vsub.f32 1.0, %v868_v11  ;;  %v2128_v11 = vunpack.i.l.bf16 %v2127_v49 }
 0x2e7   : > { %v870_v18 = vmul.f32 %v2184_v10, %v869_v14  ;;  %v2140_v14 = vpack.i.bf16 %v2746_v17, %v2744_v16 }
 0x2e9   : > { %v871_v20 = vadd.f32 %v2184_v10, %v870_v18 }
 0x2eb   : > { %v875_v22 = vsel %vm874_vm5, %v2184_v10, %v871_v20  ;;  %v2114_v10 = vunpack.i.h.bf16 %v2112_v39  ;;  %vm1408_vm5 = vcmask 195712  }
 0x2ec   : > { %v880_v24 = vsel %vm877_vm6, %v879_v21, %v875_v22  ;;  %vm1661_vm6 = vcmask 261312  }
 0x2ed   : > { %v881_v25 = vmul.f32 %v880_v24, %v864_v50 }
 0x2ef   : > { %882 = vst [vmem:[%s2880_s26] sm:$0xff] %v881_v25  ;;  %899 = vmatmul.f32.vlgmr.msrb.gmra.mxu0 %v881_v25 }
 0x2f0   : > { %1637 = vmatpush.msrb.mxu0 %v2093_v23 }
 0x2f2   : > { %1638 = vmatpush.msrb.mxu0 %v2094_v26 }
 0x2f4   : > { %1639 = vmatpush.msrb.mxu0 %v2108_v28 }
 0x2f6   : > { %1640 = vmatpush.msrb.mxu0 %v2109_v29 }
 0x2f7   : > { %1944 = vmatmul.msk.f32.vlgmr.msra.gmra.mxu0 %vm787_vm1, %v939_v63 }
 0x322   : > { %v1545_v30 = vpop.f32.mrf.mxu2 }
 0x323   : > { %1548 = vmax.xlane.f32.xlu0 %v1545_v30 }
 0x337   : > { %2071 = vrot.lane.b32.xlu0 %v2812_v40, %s2309_s29 }
 0x33f   : > { %2076 = vrot.lane.b32.xlu0 %v2798_v37, %s2311_s4 }
 0x347   : > { %2086 = vrot.lane.b32.xlu0 %v2820_v41, %s2311_s4 }
 0x34f   : > { %2096 = vrot.lane.b32.xlu0 %v2095_v31, %s2309_s29 }
 0x361   : > { %v1292_v32 = vpop.f32.mrf.mxu1 }
 0x362   : > { %1295 = vmax.xlane.f32.xlu2 %v1292_v32 }
 0x36c   : > { %v900_v33 = vpop.f32.mrf.mxu0 }
 0x36d   : > { %903 = vst.msk [vmem:[#allocation5] sm:$0xff] %vm787_vm1, %v900_v33 }
 0x374   : > { %v1039_v34 = vpop.f32.mrf.mxu0 }
 0x375   : > { %1042 = vmax.xlane.f32.xlu1 %v1039_v34 }
 0x37a   : > { %2066 = vrot.lane.b32.xlu2 %v2820_v41, %s2309_s29 }
 0x382   : > { %2121 = vrot.lane.b32.xlu2 %v2812_v40, %s2310_s25 }
 0x38a   : > { %2136 = vrot.lane.b32.xlu2 %v2804_v38, %s2310_s25 }
 0x38e   : > { %2131 = vrot.lane.b32.xlu1 %v2095_v31, %s2311_s4 }
 0x392   : > { %2146 = vrot.lane.b32.xlu2 %v2828_v42, %s2311_s4 }
 0x396   : > { %v1549_v7 = vpop.xlane.xlu0 %1548 }
 0x397   : > { %v1550_v8 = vsub.f32 %v1545_v30, %v1549_v7 }
 0x399   : > { %v1551_v35 = vmul.f32 1.442695, %v1550_v8 }
 0x39a   : > { %2151 = vrot.lane.b32.xlu2 %v2095_v31, %s2310_s25 }
 0x39b   : > { %2185 = vpow2.f32 %v1551_v35 }
 0x3a1   : > { %v2186_v36 = vpop.eup %2185 }
 0x3a2   : > { %2161 = vrot.lane.b32.xlu2 %v2828_v42, %s2310_s25  ;;  %v2908_v37 = vsel %vm753_vm2, %v2186_v36, 0.0 }
 0x3a9   : > { %v2072_v38 = vpop.permute.xlu0 %2071 }
 0x3aa   : > { %v2073_v52 = vunpack.i.l.bf16 %v2072_v38  ;;  %v2074_v53 = vunpack.i.h.bf16 %v2072_v38 }
 0x3b1   : > { %v2911_v40 = vpop.permute.xlu0 %2076 }
 0x3b8   : > { %1554 = vadd.xlane.f32.xlu1 %v2908_v37 }
 0x3b9   : > { %v2915_v44 = vpop.permute.xlu0 %2086 }
 0x3c1   : > { %v2097_v58 = vpop.permute.xlu0 %2096 }
 0x3c2   : > { %v2098_v0 = vunpack.i.l.bf16 %v2097_v58  ;;  %v2099_v3 = vunpack.i.h.bf16 %v2097_v58 }
 0x3d5   : > { %v1296_v41 = vpop.xlane.xlu2 %1295 }
 0x3d6   : > { %v1297_v43 = vsub.f32 %v1292_v32, %v1296_v41 }
 0x3d8   : > { %v1298_v42 = vmul.f32 1.442695, %v1297_v43 }
 0x3da   : > { %2187 = vpow2.f32 %v1298_v42 }
 0x3dd   : > { %v2067_v45 = vpop.permute.xlu2 %2066 }
 0x3de   : > { %v2068_v46 = vunpack.i.l.bf16 %v2067_v45  ;;  %v2069_v50 = vunpack.i.h.bf16 %v2067_v45 }
 0x3e0   : > { %v2188_v48 = vpop.eup %2187  ;;  %1133 = vmatpush.msrb.mxu3 %v2068_v46 }
 0x3e1   : > { %v2919_v51 = vsel %vm753_vm2, %v2188_v48, 0.0 }
 0x3e2   : > { %1134 = vmatpush.msrb.mxu3 %v2069_v50  ;;  %1301 = vadd.xlane.f32.xlu0 %v2919_v51 }
 0x3e4   : > { %1135 = vmatpush.msrb.mxu3 %v2073_v52  ;;  %v2078_v52 = vunpack.i.l.bf16 %v2911_v40 }
 0x3e5   : > { %v2122_v54 = vpop.permute.xlu2 %2121 }
 0x3e6   : > { %v2123_v55 = vunpack.i.l.bf16 %v2122_v54  ;;  %1136 = vmatpush.msrb.mxu3 %v2074_v53  ;;  %v2124_v59 = vunpack.i.h.bf16 %v2122_v54  ;;  %v2079_v53 = vunpack.i.h.bf16 %v2911_v40 }
 0x3e8   : > { %v1043_v61 = vpop.xlane.xlu1 %1042  ;;  %1137 = vmatpush.msrb.mxu3 %v2083_v57  ;;  %1641 = vmatpush.msrb.mxu0 %v2123_v55  ;;  %v2088_v55 = vunpack.i.l.bf16 %v2915_v44 }
 0x3e9   : > { %v1044_v63 = vsub.f32 %v1039_v34, %v1043_v61  ;;  %v2089_v61 = vunpack.i.h.bf16 %v2915_v44  ;;  %v2118_v44 = vunpack.i.l.bf16 %v2913_v56 }
 0x3ea   : > { %1138 = vmatpush.msrb.mxu3 %v2084_v62  ;;  %1642 = vmatpush.msrb.mxu0 %v2124_v59 }
 0x3eb   : > { %v1045_v2 = vmul.f32 1.442695, %v1044_v63 }
 0x3ec   : > { %1139 = vmatpush.msrb.mxu3 %v2098_v0 }
 0x3ed   : > { %2189 = vpow2.f32 %v1045_v2  ;;  %v2137_v1 = vpop.permute.xlu2 %2136  ;;  %v2103_v2 = vunpack.i.l.bf16 %v2874_v13 }
 0x3ee   : > { %v2138_v5 = vunpack.i.l.bf16 %v2137_v1  ;;  %1140 = vmatpush.msrb.mxu3 %v2099_v3  ;;  %v2139_v9 = vunpack.i.h.bf16 %v2137_v1  ;;  %v2104_v1 = vunpack.i.h.bf16 %v2874_v13 }
 0x3f0   : > { %1141 = vmatpush.msrb.mxu3 %v2113_v6  ;;  %1643 = vmatpush.msrb.mxu0 %v2138_v5 }
 0x3f2   : > { %1142 = vmatpush.msrb.mxu3 %v2114_v10  ;;  %1644 = vmatpush.msrb.mxu0 %v2139_v9 }
 0x3f3   : > { %v2190_v4 = vpop.eup %2189 }
 0x3f4   : > { %1143 = vmatpush.msrb.mxu3 %v2128_v11  ;;  %v2926_v12 = vsel %vm753_vm2, %v2190_v4, 0.0 }
 0x3f5   : > { %1048 = vadd.xlane.f32.xlu2 %v2926_v12  ;;  %v2931_v18 = vpop.permute.xlu2 %2146 }
 0x3f6   : > { %2141 = vrot.lane.b32.xlu0 %v2140_v14, %s2309_s29  ;;  %1144 = vmatpush.msrb.mxu3 %v2129_v15  ;;  %s1702_s29 = scalar_lea.sflag [#allocation9], %s2877_s18 }
 0x3fd   : > { %v2152_v19 = vpop.permute.xlu2 %2151 }
 0x3fe   : > { %v2153_v20 = vunpack.i.l.bf16 %v2152_v19  ;;  %2156 = vrot.lane.b32.xlu0 %v2838_v60, %s2311_s4  ;;  %v2154_v21 = vunpack.i.h.bf16 %v2152_v19 }
 0x400   : > { %1645 = vmatpush.msrb.mxu0 %v2153_v20  ;;  %v2940_v17 = vpop.permute.xlu1 %2131  ;;  %v2148_v20 = vunpack.i.l.bf16 %v2931_v18 }
 0x401   : > { %v2133_v13 = vunpack.i.l.bf16 %v2940_v17  ;;  %v2134_v15 = vunpack.i.h.bf16 %v2940_v17 }
 0x402   : > { %1646 = vmatpush.msrb.mxu0 %v2154_v21 }
 0x405   : > { %v2162_v47 = vpop.permute.xlu2 %2161 }
 0x406   : > { %v2163_v22 = vunpack.i.l.bf16 %v2162_v47  ;;  %2166 = vrot.lane.b32.xlu0 %v2140_v14, %s2311_s4  ;;  %v2164_v16 = vunpack.i.h.bf16 %v2162_v47  ;;  %v2149_v47 = vunpack.i.h.bf16 %v2931_v18 }
 0x408   : > { %1647 = vmatpush.msrb.mxu0 %v2163_v22 }
 0x40a   : > { %1648 = vmatpush.msrb.mxu0 %v2164_v16 }
 0x40d   : > { %2171 = vrot.lane.b32.xlu2 %v2838_v60, %s2310_s25 }
 0x40e   : > { %2176 = vrot.lane.b32.xlu0 %v2140_v14, %s2310_s25  ;;  %v2119_v14 = vunpack.i.h.bf16 %v2913_v56 }
 0x42b   : > { %v1555_v23 = vpop.xlane.xlu1 %1554 }
 0x42c   : > { %2191 = vrcp.f32 %v1555_v23  ;;  %v1567_v27 = vand.u32 2147483648, %v1555_v23  ;;  %v1565_v29 = vand.u32 2147483647, %v1555_v23  ;;  %vm1561_vm8 = vweird.f32 %v1555_v23 }
 0x42e   : > { %v1568_v31 = vor.u32 1.1754944e-38, %v1567_v27  ;;  %vm1566_vm10 = vcmp.eq.f32.partialorder %v1565_v29, 8.507059e+37  ;;  %v1666_v27 = vld [vmem:[%s3047_s6 + $0x10] sm:$0xff]  ;;  %v1664_v29 = vld [vmem:[%s3047_s6] sm:$0xff] }
 0x432   : > { %v2192_v24 = vpop.eup %2191 }
 0x433   : > { %v1557_v25 = vmul.f32 %v2192_v24, %v1555_v23  ;;  %vm1562_vm7 = vweird.f32 %v2192_v24 }
 0x434   : > { %vm1563_vm9 = vmor %vm1561_vm8, %vm1562_vm7 }
 0x435   : > { %v1558_v26 = vsub.f32 1.0, %v1557_v25 }
 0x437   : > { %v1559_v28 = vmul.f32 %v2192_v24, %v1558_v26  ;;  %v1667_v26 = vld [vmem:[%s3047_s6 + $0x18] sm:$0xff] }
 0x439   : > { %v1560_v30 = vadd.f32 %v2192_v24, %v1559_v28  ;;  %v1665_v28 = vld [vmem:[%s3047_s6 + $0x8] sm:$0xff] }
 0x43b   : > { %v1564_v60 = vsel %vm1563_vm9, %v2192_v24, %v1560_v30 }
 0x43c   : > { %v1569_v32 = vsel %vm1566_vm10, %v1568_v31, %v1564_v60 }
 0x43d   : > { %v2943_v33 = vmul.f32 %v1569_v32, %v2908_v37 }
 0x43f   : > { %1981 = vst [vmem:[%s2880_s26 + $0x18] sm:$0xff] %v2943_v33 }
 0x455   : > { %v1302_v34 = vpop.xlane.xlu0 %1301 }
 0x456   : > { %2193 = vrcp.f32 %v1302_v34  ;;  %v1314_v36 = vand.u32 2147483648, %v1302_v34  ;;  %v1312_v39 = vand.u32 2147483647, %v1302_v34  ;;  %vm1308_vm12 = vweird.f32 %v1302_v34 }
 0x458   : > { %v1315_v43 = vor.u32 1.1754944e-38, %v1314_v36  ;;  %vm1313_vm14 = vcmp.eq.f32.partialorder %v1312_v39, 8.507059e+37 }
 0x45c   : > { %v2194_v7 = vpop.eup %2193 }
 0x45d   : > { %v1304_v8 = vmul.f32 %v2194_v7, %v1302_v34  ;;  %vm1309_vm11 = vweird.f32 %v2194_v7 }
 0x45e   : > { %vm1310_vm13 = vmor %vm1308_vm12, %vm1309_vm11 }
 0x45f   : > { %v1305_v35 = vsub.f32 1.0, %v1304_v8 }
 0x461   : > { %v1306_v38 = vmul.f32 %v2194_v7, %v1305_v35 }
 0x463   : > { %v1307_v41 = vadd.f32 %v2194_v7, %v1306_v38 }
 0x465   : > { %v1311_v42 = vsel %vm1310_vm13, %v2194_v7, %v1307_v41 }
 0x466   : > { %v1316_v37 = vsel %vm1313_vm14, %v1315_v43, %v1311_v42 }
 0x467   : > { %v2948_v45 = vmul.f32 %v1316_v37, %v2919_v51 }
 0x468   : > { %v1049_v46 = vpop.xlane.xlu2 %1048  ;;  %v2142_v48 = vpop.permute.xlu0 %2141 }
 0x469   : > { %2195 = vrcp.f32 %v1049_v46  ;;  %v2143_v49 = vunpack.i.l.bf16 %v2142_v48  ;;  %1963 = vst [vmem:[%s2880_s26 + $0x10] sm:$0xff] %v2948_v45  ;;  %v2144_v50 = vunpack.i.h.bf16 %v2142_v48  ;;  %v1061_v63 = vand.u32 2147483648, %v1049_v46 }
 0x46a   : > { %v1059_v40 = vand.u32 2147483647, %v1049_v46  ;;  %vm1055_vm1 = vweird.f32 %v1049_v46 }
 0x46b   : > { %1145 = vmatpush.msrb.mxu3 %v2143_v49  ;;  %v1062_v6 = vor.u32 1.1754944e-38, %v1061_v63 }
 0x46c   : > { %vm1060_vm3 = vcmp.eq.f32.partialorder %v1059_v40, 8.507059e+37 }
 0x46d   : > { %1146 = vmatpush.msrb.mxu3 %v2144_v50 }
 0x46f   : > { %1384 = vmatpush.msra.mxu3 %v2078_v52  ;;  %v2196_v54 = vpop.eup %2195 }
 0x470   : > { %v1051_v57 = vmul.f32 %v2196_v54, %v1049_v46  ;;  %v2172_v51 = vpop.permute.xlu2 %2171  ;;  %v2157_v58 = vpop.permute.xlu0 %2156  ;;  %vm1056_vm15 = vweird.f32 %v2196_v54 }
 0x471   : > { %1385 = vmatpush.msra.mxu3 %v2079_v53  ;;  %v2173_v59 = vunpack.i.l.bf16 %v2172_v51  ;;  %v2174_v0 = vunpack.i.h.bf16 %v2172_v51  ;;  %vm1057_vm2 = vmor %vm1055_vm1, %vm1056_vm15  ;;  %v2159_v56 = vunpack.i.h.bf16 %v2157_v58 }
 0x472   : > { %v1052_v62 = vsub.f32 1.0, %v1051_v57 }
 0x473   : > { %1386 = vmatpush.msra.mxu3 %v2088_v55  ;;  %1649 = vmatpush.msrb.mxu0 %v2173_v59 }
 0x474   : > { %v1053_v3 = vmul.f32 %v2196_v54, %v1052_v62 }
 0x475   : > { %1387 = vmatpush.msra.mxu3 %v2089_v61  ;;  %1650 = vmatpush.msrb.mxu0 %v2174_v0 }
 0x476   : > { %v1054_v5 = vadd.f32 %v2196_v54, %v1053_v3 }
 0x477   : > { %1388 = vmatpush.msra.mxu3 %v2103_v2 }
 0x478   : > { %v2167_v9 = vpop.permute.xlu0 %2166  ;;  %v1058_v10 = vsel %vm1057_vm2, %v2196_v54, %v1054_v5 }
 0x479   : > { %1389 = vmatpush.msra.mxu3 %v2104_v1  ;;  %v1063_v11 = vsel %vm1060_vm3, %v1062_v6, %v1058_v10  ;;  %v2168_v16 = vunpack.i.l.bf16 %v2167_v9  ;;  %v2169_v17 = vunpack.i.h.bf16 %v2167_v9 }
 0x47a   : > { %v1064_v4 = vmul.f32 %v1063_v11, %v2926_v12  ;;  %v2158_v12 = vunpack.i.l.bf16 %v2157_v58 }
 0x47b   : > { %1390 = vmatpush.msra.mxu3 %v2118_v44 }
 0x47c   : > { %1945 = vst [vmem:[%s2880_s26 + $0x8] sm:$0xff] %v1064_v4  ;;  %1147 = vmatmul.f32.vlgmr.msrb.gmra.mxu3 %v1064_v4 }
 0x47d   : > { %1391 = vmatpush.msra.mxu3 %v2119_v14 }
 0x47f   : > { %1392 = vmatpush.msra.mxu3 %v2133_v13 }
 0x480   : > { %v2177_v19 = vpop.permute.xlu0 %2176 }
 0x481   : > { %v2178_v21 = vunpack.i.l.bf16 %v2177_v19  ;;  %1393 = vmatpush.msra.mxu3 %v2134_v15  ;;  %v2179_v22 = vunpack.i.h.bf16 %v2177_v19 }
 0x483   : > { %1394 = vmatpush.msra.mxu3 %v2148_v20  ;;  %1651 = vmatpush.msrb.mxu0 %v2178_v21 }
 0x485   : > { %1395 = vmatpush.msra.mxu3 %v2149_v47  ;;  %1652 = vmatpush.msrb.mxu0 %v2179_v22 }
 0x486   : > { %1653 = vmatmul.f32.vlgmr.msrb.gmra.mxu0 %v2943_v33 }
 0x487   : > { %1396 = vmatpush.msra.mxu3 %v2158_v12 }
 0x489   : > { %1397 = vmatpush.msra.mxu3 %v2159_v56 }
 0x48b   : > { %1398 = vmatpush.msra.mxu3 %v2168_v16 }
 0x48d   : > { %1399 = vmatpush.msra.mxu3 %v2169_v17 }
 0x48e   : > { %1400 = vmatmul.f32.vlgmr.msra.gmra.mxu3 %v2948_v45 }
 0x48f   : > { %1687 = vmatpush.msrb.mxu3 %v1667_v26 }
 0x491   : > { %1688 = vmatpush.msrb.mxu3 %v1666_v27 }
 0x493   : > { %1689 = vmatpush.msrb.mxu3 %v1665_v28 }
 0x495   : > { %1690 = vmatpush.msrb.mxu3 %v1664_v29 }
 0x4ff   : > { %v1148_v23 = vpop.f32.mrf.mxu3 }
 0x500   : > { %1152 = vrot.lane.b32.xlu2 %v1148_v23, %s3051_s27 }
 0x503   : > { %v1654_v18 = vpop.f32.mrf.mxu0 }
 0x504   : > { %1658 = vrot.lane.b32.xlu0 %v1654_v18, %s2313_s28  ;;  %s1730_s28 = sshll.u32 %s2880_s26, 4  ;;  %s2217_s26 = scalar_lea.hbm %s3050_s9, 64  ;;  %s1731_s28 = int_to_ptr.vmem [resolvable:$true] %s1730_s28 }
 0x511   : > { %v1401_v24 = vpop.f32.mrf.mxu3 }
 0x512   : > { %1405 = vrot.lane.b32.xlu1 %v1401_v24, %s2314_s15  ;;  %s1992_s15 = sshll.u32 %s2299_s12, 5 }
 0x513   : > { %s1729_s23 = scalar_lea.hbm %s3050_s9, %s1992_s15 }
 0x514   : > { %s1732_s1 = sshll.u32 %s1729_s23, 4  ;;  %s1733_s1 = int_to_ptr.hbm [resolvable:$true] %s1732_s1 }
 0x515   : > { %s2211_s25 = sshra.s32 %s1733_s1, 4  ;;  %s2212_s25 = int_to_ptr.hbm [resolvable:$true] %s2211_s25 }
 0x516   : > { %s2213_s4 = scalar_lea.hbm %s2212_s25, 32  ;;  %p2218_p1 = scmp.lt.s32.totalorder %s2212_s25, %s3050_s9 }
 0x517   : > { %p2214_p12 = scmp.ne.s32.totalorder %s2212_s25, %s2213_s4  ;;  %p2219_p2 = scmp.lt.s32.totalorder %s2217_s26, %s2213_s4 }
 0x519   : > { %p2215_p13 = pnand %p2214_p12, %p2406_p4  ;;  %p2220_p3 = por %p2219_p2, %p2218_p1 }
 0x51b   : > { %p2216_p0 = pneg %p2215_p13 }
 0x51d   : > { %p2221_p5 = pnand %p2220_p3, %p2216_p0 }
 0x55a   : > { %v1153_v25 = vpop.permute.xlu2 %1152 }
 0x55b   : > { %1156 = vst.msk [vmem:[#allocation5] sm:$0xff] %vm1155_vm4, %v1153_v25 }
 0x576   : > { %v1659_v31 = vpop.permute.xlu0 %1658 }
 0x584   : > { %v1406_v30 = vpop.permute.xlu1 %1405 }
 0x585   : > { %1409 = vst.msk [vmem:[#allocation5] sm:$0xff] %vm1408_vm5, %v1406_v30 }
 0x586   : > { %1662 = vst.msk [vmem:[#allocation5] sm:$0xff] %vm1661_vm6, %v1659_v31 }
 0x58d   : > { %v1663_v60 = vld [vmem:[#allocation5] sm:$0xff] }
 0x58e   : > { %1982 = vmatmul.msk.f32.vlgmr.msrb.gmra.mxu3 %vm411_vm0, %v1663_v60 }
 0x58f   : > { %2224 = shalt.err (!%p2221_p5)
}
 0x590   : > { %s2315_s15 = smov 128   ;;  %s3064_s16 = smov 8   ;;  %v2180_v32 = vld [vmem:[%s3048_s7] ss:$0 sm:$0xff] }
 0x591   : > { %1994 = dma.vmem_to_hbm [thread:$0]  (%p2406_p4), %s1731_s28, 512, %s1733_s1, %s1702_s29, %s2315_s15, %s2315_s15, %s3064_s16  }
 0x592   : > { %s1871_s20 = sshll.u32 %s2877_s18, 3  ;;  %s1985_s23 = sshll.u32 %s2299_s12, 3 }
 0x593   : > { %s1713_s0 = scalar_lea.hbm %s3049_s8, %s1985_s23  ;;  %s381_s4 = scalar_lea.vmem [#allocation6], %s1871_s20 }
 0x594   : > { %s1715_s26 = sshll.u32 %s381_s4, 4  ;;  %s1717_s3 = sshll.u32 %s1713_s0, 4  ;;  %s1716_s26 = int_to_ptr.vmem [resolvable:$true] %s1715_s26  ;;  %s1718_s3 = int_to_ptr.hbm [resolvable:$true] %s1717_s3 }
 0x595   : > { %s1697_s28 = scalar_lea.sflag [#allocation7], %s2877_s18  ;;  %s2239_s12 = sshra.s32 %s1718_s3, 4  ;;  %s2240_s12 = int_to_ptr.hbm [resolvable:$true] %s2239_s12 }
 0x596   : > { %s2241_s1 = scalar_lea.hbm %s2240_s12, 8  ;;  %s2245_s16 = scalar_lea.hbm %s3049_s8, 16 }
 0x597   : > { %p2242_p6 = scmp.ne.s32.totalorder %s2240_s12, %s2241_s1  ;;  %p2246_p10 = scmp.lt.s32.totalorder %s2240_s12, %s3049_s8 }
 0x598   : > { %p2247_p11 = scmp.lt.s32.totalorder %s2245_s16, %s2241_s1 }
 0x599   : > { %p2243_p7 = pnand %p2242_p6, %p2406_p4 }
 0x59a   : > { %p2248_p12 = por %p2247_p11, %p2246_p10 }
 0x59b   : > { %p2244_p9 = pneg %p2243_p7 }
 0x59d   : > { %p2249_p13 = pnand %p2248_p12, %p2244_p9 }
 0x611   : > { %v1692_v33 = vpop.f32.mrf.mxu3 }
 0x612   : > { %v1693_v34 = vadd.f32 %v2180_v32, %v1692_v33 }
 0x614   : > { %1695 = vst.msk [vmem:[%s381_s4] sm:$0xff] %vm411_vm0, %v1693_v34 }
 0x615   : > { %2252 = shalt.err (!%p2249_p13)
}
 0x616   : > { %1993 = dma.vmem_to_hbm [thread:$0]  (%p2406_p4), %s1716_s26, 128, %s1718_s3, %s1697_s28  }
 0x617 PF: > { %p2004_p0 = scmp.ge.s32.totalorder %s2307_s14, 2  ;;  %s1747_s18 = sand.u32 1, %s2287_s30  }
 0x618   : > { %s1748_s27 = scalar_lea.sflag [#allocation7], %s1747_s18 }
 0x619   : > { %p1998_p1 = pnand %p2004_p0, %p2413_p8 }
 0x61b   : > { %p1999_p2 = pneg %p1998_p1 }
 0x61d   : > { %2278 = dma.done.wait (%p1999_p2), %s1748_s27, 128  }
 0x61e   : > { %2280 = vsyncadd (%p1999_p2), %s1748_s27, 4294967168  ;;  %s1758_s24 = scalar_lea.sflag [#allocation9], %s1747_s18 }
 0x61f   : > { %2282 = dma.done.wait (%p1999_p2), %s1758_s24, 512  }
 0x620   : > { %2284 = vsyncadd (%p1999_p2), %s1758_s24, 4294966784  ;;  %s26_s14 = sadd.s32 1, %s2307_s14   ;;  %s3065_s30 = smov %s2291_s10 }
 0x621   : > { %p23_p3 = scmp.ge.s32.totalorder %s26_s14, 4   ;;  %s3066_s10 = smov %s2295_s11 }
 0x622   : > { %s3067_s11 = smov %s2419_s22  ;;  %s3068_s12 = smov %s2303_s13 }
 0x623   : > { %s3069_s13 = smov %s3071_s17  ;;  %25 = sbr.rel (!%p23_p3) target bundleno = 12 (0xc), region = 113 }
 0x628   :  { %1764 = vsyncpa [#allocation7], 1 }
 0x629   :  { %1766 = vsyncpa [#allocation7 + $0x1], 1 }
 0x62a   :  { %1767 = vsyncpa [#allocation9], 1 }
 0x62b   :  { %1769 = vsyncpa [#allocation9 + $0x1], 1 }

// kernel: tpu_custom_call.1
= control target key start
LH: loop header
LB: loop body
LE: loop exit
PB: predicated region body
PF: predicated region fallthrough
CT: control target
= control target key end

     0   :  { %s3041_s0 = inlined_call_operand.vmem [shape: f32[2,8,32], index: 0, kind: input, shape index: {}]   ;;  %s3042_s1 = inlined_call_operand.vmem [shape: f32[2,128,32], index: 1, kind: input, shape index: {}]   ;;  %s3043_s2 = inlined_call_operand.vmem [shape: f32[2,128,32], index: 2, kind: input, shape index: {}]   ;;  %s3044_s3 = inlined_call_operand.vmem [shape: f32[32,32], index: 3, kind: input, shape index: {}]   ;;  %s3045_s4 = inlined_call_operand.vmem [shape: f32[32,32], index: 4, kind: input, shape index: {}]   ;;  %s3046_s5 = inlined_call_operand.vmem [shape: f32[32,32], index: 5, kind: input, shape index: {}]   ;;  %s3047_s6 = inlined_call_operand.vmem [shape: f32[32,32], index: 6, kind: input, shape index: {}]   ;;  %s3048_s7 = inlined_call_operand.vmem [shape: f32[1,32], index: 7, kind: input, shape index: {}]   ;;  %s3049_s8 = inlined_call_operand.hbm [shape: f32[2,8,32], index: 8, kind: output, shape index: {0}]   ;;  %s3050_s9 = inlined_call_operand.hbm [shape: f32[2,4,8,128], index: 9, kind: output, shape index: {1}]  }
   0x1   :  { %3052 = sst [smem:[#allocation12_spill]] %s3041_s0 }
   0x2   :  { %3053 = sst [smem:[#allocation13_spill]] %s3042_s1 }
   0x3   :  { %3054 = sst [smem:[#allocation14_spill]] %s3043_s2 }
   0x4   :  { %3055 = sst [smem:[#allocation15_spill]] %s3044_s3 }
   0x5   :  { %3056 = sst [smem:[#allocation16_spill]] %s3045_s4 }
   0x6   :  { %15 = vsyncpa [#allocation7], 0 }
   0x7   :  { %17 = vsyncpa [#allocation7 + $0x1], 0 }
   0x8   :  { %18 = vsyncpa [#allocation9], 0 }
   0x9   :  { %20 = vsyncpa [#allocation9 + $0x1], 0  ;;  %s2366_s30 = smov 0   ;;  %s2368_s10 = smov 0  }
   0xa   :  { %s2370_s11 = smov 0   ;;  %s2372_s12 = smov 0  }
   0xb   :  { %s2374_s13 = smov 0   ;;  %s2376_s14 = smov 0  }
   0xc LB: > { %s1866_s15 = sadd.s32 4294967295, %s2307_s14   ;;  %s1867_s16 = sadd.s32 4294967294, %s2307_s14   ;;  %s2307_s14 = sphi %s2376_s14, %s26_s14   ;;  %s2303_s13 = sphi %s2374_s13, %s3069_s13   ;;  %s2299_s12 = sphi %s2372_s12, %s3068_s12   ;;  %s2295_s11 = sphi %s2370_s11, %s3067_s11   ;;  %s2291_s10 = sphi %s2368_s10, %s3066_s10   ;;  %s2287_s30 = sphi %s2366_s30, %s3065_s30  }
   0xd   : > { %s38_s17 = sadd.s32 1, %s2303_s13  ;;  %s232_s18 = sadd.s32 1, %s2295_s11 }
   0xe   : > { %p40_p0 = scmp.ge.s32.totalorder %s38_s17, 2  ;;  %p242_p1 = scmp.ne.s32.totalorder %s2295_s11, %s2291_s10 }
   0xf   : > { %p243_p2 = scmp.eq.s32.totalorder %s1866_s15, 1  ;;  %p248_p3 = scmp.ne.s32.totalorder %s2291_s10, %s2287_s30 }
  0x10   : > { %s3071_s17 = smov (%p40_p0, %s38_s17), 0  ;;  %p249_p5 = scmp.eq.s32.totalorder %s1867_s16, 1 }
  0x11   : > { %p2406_p4 = por %p243_p2, %p242_p1  ;;  %s227_s20 = ssub.s32 %s2303_s13, %s3071_s17 }
  0x12   : > { %p1870_p6 = scmp.ge.s32.totalorder %s2307_s14, 1  ;;  %p230_p7 = scmp.eq.s32.totalorder %s227_s20, 0 }
  0x13   : > { %p2413_p8 = por %p249_p5, %p248_p3  ;;  %p336_p9 = scmp.lt.s32.totalorder %s2307_s14, 3 }
  0x14   : > { %s2419_s22 = scalar_select %p230_p7, %s2295_s11, %s232_s18  }
  0x15   : > { %p337_p10 = pnand %p1870_p6, %p336_p9 }
  0x16   : > { %s3059_s4 = sld [smem:[#allocation16_spill]] (!%p337_p10)  ;;  %p389_p11 = scmp.lt.s32.totalorder (!%p337_p10), %s2299_s12, 1 }
  0x17   : > { %340 = sbr.rel (%p337_p10) target bundleno = 1559 (0x617), region = 52  ;;  %s3060_s1 = sld [smem:[#allocation13_spill]] (!%p337_p10) }
  0x18   : > { %s3061_s2 = sld [smem:[#allocation14_spill]] (!%p337_p10)  ;;  %s3051_s27 = smov (!%p337_p10), 8  }
  0x19   : > { %s3062_s3 = sld [smem:[#allocation15_spill]] (!%p337_p10)  ;;  %s2313_s28 = smov (!%p337_p10), 24  }
  0x1a   : > { %s3063_s0 = sld [smem:[#allocation12_spill]] (!%p337_p10)  ;;  %s2314_s15 = smov (!%p337_p10), 16  }
  0x1c   : > { %v455_v0 = vld [vmem:[%s3059_s4 + $0x18] sm:$0xff]  ;;  %v454_v1 = vld [vmem:[%s3059_s4 + $0x10] sm:$0xff]  ;;  %v453_v2 = vld [vmem:[%s3059_s4 + $0x8] sm:$0xff]  ;;  %s2432_s29 = scalar_select %p389_p11, %s2299_s12, 1  ;;  %vm411_vm0 = vcmask 261120   ;;  %vm787_vm1 = vcmask 64512  }
  0x1d   : > { %516 = vmatpush.msra.mxu1 %v455_v0  ;;  %v452_v3 = vld [vmem:[%s3059_s4] sm:$0xff]  ;;  %v604_v10 = vld [vmem:[%s3046_s5 + $0x18] sm:$0xff]  ;;  %v603_v11 = vld [vmem:[%s3046_s5 + $0x10] sm:$0xff]  ;;  %s2311_s4 = smov 112  }
  0x1e   : > { %s1990_s18 = sshll.u32 %s2432_s29, 7  ;;  %665 = vmatpush.msra.mxu2 %v604_v10  ;;  %v602_v12 = vld [vmem:[%s3046_s5 + $0x8] sm:$0xff]  ;;  %v601_v13 = vld [vmem:[%s3046_s5] sm:$0xff]  ;;  %s1873_s26 = sshll.u32 %s2432_s29, 3 }
  0x1f   : > { %517 = vmatpush.msra.mxu1 %v454_v1  ;;  %s2441_s24 = scalar_lea.vmem %s3060_s1, %s1990_s18  ;;  %s2470_s25 = scalar_lea.vmem %s3061_s2, %s1990_s18  ;;  %v410_v42 = vld [vmem:[%s3062_s3 + $0x18] sm:$0xff]  ;;  %v409_v44 = vld [vmem:[%s3062_s3 + $0x10] sm:$0xff]  ;;  %v408_v45 = vld [vmem:[%s3062_s3 + $0x8] sm:$0xff] }
  0x20   : > { %v436_v4 = vld [vmem:[%s2441_s24] sm:$0xff]  ;;  %v437_v5 = vld [vmem:[%s2441_s24 + $0x8] sm:$0xff]  ;;  %v438_v6 = vld [vmem:[%s2441_s24 + $0x10] sm:$0xff]  ;;  %666 = vmatpush.msra.mxu2 %v603_v11  ;;  %427 = vmatpush.msra.mxu0 %v410_v42  ;;  %s395_s20 = scalar_lea.vmem %s3063_s0, %s1873_s26  ;;  %s2309_s29 = smov 120  }
  0x21   : > { %518 = vmatpush.msra.mxu1 %v453_v2  ;;  %v439_v7 = vld [vmem:[%s2441_s24 + $0x18] sm:$0xff]  ;;  %v440_v8 = vld [vmem:[%s2441_s24 + $0x20] sm:$0xff]  ;;  %v441_v9 = vld [vmem:[%s2441_s24 + $0x28] sm:$0xff]  ;;  %s2877_s18 = sand.u32 1, %s2291_s10  }
  0x22   : > { %v442_v14 = vld [vmem:[%s2441_s24 + $0x30] sm:$0xff]  ;;  %667 = vmatpush.msra.mxu2 %v602_v12  ;;  %v585_v15 = vld [vmem:[%s2470_s25] sm:$0xff]  ;;  %v443_v16 = vld [vmem:[%s2441_s24 + $0x38] sm:$0xff]  ;;  %428 = vmatpush.msra.mxu0 %v409_v44 }
  0x23   : > { %519 = vmatpush.msra.mxu1 %v452_v3  ;;  %v586_v17 = vld [vmem:[%s2470_s25 + $0x8] sm:$0xff]  ;;  %v444_v18 = vld [vmem:[%s2441_s24 + $0x40] sm:$0xff]  ;;  %v587_v19 = vld [vmem:[%s2470_s25 + $0x10] sm:$0xff] }
  0x24   : > { %1879 = vmatmul.msk.f32.vlgmr.msra.gmra.mxu1 %vm411_vm0, %v436_v4  ;;  %668 = vmatpush.msra.mxu2 %v601_v13  ;;  %v445_v20 = vld [vmem:[%s2441_s24 + $0x48] sm:$0xff]  ;;  %v588_v21 = vld [vmem:[%s2470_s25 + $0x18] sm:$0xff]  ;;  %v446_v22 = vld [vmem:[%s2441_s24 + $0x50] sm:$0xff] }
  0x25   : > { %1895 = vmatmul.msk.f32.vlgmr.msra.gmra.mxu2 %vm411_vm0, %v585_v15  ;;  %v589_v23 = vld [vmem:[%s2470_s25 + $0x20] sm:$0xff]  ;;  %v447_v24 = vld [vmem:[%s2441_s24 + $0x58] sm:$0xff]  ;;  %v590_v25 = vld [vmem:[%s2470_s25 + $0x28] sm:$0xff]  ;;  %429 = vmatpush.msra.mxu0 %v408_v45 }
  0x26   : > { %v448_v26 = vld [vmem:[%s2441_s24 + $0x60] sm:$0xff]  ;;  %v591_v27 = vld [vmem:[%s2470_s25 + $0x30] sm:$0xff]  ;;  %v449_v28 = vld [vmem:[%s2441_s24 + $0x68] sm:$0xff] }
  0x27   : > { %v592_v29 = vld [vmem:[%s2470_s25 + $0x38] sm:$0xff]  ;;  %v450_v30 = vld [vmem:[%s2441_s24 + $0x70] sm:$0xff]  ;;  %v593_v31 = vld [vmem:[%s2470_s25 + $0x40] sm:$0xff] }
  0x28   : > { %v451_v32 = vld [vmem:[%s2441_s24 + $0x78] sm:$0xff]  ;;  %v594_v33 = vld [vmem:[%s2470_s25 + $0x48] sm:$0xff]  ;;  %v595_v36 = vld [vmem:[%s2470_s25 + $0x50] sm:$0xff]  ;;  %s1872_s24 = sshll.u32 %s2877_s18, 5 }
  0x29   : > { %v596_v39 = vld [vmem:[%s2470_s25 + $0x58] sm:$0xff]  ;;  %v597_v43 = vld [vmem:[%s2470_s25 + $0x60] sm:$0xff]  ;;  %v598_v50 = vld [vmem:[%s2470_s25 + $0x68] sm:$0xff]  ;;  %s2880_s26 = scalar_lea.vmem [#allocation8], %s1872_s24 }
  0x2a   : > { %v407_v47 = vld [vmem:[%s3062_s3] sm:$0xff]  ;;  %v599_v53 = vld [vmem:[%s2470_s25 + $0x70] sm:$0xff]  ;;  %v600_v57 = vld [vmem:[%s2470_s25 + $0x78] sm:$0xff]  ;;  %s2310_s25 = smov 104  }
  0x2b   : > { %430 = vmatpush.msra.mxu0 %v407_v47  ;;  %v406_v49 = vld [vmem:[%s395_s20] sm:$0xff] }
  0x2c   : > { %1880 = vmatmul.msk.f32.gmra.mxu1 %vm411_vm0, %v437_v5  ;;  %1878 = vmatmul.msk.f32.vlgmr.msra.gmra.mxu0 %vm411_vm0, %v406_v49 }
  0x2d   : > { %1896 = vmatmul.msk.f32.gmra.mxu2 %vm411_vm0, %v586_v17 }
  0x34   : > { %1881 = vmatmul.msk.f32.gmra.mxu1 %vm411_vm0, %v438_v6 }
  0x35   : > { %1897 = vmatmul.msk.f32.gmra.mxu2 %vm411_vm0, %v587_v19 }
  0x3c   : > { %1882 = vmatmul.msk.f32.gmra.mxu1 %vm411_vm0, %v439_v7 }
  0x3d   : > { %1898 = vmatmul.msk.f32.gmra.mxu2 %vm411_vm0, %v588_v21 }
  0x44   : > { %1883 = vmatmul.msk.f32.gmra.mxu1 %vm411_vm0, %v440_v8 }
  0x45   : > { %1899 = vmatmul.msk.f32.gmra.mxu2 %vm411_vm0, %v589_v23 }
  0x4c   : > { %1884 = vmatmul.msk.f32.gmra.mxu1 %vm411_vm0, %v441_v9 }
  0x4d   : > { %1900 = vmatmul.msk.f32.gmra.mxu2 %vm411_vm0, %v590_v25 }
  0x54   : > { %1885 = vmatmul.msk.f32.gmra.mxu1 %vm411_vm0, %v442_v14 }
  0x55   : > { %1901 = vmatmul.msk.f32.gmra.mxu2 %vm411_vm0, %v591_v27 }
  0x5c   : > { %1886 = vmatmul.msk.f32.gmra.mxu1 %vm411_vm0, %v443_v16 }
  0x5d   : > { %1902 = vmatmul.msk.f32.gmra.mxu2 %vm411_vm0, %v592_v29 }
  0x64   : > { %1887 = vmatmul.msk.f32.gmra.mxu1 %vm411_vm0, %v444_v18 }
  0x65   : > { %1903 = vmatmul.msk.f32.gmra.mxu2 %vm411_vm0, %v593_v31 }
  0x6c   : > { %1888 = vmatmul.msk.f32.gmra.mxu1 %vm411_vm0, %v445_v20 }
  0x6d   : > { %1904 = vmatmul.msk.f32.gmra.mxu2 %vm411_vm0, %v594_v33 }
  0x74   : > { %1889 = vmatmul.msk.f32.gmra.mxu1 %vm411_vm0, %v446_v22 }
  0x75   : > { %1905 = vmatmul.msk.f32.gmra.mxu2 %vm411_vm0, %v595_v36 }
  0x7c   : > { %1890 = vmatmul.msk.f32.gmra.mxu1 %vm411_vm0, %v447_v24 }
  0x7d   : > { %1906 = vmatmul.msk.f32.gmra.mxu2 %vm411_vm0, %v596_v39 }
  0x84   : > { %1891 = vmatmul.msk.f32.gmra.mxu1 %vm411_vm0, %v448_v26 }
  0x85   : > { %1907 = vmatmul.msk.f32.gmra.mxu2 %vm411_vm0, %v597_v43 }
  0x8c   : > { %1892 = vmatmul.msk.f32.gmra.mxu1 %vm411_vm0, %v449_v28 }
  0x8d   : > { %1908 = vmatmul.msk.f32.gmra.mxu2 %vm411_vm0, %v598_v50 }
  0x94   : > { %1893 = vmatmul.msk.f32.gmra.mxu1 %vm411_vm0, %v450_v30 }
  0x95   : > { %1909 = vmatmul.msk.f32.gmra.mxu2 %vm411_vm0, %v599_v53 }
  0x9c   : > { %1894 = vmatmul.msk.f32.gmra.mxu1 %vm411_vm0, %v451_v32 }
  0x9d   : > { %1910 = vmatmul.msk.f32.gmra.mxu2 %vm411_vm0, %v600_v57 }
  0xa1   : > { %v521_v34 = vpop.f32.mrf.mxu1 }
  0xa2   : > { %v569_v35 = vmul.f32 0.59460354, %v521_v34 }
  0xa4   : > { %719 = vst.msk [vmem:[#allocation3] sm:$0xff] %vm411_vm0, %v569_v35 }
  0xa8   : > { %v670_v61 = vpop.f32.mrf.mxu2 }
  0xa9   : > { %v524_v37 = vpop.f32.mrf.mxu1  ;;  %735 = vst.msk [vmem:[#allocation4] sm:$0xff] %vm411_vm0, %v670_v61 }
  0xaa   : > { %v570_v38 = vmul.f32 0.59460354, %v524_v37 }
  0xac   : > { %720 = vst.msk [vmem:[#allocation3 + $0x8] sm:$0xff] %vm411_vm0, %v570_v38  ;;  %v432_v38 = vpop.f32.mrf.mxu0 }
  0xad   : > { %v435_v39 = vmul.f32 0.59460354, %v432_v38 }
  0xaf   : > { %718 = vst.msk [vmem:[#allocation2] sm:$0xff] %vm411_vm0, %v435_v39 }
  0xb0   : > { %v673_v1 = vpop.f32.mrf.mxu2 }
  0xb1   : > { %v527_v40 = vpop.f32.mrf.mxu1  ;;  %736 = vst.msk [vmem:[#allocation4 + $0x8] sm:$0xff] %vm411_vm0, %v673_v1 }
  0xb2   : > { %v571_v41 = vmul.f32 0.59460354, %v527_v40 }
  0xb4   : > { %721 = vst.msk [vmem:[#allocation3 + $0x10] sm:$0xff] %vm411_vm0, %v571_v41 }
  0xb6   : > { %v2707_v1 = vld [vmem:[#allocation2] sm:$0xff] }
  0xb8   : > { %v676_v5 = vpop.f32.mrf.mxu2 }
  0xb9   : > { %v530_v46 = vpop.f32.mrf.mxu1  ;;  %737 = vst.msk [vmem:[#allocation4 + $0x10] sm:$0xff] %vm411_vm0, %v676_v5 }
  0xba   : > { %v572_v48 = vmul.f32 0.59460354, %v530_v46  ;;  %v2655_v46 = vld [vmem:[#allocation3 + $0x8] sm:$0xff] }
  0xbb   : > { %v1413_v42 = vld [vmem:[#allocation3 + $0x10] sm:$0xff] }
  0xbc   : > { %722 = vst.msk [vmem:[#allocation3 + $0x18] sm:$0xff] %vm411_vm0, %v572_v48 }
  0xc0   : > { %v679_v9 = vpop.f32.mrf.mxu2 }
  0xc1   : > { %v533_v51 = vpop.f32.mrf.mxu1  ;;  %738 = vst.msk [vmem:[#allocation4 + $0x18] sm:$0xff] %vm411_vm0, %v679_v9 }
  0xc2   : > { %v573_v52 = vmul.f32 0.59460354, %v533_v51 }
  0xc3   : > { %v1414_v40 = vld [vmem:[#allocation3 + $0x18] sm:$0xff] }
  0xc4   : > { %723 = vst.msk [vmem:[#allocation3 + $0x20] sm:$0xff] %vm411_vm0, %v573_v52 }
  0xc8   : > { %v682_v13 = vpop.f32.mrf.mxu2 }
  0xc9   : > { %v536_v54 = vpop.f32.mrf.mxu1  ;;  %739 = vst.msk [vmem:[#allocation4 + $0x20] sm:$0xff] %vm411_vm0, %v682_v13 }
  0xca   : > { %v574_v55 = vmul.f32 0.59460354, %v536_v54 }
  0xcb   : > { %v2544_v56 = vld [vmem:[#allocation3 + $0x20] sm:$0xff] }
  0xcc   : > { %724 = vst.msk [vmem:[#allocation3 + $0x28] sm:$0xff] %vm411_vm0, %v574_v55  ;;  %964 = vrot.lane.b32.xlu0 %v2544_v56, %s2309_s29 }
  0xd0   : > { %v685_v17 = vpop.f32.mrf.mxu2 }
  0xd1   : > { %v539_v58 = vpop.f32.mrf.mxu1  ;;  %740 = vst.msk [vmem:[#allocation4 + $0x28] sm:$0xff] %vm411_vm0, %v685_v17  ;;  %v2746_v17 = vld [vmem:[#allocation4] sm:$0xff] }
  0xd2   : > { %v575_v59 = vmul.f32 0.59460354, %v539_v58 }
  0xd3   : > { %v2551_v60 = vld [vmem:[#allocation3 + $0x28] sm:$0xff] }
  0xd4   : > { %725 = vst.msk [vmem:[#allocation3 + $0x30] sm:$0xff] %vm411_vm0, %v575_v59  ;;  %966 = vrot.lane.b32.xlu1 %v2551_v60, %s2309_s29 }
  0xd8   : > { %v688_v21 = vpop.f32.mrf.mxu2  ;;  %v2730_v9 = vld [vmem:[#allocation4 + $0x28] sm:$0xff] }
  0xd9   : > { %v542_v62 = vpop.f32.mrf.mxu1  ;;  %741 = vst.msk [vmem:[#allocation4 + $0x30] sm:$0xff] %vm411_vm0, %v688_v21 }
  0xda   : > { %v576_v63 = vmul.f32 0.59460354, %v542_v62 }
  0xdb   : > { %v2557_v0 = vld [vmem:[#allocation3 + $0x30] sm:$0xff] }
  0xdc   : > { %726 = vst.msk [vmem:[#allocation3 + $0x38] sm:$0xff] %vm411_vm0, %v576_v63  ;;  %968 = vrot.lane.b32.xlu0 %v2557_v0, %s2309_s29  ;;  %v2701_v63 = vld [vmem:[#allocation3] sm:$0xff] }
  0xe0   : > { %v691_v25 = vpop.f32.mrf.mxu2 }
  0xe1   : > { %v545_v2 = vpop.f32.mrf.mxu1  ;;  %742 = vst.msk [vmem:[#allocation4 + $0x38] sm:$0xff] %vm411_vm0, %v691_v25 }
  0xe2   : > { %v577_v3 = vmul.f32 0.59460354, %v545_v2 }
  0xe3   : > { %v2563_v4 = vld [vmem:[#allocation3 + $0x38] sm:$0xff] }
  0xe4   : > { %727 = vst.msk [vmem:[#allocation3 + $0x40] sm:$0xff] %vm411_vm0, %v577_v3  ;;  %1476 = vrot.lane.b32.xlu1 %v2563_v4, %s2310_s25  ;;  %1223 = vrot.lane.b32.xlu0 %v2563_v4, %s2311_s4 }
  0xe5   : > { %970 = vrot.lane.b32.xlu2 %v2563_v4, %s2309_s29 }
  0xe8   : > { %v694_v29 = vpop.f32.mrf.mxu2 }
  0xe9   : > { %v548_v6 = vpop.f32.mrf.mxu1  ;;  %743 = vst.msk [vmem:[#allocation4 + $0x40] sm:$0xff] %vm411_vm0, %v694_v29 }
  0xea   : > { %v578_v7 = vmul.f32 0.59460354, %v548_v6 }
  0xeb   : > { %v2573_v8 = vld [vmem:[#allocation3 + $0x40] sm:$0xff] }
  0xec   : > { %728 = vst.msk [vmem:[#allocation3 + $0x48] sm:$0xff] %vm411_vm0, %v578_v7  ;;  %1478 = vrot.lane.b32.xlu0 %v2573_v8, %s2310_s25  ;;  %1225 = vrot.lane.b32.xlu1 %v2573_v8, %s2311_s4  ;;  %v2722_v7 = vld [vmem:[#allocation4 + $0x38] sm:$0xff] }
  0xed   : > { %972 = vrot.lane.b32.xlu2 %v2573_v8, %s2309_s29 }
  0xf0   : > { %v697_v33 = vpop.f32.mrf.mxu2  ;;  %v2716_v3 = vld [vmem:[#allocation4 + $0x40] sm:$0xff] }
  0xf1   : > { %v551_v10 = vpop.f32.mrf.mxu1  ;;  %744 = vst.msk [vmem:[#allocation4 + $0x48] sm:$0xff] %vm411_vm0, %v697_v33 }
  0xf2   : > { %v579_v11 = vmul.f32 0.59460354, %v551_v10  ;;  %v2732_v10 = vld [vmem:[#allocation4 + $0x20] sm:$0xff] }
  0xf3   : > { %v2583_v12 = vld [vmem:[#allocation3 + $0x48] sm:$0xff] }
  0xf4   : > { %729 = vst.msk [vmem:[#allocation3 + $0x50] sm:$0xff] %vm411_vm0, %v579_v11  ;;  %1480 = vrot.lane.b32.xlu1 %v2583_v12, %s2310_s25  ;;  %1227 = vrot.lane.b32.xlu0 %v2583_v12, %s2311_s4 }
  0xf5   : > { %974 = vrot.lane.b32.xlu2 %v2583_v12, %s2309_s29 }
  0xf8   : > { %v700_v35 = vpop.f32.mrf.mxu2  ;;  %v2710_v2 = vld [vmem:[#allocation4 + $0x48] sm:$0xff] }
  0xf9   : > { %v554_v14 = vpop.f32.mrf.mxu1  ;;  %745 = vst.msk [vmem:[#allocation4 + $0x50] sm:$0xff] %vm411_vm0, %v700_v35  ;;  %v2804_v38 = vpack.i.bf16 %v2716_v3, %v2710_v2 }
  0xfa   : > { %v580_v15 = vmul.f32 0.59460354, %v554_v14  ;;  %v2736_v14 = vld [vmem:[#allocation4 + $0x18] sm:$0xff] }
  0xfb   : > { %v1421_v16 = vld [vmem:[#allocation3 + $0x50] sm:$0xff] }
  0xfc   : > { %730 = vst.msk [vmem:[#allocation3 + $0x58] sm:$0xff] %vm411_vm0, %v580_v15  ;;  %1482 = vrot.lane.b32.xlu1 %v1421_v16, %s2310_s25  ;;  %1229 = vrot.lane.b32.xlu0 %v1421_v16, %s2311_s4  ;;  %v2738_v15 = vld [vmem:[#allocation4 + $0x10] sm:$0xff] }
  0xfd   : > { %976 = vrot.lane.b32.xlu2 %v1421_v16, %s2309_s29 }
 0x100   : > { %v703_v36 = vpop.f32.mrf.mxu2 }
 0x101   : > { %v557_v18 = vpop.f32.mrf.mxu1  ;;  %746 = vst.msk [vmem:[#allocation4 + $0x58] sm:$0xff] %vm411_vm0, %v703_v36 }
 0x102   : > { %v581_v19 = vmul.f32 0.59460354, %v557_v18 }
 0x103   : > { %v1422_v20 = vld [vmem:[#allocation3 + $0x58] sm:$0xff] }
 0x104   : > { %731 = vst.msk [vmem:[#allocation3 + $0x60] sm:$0xff] %vm411_vm0, %v581_v19  ;;  %1484 = vrot.lane.b32.xlu1 %v1422_v20, %s2310_s25  ;;  %1231 = vrot.lane.b32.xlu0 %v1422_v20, %s2311_s4 }
 0x105   : > { %978 = vrot.lane.b32.xlu2 %v1422_v20, %s2309_s29 }
 0x108   : > { %v706_v37 = vpop.f32.mrf.mxu2  ;;  %v2699_v62 = vld [vmem:[#allocation4 + $0x58] sm:$0xff] }
 0x109   : > { %v560_v22 = vpop.f32.mrf.mxu1  ;;  %747 = vst.msk [vmem:[#allocation4 + $0x60] sm:$0xff] %vm411_vm0, %v706_v37 }
 0x10a   : > { %v582_v23 = vmul.f32 0.59460354, %v560_v22 }
 0x10b   : > { %v1170_v24 = vld [vmem:[#allocation3 + $0x60] sm:$0xff] }
 0x10c   : > { %732 = vst.msk [vmem:[#allocation3 + $0x68] sm:$0xff] %vm411_vm0, %v582_v23  ;;  %1233 = vrot.lane.b32.xlu0 %v1170_v24, %s2311_s4  ;;  %980 = vrot.lane.b32.xlu1 %v1170_v24, %s2309_s29 }
 0x110   : > { %v709_v41 = vpop.f32.mrf.mxu2  ;;  %v2689_v58 = vld [vmem:[#allocation4 + $0x60] sm:$0xff] }
 0x111   : > { %v563_v26 = vpop.f32.mrf.mxu1  ;;  %748 = vst.msk [vmem:[#allocation4 + $0x68] sm:$0xff] %vm411_vm0, %v709_v41 }
 0x112   : > { %v583_v27 = vmul.f32 0.59460354, %v563_v26 }
 0x113   : > { %v1171_v28 = vld [vmem:[#allocation3 + $0x68] sm:$0xff] }
 0x114   : > { %733 = vst.msk [vmem:[#allocation3 + $0x70] sm:$0xff] %vm411_vm0, %v583_v27  ;;  %1486 = vrot.lane.b32.xlu1 %v1170_v24, %s2310_s25  ;;  %1235 = vrot.lane.b32.xlu0 %v1171_v28, %s2311_s4 }
 0x118   : > { %v712_v45 = vpop.f32.mrf.mxu2  ;;  %v2683_v55 = vld [vmem:[#allocation4 + $0x68] sm:$0xff] }
 0x119   : > { %v566_v30 = vpop.f32.mrf.mxu1  ;;  %749 = vst.msk [vmem:[#allocation4 + $0x70] sm:$0xff] %vm411_vm0, %v712_v45  ;;  %v2820_v41 = vpack.i.bf16 %v2689_v58, %v2683_v55  ;;  %v751_v45 = vlaneseq }
 0x11a   : > { %v584_v31 = vmul.f32 0.59460354, %v566_v30 }
 0x11b   : > { %v1172_v32 = vld [vmem:[#allocation3 + $0x70] sm:$0xff] }
 0x11c   : > { %734 = vst.msk [vmem:[#allocation3 + $0x78] sm:$0xff] %vm411_vm0, %v584_v31  ;;  %1474 = vrot.lane.b32.xlu0 %v2557_v0, %s2310_s25  ;;  %982 = vrot.lane.b32.xlu1 %v1171_v28, %s2309_s29 }
 0x11d   : > { %1237 = vrot.lane.b32.xlu2 %v1172_v32, %s2311_s4 }
 0x120   : > { %v715_v49 = vpop.f32.mrf.mxu2  ;;  %v2679_v54 = vld [vmem:[#allocation4 + $0x70] sm:$0xff] }
 0x121   : > { %750 = vst.msk [vmem:[#allocation4 + $0x78] sm:$0xff] %vm411_vm0, %v715_v49 }
 0x123   : > { %v920_v34 = vld [vmem:[#allocation3 + $0x78] sm:$0xff] }
 0x124   : > { %1488 = vrot.lane.b32.xlu1 %v1171_v28, %s2310_s25  ;;  %986 = vrot.lane.b32.xlu0 %v920_v34, %s2309_s29 }
 0x125   : > { %1219 = vrot.lane.b32.xlu2 %v2551_v60, %s2311_s4  ;;  %1911 = vmatpush.xpose.msk.msra.mxu3 %vm787_vm1, %v920_v34 }
 0x128   : > { %v2677_v53 = vld [vmem:[#allocation4 + $0x78] sm:$0xff] }
 0x129   : > { %1912 = vmatpush.xpose.msk.msra.mxu3 %vm787_vm1, %v1172_v32  ;;  %883 = vmatpush.msrb.mxu0 %v2677_v53  ;;  %v2798_v37 = vpack.i.bf16 %v2679_v54, %v2677_v53 }
 0x12b   : > { %884 = vmatpush.msrb.mxu0 %v2679_v54 }
 0x12c   : > { %984 = vrot.lane.b32.xlu1 %v1172_v32, %s2309_s29 }
 0x12d   : > { %1239 = vrot.lane.b32.xlu2 %v920_v34, %s2311_s4  ;;  %1913 = vmatpush.xpose.msk.msra.mxu3 %vm787_vm1, %v1171_v28 }
 0x12e   : > { %885 = vmatpush.msrb.mxu0 %v2683_v55 }
 0x130   : > { %886 = vmatpush.msrb.mxu0 %v2689_v58 }
 0x131   : > { %1914 = vmatpush.xpose.msk.msra.mxu3 %vm787_vm1, %v1170_v24 }
 0x132   : > { %887 = vmatpush.msrb.mxu0 %v2699_v62 }
 0x134   : > { %1221 = vrot.lane.b32.xlu1 %v2557_v0, %s2311_s4 }
 0x135   : > { %1492 = vrot.lane.b32.xlu2 %v920_v34, %s2310_s25  ;;  %1915 = vmatpush.xpose.msk.msra.mxu3 %vm787_vm1, %v1422_v20 }
 0x139   : > { %1916 = vmatpush.xpose.msk.msra.mxu3 %vm787_vm1, %v1421_v16  ;;  %v2744_v16 = vld [vmem:[#allocation4 + $0x8] sm:$0xff] }
 0x13c   : > { %1490 = vrot.lane.b32.xlu1 %v1172_v32, %s2310_s25 }
 0x13d   : > { %1468 = vrot.lane.b32.xlu2 %v1414_v40, %s2310_s25  ;;  %1917 = vmatpush.xpose.msk.msra.mxu3 %vm787_vm1, %v2583_v12 }
 0x13e   : > { %v2647_v43 = vpop.permute.xlu0 %964 }
 0x13f   : > { %v2649_v44 = vpop.permute.xlu2 %970 }
 0x141   : > { %1918 = vmatpush.xpose.msk.msra.mxu3 %vm787_vm1, %v2573_v8  ;;  %v2724_v8 = vld [vmem:[#allocation4 + $0x30] sm:$0xff] }
 0x144   : > { %962 = vrot.lane.b32.xlu1 %v1414_v40, %s2309_s29 }
 0x145   : > { %1466 = vrot.lane.b32.xlu2 %v1413_v42, %s2310_s25  ;;  %1919 = vmatpush.xpose.msk.msra.mxu3 %vm787_vm1, %v2563_v4 }
 0x146   : > { %v2661_v47 = vpop.permute.xlu1 %966 }
 0x147   : > { %v2665_v50 = vpop.permute.xlu2 %972 }
 0x149   : > { %1920 = vmatpush.xpose.msk.msra.mxu3 %vm787_vm1, %v2557_v0  ;;  %v2703_v0 = vld [vmem:[#allocation4 + $0x50] sm:$0xff] }
 0x14a   : > { %888 = vmatpush.msrb.mxu0 %v2703_v0 }
 0x14c   : > { %960 = vrot.lane.b32.xlu1 %v1413_v42, %s2309_s29  ;;  %889 = vmatpush.msrb.mxu0 %v2710_v2 }
 0x14d   : > { %1464 = vrot.lane.b32.xlu2 %v2655_v46, %s2310_s25  ;;  %1921 = vmatpush.xpose.msk.msra.mxu3 %vm787_vm1, %v2551_v60 }
 0x14e   : > { %v2663_v48 = vpop.permute.xlu0 %968  ;;  %890 = vmatpush.msrb.mxu0 %v2716_v3 }
 0x14f   : > { %v2685_v57 = vpop.permute.xlu2 %974 }
 0x150   : > { %891 = vmatpush.msrb.mxu0 %v2722_v7 }
 0x151   : > { %1922 = vmatpush.xpose.msk.msra.mxu3 %vm787_vm1, %v2544_v56 }
 0x152   : > { %892 = vmatpush.msrb.mxu0 %v2724_v8 }
 0x154   : > { %1470 = vrot.lane.b32.xlu1 %v2544_v56, %s2310_s25  ;;  %893 = vmatpush.msrb.mxu0 %v2730_v9 }
 0x155   : > { %1923 = vmatpush.xpose.msk.msra.mxu3 %vm787_vm1, %v1414_v40 }
 0x156   : > { %v2673_v51 = vpop.permute.xlu1 %1476  ;;  %v2675_v52 = vpop.permute.xlu0 %1223  ;;  %894 = vmatpush.msrb.mxu0 %v2732_v10 }
 0x157   : > { %v977_v4 = vpop.permute.xlu2 %976 }
 0x158   : > { %895 = vmatpush.msrb.mxu0 %v2736_v14 }
 0x159   : > { %1924 = vmatpush.xpose.msk.msra.mxu3 %vm787_vm1, %v1413_v42 }
 0x15a   : > { %896 = vmatpush.msrb.mxu0 %v2738_v15 }
 0x15c   : > { %1215 = vrot.lane.b32.xlu1 %v1414_v40, %s2311_s4  ;;  %897 = vmatpush.msrb.mxu0 %v2744_v16  ;;  %v2812_v40 = vpack.i.bf16 %v2703_v0, %v2699_v62 }
 0x15d   : > { %1925 = vmatpush.xpose.msk.msra.mxu3 %vm787_vm1, %v2655_v46 }
 0x15e   : > { %v2694_v59 = vpop.permute.xlu0 %1478  ;;  %v2696_v61 = vpop.permute.xlu1 %1225  ;;  %898 = vmatpush.msrb.mxu0 %v2746_v17 }
 0x15f   : > { %v979_v13 = vpop.permute.xlu2 %978 }
 0x161   : > { %1926 = vmatpush.xpose.msk.msra.mxu3 %vm787_vm1, %v2701_v63 }
 0x164   : > { %1927 = vmatmul.msk.f32.vlgmr.msra.gmra.mxu3 %vm787_vm1, %v2707_v1  ;;  %1213 = vrot.lane.b32.xlu1 %v1413_v42, %s2311_s4  ;;  %v2828_v42 = vpack.i.bf16 %v2732_v10, %v2730_v9 }
 0x166   : > { %v2719_v5 = vpop.permute.xlu1 %1480  ;;  %v1228_v6 = vpop.permute.xlu0 %1227 }
 0x16c   : > { %1211 = vrot.lane.b32.xlu1 %v2655_v46, %s2311_s4 }
 0x16e   : > { %v1483_v11 = vpop.permute.xlu1 %1482  ;;  %v1230_v12 = vpop.permute.xlu0 %1229 }
 0x174   : > { %1462 = vrot.lane.b32.xlu1 %v2701_v63, %s2310_s25 }
 0x176   : > { %v1485_v18 = vpop.permute.xlu1 %1484  ;;  %v1232_v19 = vpop.permute.xlu0 %1231 }
 0x177   : > { %v1238_v20 = vpop.permute.xlu2 %1237 }
 0x17c   : > { %2061 = vrot.lane.b32.xlu1 %v2798_v37, %s2309_s29 }
 0x17e   : > { %v1234_v21 = vpop.permute.xlu0 %1233  ;;  %v981_v22 = vpop.permute.xlu1 %980 }
 0x17f   : > { %v1220_v23 = vpop.permute.xlu2 %1219 }
 0x184   : > { %2081 = vrot.lane.b32.xlu1 %v2804_v38, %s2309_s29 }
 0x186   : > { %v1487_v24 = vpop.permute.xlu1 %1486  ;;  %v1236_v25 = vpop.permute.xlu0 %1235 }
 0x187   : > { %v1240_v26 = vpop.permute.xlu2 %1239 }
 0x188   : > { %1946 = vmatpush.xpose.msk.msrb.mxu1 %vm787_vm1, %v1240_v26 }
 0x18c   : > { %1947 = vmatpush.xpose.msk.msrb.mxu1 %vm787_vm1, %v1238_v20  ;;  %2091 = vrot.lane.b32.xlu1 %v2798_v37, %s2310_s25 }
 0x18e   : > { %v1475_v27 = vpop.permute.xlu0 %1474  ;;  %v983_v28 = vpop.permute.xlu1 %982 }
 0x18f   : > { %v1493_v29 = vpop.permute.xlu2 %1492 }
 0x190   : > { %1948 = vmatpush.xpose.msk.msrb.mxu1 %vm787_vm1, %v1236_v25  ;;  %1964 = vmatpush.xpose.msk.msrb.mxu2 %vm787_vm1, %v1493_v29 }
 0x194   : > { %1949 = vmatpush.xpose.msk.msrb.mxu1 %vm787_vm1, %v1234_v21  ;;  %2101 = vrot.lane.b32.xlu1 %v2812_v40, %s2311_s4 }
 0x196   : > { %v1489_v30 = vpop.permute.xlu1 %1488  ;;  %v987_v31 = vpop.permute.xlu0 %986 }
 0x197   : > { %1928 = vmatpush.xpose.msk.msra.mxu0 %vm787_vm1, %v987_v31  ;;  %v2095_v31 = vpack.i.bf16 %v2724_v8, %v2722_v7 }
 0x198   : > { %1950 = vmatpush.xpose.msk.msrb.mxu1 %vm787_vm1, %v1232_v19 }
 0x19c   : > { %1951 = vmatpush.xpose.msk.msrb.mxu1 %vm787_vm1, %v1230_v12  ;;  %2106 = vrot.lane.b32.xlu1 %v2820_v41, %s2310_s25 }
 0x19e   : > { %v985_v32 = vpop.permute.xlu1 %984 }
 0x19f   : > { %1929 = vmatpush.xpose.msk.msra.mxu0 %vm787_vm1, %v985_v32 }
 0x1a0   : > { %1952 = vmatpush.xpose.msk.msrb.mxu1 %vm787_vm1, %v1228_v6 }
 0x1a3   : > { %1930 = vmatpush.xpose.msk.msra.mxu0 %vm787_vm1, %v983_v28 }
 0x1a4   : > { %1953 = vmatpush.xpose.msk.msrb.mxu1 %vm787_vm1, %v2696_v61  ;;  %2111 = vrot.lane.b32.xlu1 %v2828_v42, %s2309_s29 }
 0x1a6   : > { %v1222_v33 = vpop.permute.xlu1 %1221 }
 0x1a7   : > { %1931 = vmatpush.xpose.msk.msra.mxu0 %vm787_vm1, %v981_v22 }
 0x1a8   : > { %1954 = vmatpush.xpose.msk.msrb.mxu1 %vm787_vm1, %v2675_v52 }
 0x1ab   : > { %1932 = vmatpush.xpose.msk.msra.mxu0 %vm787_vm1, %v979_v13 }
 0x1ac   : > { %1955 = vmatpush.xpose.msk.msrb.mxu1 %vm787_vm1, %v1222_v33  ;;  %2116 = vrot.lane.b32.xlu1 %v2804_v38, %s2311_s4 }
 0x1ae   : > { %v1491_v34 = vpop.permute.xlu1 %1490 }
 0x1af   : > { %1933 = vmatpush.xpose.msk.msra.mxu0 %vm787_vm1, %v977_v4  ;;  %1965 = vmatpush.xpose.msk.msrb.mxu2 %vm787_vm1, %v1491_v34 }
 0x1b0   : > { %1956 = vmatpush.xpose.msk.msrb.mxu1 %vm787_vm1, %v1220_v23 }
 0x1b3   : > { %1934 = vmatpush.xpose.msk.msra.mxu0 %vm787_vm1, %v2685_v57  ;;  %1966 = vmatpush.xpose.msk.msrb.mxu2 %vm787_vm1, %v1489_v30 }
 0x1b6   : > { %v963_v35 = vpop.permute.xlu1 %962 }
 0x1b7   : > { %1935 = vmatpush.xpose.msk.msra.mxu0 %vm787_vm1, %v2665_v50  ;;  %1967 = vmatpush.xpose.msk.msrb.mxu2 %vm787_vm1, %v1487_v24 }
 0x1bb   : > { %1936 = vmatpush.xpose.msk.msra.mxu0 %vm787_vm1, %v2649_v44  ;;  %1968 = vmatpush.xpose.msk.msrb.mxu2 %vm787_vm1, %v1485_v18 }
 0x1be   : > { %v961_v36 = vpop.permute.xlu1 %960 }
 0x1bf   : > { %1937 = vmatpush.xpose.msk.msra.mxu0 %vm787_vm1, %v2663_v48  ;;  %1969 = vmatpush.xpose.msk.msrb.mxu2 %vm787_vm1, %v1483_v11 }
 0x1c3   : > { %1938 = vmatpush.xpose.msk.msra.mxu0 %vm787_vm1, %v2661_v47  ;;  %1970 = vmatpush.xpose.msk.msrb.mxu2 %vm787_vm1, %v2719_v5  ;;  %v2850_v47 = vand.u32 127, %v751_v45 }
 0x1c5   : > { %vm753_vm2 = vcmp.lt.s32.totalorder %v2850_v47, 8 }
 0x1c7   : > { %1939 = vmatpush.xpose.msk.msra.mxu0 %vm787_vm1, %v2647_v43  ;;  %1971 = vmatpush.xpose.msk.msrb.mxu2 %vm787_vm1, %v2694_v59 }
 0x1cb   : > { %1940 = vmatpush.xpose.msk.msra.mxu0 %vm787_vm1, %v963_v35  ;;  %1972 = vmatpush.xpose.msk.msrb.mxu2 %vm787_vm1, %v2673_v51  ;;  %v1469_v51 = vpop.permute.xlu2 %1468 }
 0x1cf   : > { %1941 = vmatpush.xpose.msk.msra.mxu0 %vm787_vm1, %v961_v36  ;;  %1973 = vmatpush.xpose.msk.msrb.mxu2 %vm787_vm1, %v1475_v27 }
 0x1d3   : > { %v1467_v54 = vpop.permute.xlu2 %1466 }
 0x1db   : > { %v1465_v59 = vpop.permute.xlu2 %1464 }
 0x1e7   : > { %v856_v39 = vpop.f32.mrf.mxu3 }
 0x1e8   : > { %859 = vmax.xlane.f32.xlu0 %v856_v39 }
 0x1fc   : > { %1472 = vrot.lane.b32.xlu0 %v2551_v60, %s2310_s25  ;;  %v2838_v60 = vpack.i.bf16 %v2738_v15, %v2736_v14 }
 0x1fe   : > { %2126 = vrot.lane.b32.xlu1 %v2838_v60, %s2309_s29 }
 0x204   : > { %1217 = vrot.lane.b32.xlu0 %v2544_v56, %s2311_s4  ;;  %v1471_v56 = vpop.permute.xlu1 %1470 }
 0x20c   : > { %958 = vrot.lane.b32.xlu0 %v2655_v46, %s2309_s29  ;;  %v1216_v48 = vpop.permute.xlu1 %1215 }
 0x214   : > { %956 = vrot.lane.b32.xlu0 %v2701_v63, %s2309_s29  ;;  %v1214_v53 = vpop.permute.xlu1 %1213 }
 0x21c   : > { %938 = vrot.lane.b32.xlu0 %v2707_v1, %s2309_s29  ;;  %v1212_v57 = vpop.permute.xlu1 %1211 }
 0x224   : > { %1209 = vrot.lane.b32.xlu0 %v2701_v63, %s2311_s4  ;;  %v1463_v61 = vpop.permute.xlu1 %1462 }
 0x22c   : > { %1444 = vrot.lane.b32.xlu0 %v2707_v1, %s2310_s25  ;;  %v2062_v3 = vpop.permute.xlu1 %2061 }
 0x22d   : > { %v2064_v5 = vunpack.i.h.bf16 %v2062_v3 }
 0x234   : > { %v2871_v4 = vpop.permute.xlu1 %2081 }
 0x23c   : > { %v2092_v6 = vpop.permute.xlu1 %2091 }
 0x23d   : > { %v2093_v23 = vunpack.i.l.bf16 %v2092_v6  ;;  %v2094_v26 = vunpack.i.h.bf16 %v2092_v6 }
 0x244   : > { %v2874_v13 = vpop.permute.xlu1 %2101 }
 0x24c   : > { %v2107_v27 = vpop.permute.xlu1 %2106 }
 0x24d   : > { %v2108_v28 = vunpack.i.l.bf16 %v2107_v27  ;;  %v2109_v29 = vunpack.i.h.bf16 %v2107_v27 }
 0x25b   : > { %v860_v43 = vpop.xlane.xlu0 %859 }
 0x25c   : > { %v861_v44 = vsub.f32 %v856_v39, %v860_v43  ;;  %v2112_v39 = vpop.permute.xlu1 %2111 }
 0x25d   : > { %v2113_v6 = vunpack.i.l.bf16 %v2112_v39 }
 0x25e   : > { %v862_v46 = vmul.f32 1.442695, %v861_v44 }
 0x260   : > { %2181 = vpow2.f32 %v862_v46 }
 0x266   : > { %v2182_v49 = vpop.eup %2181 }
 0x267   : > { %v864_v50 = vsel %vm753_vm2, %v2182_v49, 0.0 }
 0x268   : > { %865 = vadd.xlane.f32.xlu2 %v864_v50 }
 0x26e   : > { %v1473_v52 = vpop.permute.xlu0 %1472 }
 0x26f   : > { %1974 = vmatpush.xpose.msk.msrb.mxu2 %vm787_vm1, %v1473_v52 }
 0x273   : > { %1975 = vmatpush.xpose.msk.msrb.mxu2 %vm787_vm1, %v1471_v56  ;;  %v2913_v56 = vpop.permute.xlu1 %2116 }
 0x276   : > { %v1218_v55 = vpop.permute.xlu0 %1217 }
 0x277   : > { %1957 = vmatpush.xpose.msk.msrb.mxu1 %vm787_vm1, %v1218_v55  ;;  %1976 = vmatpush.xpose.msk.msrb.mxu2 %vm787_vm1, %v1469_v51 }
 0x27b   : > { %1958 = vmatpush.xpose.msk.msrb.mxu1 %vm787_vm1, %v1216_v48  ;;  %1977 = vmatpush.xpose.msk.msrb.mxu2 %vm787_vm1, %v1467_v54  ;;  %v2127_v49 = vpop.permute.xlu1 %2126 }
 0x27e   : > { %v959_v58 = vpop.permute.xlu0 %958 }
 0x27f   : > { %1942 = vmatpush.xpose.msk.msra.mxu0 %vm787_vm1, %v959_v58  ;;  %1959 = vmatpush.xpose.msk.msrb.mxu1 %vm787_vm1, %v1214_v53 }
 0x280   : > { %1978 = vmatpush.xpose.msk.msrb.mxu2 %vm787_vm1, %v1465_v59  ;;  %1191 = vrot.lane.b32.xlu2 %v2707_v1, %s2311_s4  ;;  %v2063_v1 = vunpack.i.l.bf16 %v2062_v3 }
 0x282   : > { %1131 = vmatpush.msrb.mxu3 %v2063_v1 }
 0x283   : > { %1960 = vmatpush.xpose.msk.msrb.mxu1 %vm787_vm1, %v1212_v57  ;;  %v2083_v57 = vunpack.i.l.bf16 %v2871_v4 }
 0x284   : > { %1979 = vmatpush.xpose.msk.msrb.mxu2 %vm787_vm1, %v1463_v61  ;;  %1132 = vmatpush.msrb.mxu3 %v2064_v5 }
 0x286   : > { %v957_v62 = vpop.permute.xlu0 %956 }
 0x287   : > { %1943 = vmatpush.xpose.msk.msra.mxu0 %vm787_vm1, %v957_v62  ;;  %v2084_v62 = vunpack.i.h.bf16 %v2871_v4 }
 0x28e   : > { %v939_v63 = vpop.permute.xlu0 %938 }
 0x296   : > { %v1210_v0 = vpop.permute.xlu0 %1209 }
 0x297   : > { %1961 = vmatpush.xpose.msk.msrb.mxu1 %vm787_vm1, %v1210_v0 }
 0x29e   : > { %v1445_v2 = vpop.permute.xlu0 %1444 }
 0x29f   : > { %1980 = vmatmul.msk.f32.vlgmr.msrb.gmra.mxu2 %vm787_vm1, %v1445_v2 }
 0x2db   : > { %v866_v9 = vpop.xlane.xlu2 %865 }
 0x2dc   : > { %2183 = vrcp.f32 %v866_v9  ;;  %v878_v15 = vand.u32 2147483648, %v866_v9  ;;  %v876_v19 = vand.u32 2147483647, %v866_v9  ;;  %vm872_vm4 = vweird.f32 %v866_v9 }
 0x2de   : > { %v879_v21 = vor.u32 1.1754944e-38, %v878_v15  ;;  %vm877_vm6 = vcmp.eq.f32.partialorder %v876_v19, 8.507059e+37  ;;  %v2129_v15 = vunpack.i.h.bf16 %v2127_v49 }
 0x2e2   : > { %v2184_v10 = vpop.eup %2183 }
 0x2e3   : > { %v868_v11 = vmul.f32 %v2184_v10, %v866_v9  ;;  %v1192_v12 = vpop.permute.xlu2 %1191  ;;  %vm873_vm3 = vweird.f32 %v2184_v10 }
 0x2e4   : > { %1962 = vmatmul.msk.f32.vlgmr.msrb.gmra.mxu1 %vm787_vm1, %v1192_v12  ;;  %vm874_vm5 = vmor %vm872_vm4, %vm873_vm3  ;;  %vm1155_vm4 = vcmask 130112  }
 0x2e5   : > { %v869_v14 = vsub.f32 1.0, %v868_v11  ;;  %v2128_v11 = vunpack.i.l.bf16 %v2127_v49 }
 0x2e7   : > { %v870_v18 = vmul.f32 %v2184_v10, %v869_v14  ;;  %v2140_v14 = vpack.i.bf16 %v2746_v17, %v2744_v16 }
 0x2e9   : > { %v871_v20 = vadd.f32 %v2184_v10, %v870_v18 }
 0x2eb   : > { %v875_v22 = vsel %vm874_vm5, %v2184_v10, %v871_v20  ;;  %v2114_v10 = vunpack.i.h.bf16 %v2112_v39  ;;  %vm1408_vm5 = vcmask 195712  }
 0x2ec   : > { %v880_v24 = vsel %vm877_vm6, %v879_v21, %v875_v22  ;;  %vm1661_vm6 = vcmask 261312  }
 0x2ed   : > { %v881_v25 = vmul.f32 %v880_v24, %v864_v50 }
 0x2ef   : > { %882 = vst [vmem:[%s2880_s26] sm:$0xff] %v881_v25  ;;  %899 = vmatmul.f32.vlgmr.msrb.gmra.mxu0 %v881_v25 }
 0x2f0   : > { %1637 = vmatpush.msrb.mxu0 %v2093_v23 }
 0x2f2   : > { %1638 = vmatpush.msrb.mxu0 %v2094_v26 }
 0x2f4   : > { %1639 = vmatpush.msrb.mxu0 %v2108_v28 }
 0x2f6   : > { %1640 = vmatpush.msrb.mxu0 %v2109_v29 }
 0x2f7   : > { %1944 = vmatmul.msk.f32.vlgmr.msra.gmra.mxu0 %vm787_vm1, %v939_v63 }
 0x322   : > { %v1545_v30 = vpop.f32.mrf.mxu2 }
 0x323   : > { %1548 = vmax.xlane.f32.xlu0 %v1545_v30 }
 0x337   : > { %2071 = vrot.lane.b32.xlu0 %v2812_v40, %s2309_s29 }
 0x33f   : > { %2076 = vrot.lane.b32.xlu0 %v2798_v37, %s2311_s4 }
 0x347   : > { %2086 = vrot.lane.b32.xlu0 %v2820_v41, %s2311_s4 }
 0x34f   : > { %2096 = vrot.lane.b32.xlu0 %v2095_v31, %s2309_s29 }
 0x361   : > { %v1292_v32 = vpop.f32.mrf.mxu1 }
 0x362   : > { %1295 = vmax.xlane.f32.xlu2 %v1292_v32 }
 0x36c   : > { %v900_v33 = vpop.f32.mrf.mxu0 }
 0x36d   : > { %903 = vst.msk [vmem:[#allocation5] sm:$0xff] %vm787_vm1, %v900_v33 }
 0x374   : > { %v1039_v34 = vpop.f32.mrf.mxu0 }
 0x375   : > { %1042 = vmax.xlane.f32.xlu1 %v1039_v34 }
 0x37a   : > { %2066 = vrot.lane.b32.xlu2 %v2820_v41, %s2309_s29 }
 0x382   : > { %2121 = vrot.lane.b32.xlu2 %v2812_v40, %s2310_s25 }
 0x38a   : > { %2136 = vrot.lane.b32.xlu2 %v2804_v38, %s2310_s25 }
 0x38e   : > { %2131 = vrot.lane.b32.xlu1 %v2095_v31, %s2311_s4 }
 0x392   : > { %2146 = vrot.lane.b32.xlu2 %v2828_v42, %s2311_s4 }
 0x396   : > { %v1549_v7 = vpop.xlane.xlu0 %1548 }
 0x397   : > { %v1550_v8 = vsub.f32 %v1545_v30, %v1549_v7 }
 0x399   : > { %v1551_v35 = vmul.f32 1.442695, %v1550_v8 }
 0x39a   : > { %2151 = vrot.lane.b32.xlu2 %v2095_v31, %s2310_s25 }
 0x39b   : > { %2185 = vpow2.f32 %v1551_v35 }
 0x3a1   : > { %v2186_v36 = vpop.eup %2185 }
 0x3a2   : > { %2161 = vrot.lane.b32.xlu2 %v2828_v42, %s2310_s25  ;;  %v2908_v37 = vsel %vm753_vm2, %v2186_v36, 0.0 }
 0x3a9   : > { %v2072_v38 = vpop.permute.xlu0 %2071 }
 0x3aa   : > { %v2073_v52 = vunpack.i.l.bf16 %v2072_v38  ;;  %v2074_v53 = vunpack.i.h.bf16 %v2072_v38 }
 0x3b1   : > { %v2911_v40 = vpop.permute.xlu0 %2076 }
 0x3b8   : > { %1554 = vadd.xlane.f32.xlu1 %v2908_v37 }
 0x3b9   : > { %v2915_v44 = vpop.permute.xlu0 %2086 }
 0x3c1   : > { %v2097_v58 = vpop.permute.xlu0 %2096 }
 0x3c2   : > { %v2098_v0 = vunpack.i.l.bf16 %v2097_v58  ;;  %v2099_v3 = vunpack.i.h.bf16 %v2097_v58 }
 0x3d5   : > { %v1296_v41 = vpop.xlane.xlu2 %1295 }
 0x3d6   : > { %v1297_v43 = vsub.f32 %v1292_v32, %v1296_v41 }
 0x3d8   : > { %v1298_v42 = vmul.f32 1.442695, %v1297_v43 }
 0x3da   : > { %2187 = vpow2.f32 %v1298_v42 }
 0x3dd   : > { %v2067_v45 = vpop.permute.xlu2 %2066 }
 0x3de   : > { %v2068_v46 = vunpack.i.l.bf16 %v2067_v45  ;;  %v2069_v50 = vunpack.i.h.bf16 %v2067_v45 }
 0x3e0   : > { %v2188_v48 = vpop.eup %2187  ;;  %1133 = vmatpush.msrb.mxu3 %v2068_v46 }
 0x3e1   : > { %v2919_v51 = vsel %vm753_vm2, %v2188_v48, 0.0 }
 0x3e2   : > { %1134 = vmatpush.msrb.mxu3 %v2069_v50  ;;  %1301 = vadd.xlane.f32.xlu0 %v2919_v51 }
 0x3e4   : > { %1135 = vmatpush.msrb.mxu3 %v2073_v52  ;;  %v2078_v52 = vunpack.i.l.bf16 %v2911_v40 }
 0x3e5   : > { %v2122_v54 = vpop.permute.xlu2 %2121 }
 0x3e6   : > { %v2123_v55 = vunpack.i.l.bf16 %v2122_v54  ;;  %1136 = vmatpush.msrb.mxu3 %v2074_v53  ;;  %v2124_v59 = vunpack.i.h.bf16 %v2122_v54  ;;  %v2079_v53 = vunpack.i.h.bf16 %v2911_v40 }
 0x3e8   : > { %v1043_v61 = vpop.xlane.xlu1 %1042  ;;  %1137 = vmatpush.msrb.mxu3 %v2083_v57  ;;  %1641 = vmatpush.msrb.mxu0 %v2123_v55  ;;  %v2088_v55 = vunpack.i.l.bf16 %v2915_v44 }
 0x3e9   : > { %v1044_v63 = vsub.f32 %v1039_v34, %v1043_v61  ;;  %v2089_v61 = vunpack.i.h.bf16 %v2915_v44  ;;  %v2118_v44 = vunpack.i.l.bf16 %v2913_v56 }
 0x3ea   : > { %1138 = vmatpush.msrb.mxu3 %v2084_v62  ;;  %1642 = vmatpush.msrb.mxu0 %v2124_v59 }
 0x3eb   : > { %v1045_v2 = vmul.f32 1.442695, %v1044_v63 }
 0x3ec   : > { %1139 = vmatpush.msrb.mxu3 %v2098_v0 }
 0x3ed   : > { %2189 = vpow2.f32 %v1045_v2  ;;  %v2137_v1 = vpop.permute.xlu2 %2136  ;;  %v2103_v2 = vunpack.i.l.bf16 %v2874_v13 }
 0x3ee   : > { %v2138_v5 = vunpack.i.l.bf16 %v2137_v1  ;;  %1140 = vmatpush.msrb.mxu3 %v2099_v3  ;;  %v2139_v9 = vunpack.i.h.bf16 %v2137_v1  ;;  %v2104_v1 = vunpack.i.h.bf16 %v2874_v13 }
 0x3f0   : > { %1141 = vmatpush.msrb.mxu3 %v2113_v6  ;;  %1643 = vmatpush.msrb.mxu0 %v2138_v5 }
 0x3f2   : > { %1142 = vmatpush.msrb.mxu3 %v2114_v10  ;;  %1644 = vmatpush.msrb.mxu0 %v2139_v9 }
 0x3f3   : > { %v2190_v4 = vpop.eup %2189 }
 0x3f4   : > { %1143 = vmatpush.msrb.mxu3 %v2128_v11  ;;  %v2926_v12 = vsel %vm753_vm2, %v2190_v4, 0.0 }
 0x3f5   : > { %1048 = vadd.xlane.f32.xlu2 %v2926_v12  ;;  %v2931_v18 = vpop.permute.xlu2 %2146 }
 0x3f6   : > { %2141 = vrot.lane.b32.xlu0 %v2140_v14, %s2309_s29  ;;  %1144 = vmatpush.msrb.mxu3 %v2129_v15  ;;  %s1702_s29 = scalar_lea.sflag [#allocation9], %s2877_s18 }
 0x3fd   : > { %v2152_v19 = vpop.permute.xlu2 %2151 }
 0x3fe   : > { %v2153_v20 = vunpack.i.l.bf16 %v2152_v19  ;;  %2156 = vrot.lane.b32.xlu0 %v2838_v60, %s2311_s4  ;;  %v2154_v21 = vunpack.i.h.bf16 %v2152_v19 }
 0x400   : > { %1645 = vmatpush.msrb.mxu0 %v2153_v20  ;;  %v2940_v17 = vpop.permute.xlu1 %2131  ;;  %v2148_v20 = vunpack.i.l.bf16 %v2931_v18 }
 0x401   : > { %v2133_v13 = vunpack.i.l.bf16 %v2940_v17  ;;  %v2134_v15 = vunpack.i.h.bf16 %v2940_v17 }
 0x402   : > { %1646 = vmatpush.msrb.mxu0 %v2154_v21 }
 0x405   : > { %v2162_v47 = vpop.permute.xlu2 %2161 }
 0x406   : > { %v2163_v22 = vunpack.i.l.bf16 %v2162_v47  ;;  %2166 = vrot.lane.b32.xlu0 %v2140_v14, %s2311_s4  ;;  %v2164_v16 = vunpack.i.h.bf16 %v2162_v47  ;;  %v2149_v47 = vunpack.i.h.bf16 %v2931_v18 }
 0x408   : > { %1647 = vmatpush.msrb.mxu0 %v2163_v22 }
 0x40a   : > { %1648 = vmatpush.msrb.mxu0 %v2164_v16 }
 0x40d   : > { %2171 = vrot.lane.b32.xlu2 %v2838_v60, %s2310_s25 }
 0x40e   : > { %2176 = vrot.lane.b32.xlu0 %v2140_v14, %s2310_s25  ;;  %v2119_v14 = vunpack.i.h.bf16 %v2913_v56 }
 0x42b   : > { %v1555_v23 = vpop.xlane.xlu1 %1554 }
 0x42c   : > { %2191 = vrcp.f32 %v1555_v23  ;;  %v1567_v27 = vand.u32 2147483648, %v1555_v23  ;;  %v1565_v29 = vand.u32 2147483647, %v1555_v23  ;;  %vm1561_vm8 = vweird.f32 %v1555_v23 }
 0x42e   : > { %v1568_v31 = vor.u32 1.1754944e-38, %v1567_v27  ;;  %vm1566_vm10 = vcmp.eq.f32.partialorder %v1565_v29, 8.507059e+37  ;;  %v1666_v27 = vld [vmem:[%s3047_s6 + $0x10] sm:$0xff]  ;;  %v1664_v29 = vld [vmem:[%s3047_s6] sm:$0xff] }
 0x432   : > { %v2192_v24 = vpop.eup %2191 }
 0x433   : > { %v1557_v25 = vmul.f32 %v2192_v24, %v1555_v23  ;;  %vm1562_vm7 = vweird.f32 %v2192_v24 }
 0x434   : > { %vm1563_vm9 = vmor %vm1561_vm8, %vm1562_vm7 }
 0x435   : > { %v1558_v26 = vsub.f32 1.0, %v1557_v25 }
 0x437   : > { %v1559_v28 = vmul.f32 %v2192_v24, %v1558_v26  ;;  %v1667_v26 = vld [vmem:[%s3047_s6 + $0x18] sm:$0xff] }
 0x439   : > { %v1560_v30 = vadd.f32 %v2192_v24, %v1559_v28  ;;  %v1665_v28 = vld [vmem:[%s3047_s6 + $0x8] sm:$0xff] }
 0x43b   : > { %v1564_v60 = vsel %vm1563_vm9, %v2192_v24, %v1560_v30 }
 0x43c   : > { %v1569_v32 = vsel %vm1566_vm10, %v1568_v31, %v1564_v60 }
 0x43d   : > { %v2943_v33 = vmul.f32 %v1569_v32, %v2908_v37 }
 0x43f   : > { %1981 = vst [vmem:[%s2880_s26 + $0x18] sm:$0xff] %v2943_v33 }
 0x455   : > { %v1302_v34 = vpop.xlane.xlu0 %1301 }
 0x456   : > { %2193 = vrcp.f32 %v1302_v34  ;;  %v1314_v36 = vand.u32 2147483648, %v1302_v34  ;;  %v1312_v39 = vand.u32 2147483647, %v1302_v34  ;;  %vm1308_vm12 = vweird.f32 %v1302_v34 }
 0x458   : > { %v1315_v43 = vor.u32 1.1754944e-38, %v1314_v36  ;;  %vm1313_vm14 = vcmp.eq.f32.partialorder %v1312_v39, 8.507059e+37 }
 0x45c   : > { %v2194_v7 = vpop.eup %2193 }
 0x45d   : > { %v1304_v8 = vmul.f32 %v2194_v7, %v1302_v34  ;;  %vm1309_vm11 = vweird.f32 %v2194_v7 }
 0x45e   : > { %vm1310_vm13 = vmor %vm1308_vm12, %vm1309_vm11 }
 0x45f   : > { %v1305_v35 = vsub.f32 1.0, %v1304_v8 }
 0x461   : > { %v1306_v38 = vmul.f32 %v2194_v7, %v1305_v35 }
 0x463   : > { %v1307_v41 = vadd.f32 %v2194_v7, %v1306_v38 }
 0x465   : > { %v1311_v42 = vsel %vm1310_vm13, %v2194_v7, %v1307_v41 }
 0x466   : > { %v1316_v37 = vsel %vm1313_vm14, %v1315_v43, %v1311_v42 }
 0x467   : > { %v2948_v45 = vmul.f32 %v1316_v37, %v2919_v51 }
 0x468   : > { %v1049_v46 = vpop.xlane.xlu2 %1048  ;;  %v2142_v48 = vpop.permute.xlu0 %2141 }
 0x469   : > { %2195 = vrcp.f32 %v1049_v46  ;;  %v2143_v49 = vunpack.i.l.bf16 %v2142_v48  ;;  %1963 = vst [vmem:[%s2880_s26 + $0x10] sm:$0xff] %v2948_v45  ;;  %v2144_v50 = vunpack.i.h.bf16 %v2142_v48  ;;  %v1061_v63 = vand.u32 2147483648, %v1049_v46 }
 0x46a   : > { %v1059_v40 = vand.u32 2147483647, %v1049_v46  ;;  %vm1055_vm1 = vweird.f32 %v1049_v46 }
 0x46b   : > { %1145 = vmatpush.msrb.mxu3 %v2143_v49  ;;  %v1062_v6 = vor.u32 1.1754944e-38, %v1061_v63 }
 0x46c   : > { %vm1060_vm3 = vcmp.eq.f32.partialorder %v1059_v40, 8.507059e+37 }
 0x46d   : > { %1146 = vmatpush.msrb.mxu3 %v2144_v50 }
 0x46f   : > { %1384 = vmatpush.msra.mxu3 %v2078_v52  ;;  %v2196_v54 = vpop.eup %2195 }
 0x470   : > { %v1051_v57 = vmul.f32 %v2196_v54, %v1049_v46  ;;  %v2172_v51 = vpop.permute.xlu2 %2171  ;;  %v2157_v58 = vpop.permute.xlu0 %2156  ;;  %vm1056_vm15 = vweird.f32 %v2196_v54 }
 0x471   : > { %1385 = vmatpush.msra.mxu3 %v2079_v53  ;;  %v2173_v59 = vunpack.i.l.bf16 %v2172_v51  ;;  %v2174_v0 = vunpack.i.h.bf16 %v2172_v51  ;;  %vm1057_vm2 = vmor %vm1055_vm1, %vm1056_vm15  ;;  %v2159_v56 = vunpack.i.h.bf16 %v2157_v58 }
 0x472   : > { %v1052_v62 = vsub.f32 1.0, %v1051_v57 }
 0x473   : > { %1386 = vmatpush.msra.mxu3 %v2088_v55  ;;  %1649 = vmatpush.msrb.mxu0 %v2173_v59 }
 0x474   : > { %v1053_v3 = vmul.f32 %v2196_v54, %v1052_v62 }
 0x475   : > { %1387 = vmatpush.msra.mxu3 %v2089_v61  ;;  %1650 = vmatpush.msrb.mxu0 %v2174_v0 }
 0x476   : > { %v1054_v5 = vadd.f32 %v2196_v54, %v1053_v3 }
 0x477   : > { %1388 = vmatpush.msra.mxu3 %v2103_v2 }
 0x478   : > { %v2167_v9 = vpop.permute.xlu0 %2166  ;;  %v1058_v10 = vsel %vm1057_vm2, %v2196_v54, %v1054_v5 }
 0x479   : > { %1389 = vmatpush.msra.mxu3 %v2104_v1  ;;  %v1063_v11 = vsel %vm1060_vm3, %v1062_v6, %v1058_v10  ;;  %v2168_v16 = vunpack.i.l.bf16 %v2167_v9  ;;  %v2169_v17 = vunpack.i.h.bf16 %v2167_v9 }
 0x47a   : > { %v1064_v4 = vmul.f32 %v1063_v11, %v2926_v12  ;;  %v2158_v12 = vunpack.i.l.bf16 %v2157_v58 }
 0x47b   : > { %1390 = vmatpush.msra.mxu3 %v2118_v44 }
 0x47c   : > { %1945 = vst [vmem:[%s2880_s26 + $0x8] sm:$0xff] %v1064_v4  ;;  %1147 = vmatmul.f32.vlgmr.msrb.gmra.mxu3 %v1064_v4 }
 0x47d   : > { %1391 = vmatpush.msra.mxu3 %v2119_v14 }
 0x47f   : > { %1392 = vmatpush.msra.mxu3 %v2133_v13 }
 0x480   : > { %v2177_v19 = vpop.permute.xlu0 %2176 }
 0x481   : > { %v2178_v21 = vunpack.i.l.bf16 %v2177_v19  ;;  %1393 = vmatpush.msra.mxu3 %v2134_v15  ;;  %v2179_v22 = vunpack.i.h.bf16 %v2177_v19 }
 0x483   : > { %1394 = vmatpush.msra.mxu3 %v2148_v20  ;;  %1651 = vmatpush.msrb.mxu0 %v2178_v21 }
 0x485   : > { %1395 = vmatpush.msra.mxu3 %v2149_v47  ;;  %1652 = vmatpush.msrb.mxu0 %v2179_v22 }
 0x486   : > { %1653 = vmatmul.f32.vlgmr.msrb.gmra.mxu0 %v2943_v33 }
 0x487   : > { %1396 = vmatpush.msra.mxu3 %v2158_v12 }
 0x489   : > { %1397 = vmatpush.msra.mxu3 %v2159_v56 }
 0x48b   : > { %1398 = vmatpush.msra.mxu3 %v2168_v16 }
 0x48d   : > { %1399 = vmatpush.msra.mxu3 %v2169_v17 }
 0x48e   : > { %1400 = vmatmul.f32.vlgmr.msra.gmra.mxu3 %v2948_v45 }
 0x48f   : > { %1687 = vmatpush.msrb.mxu3 %v1667_v26 }
 0x491   : > { %1688 = vmatpush.msrb.mxu3 %v1666_v27 }
 0x493   : > { %1689 = vmatpush.msrb.mxu3 %v1665_v28 }
 0x495   : > { %1690 = vmatpush.msrb.mxu3 %v1664_v29 }
 0x4ff   : > { %v1148_v23 = vpop.f32.mrf.mxu3 }
 0x500   : > { %1152 = vrot.lane.b32.xlu2 %v1148_v23, %s3051_s27 }
 0x503   : > { %v1654_v18 = vpop.f32.mrf.mxu0 }
 0x504   : > { %1658 = vrot.lane.b32.xlu0 %v1654_v18, %s2313_s28  ;;  %s1730_s28 = sshll.u32 %s2880_s26, 4  ;;  %s2217_s26 = scalar_lea.hbm %s3050_s9, 64  ;;  %s1731_s28 = int_to_ptr.vmem [resolvable:$true] %s1730_s28 }
 0x511   : > { %v1401_v24 = vpop.f32.mrf.mxu3 }
 0x512   : > { %1405 = vrot.lane.b32.xlu1 %v1401_v24, %s2314_s15  ;;  %s1992_s15 = sshll.u32 %s2299_s12, 5 }
 0x513   : > { %s1729_s23 = scalar_lea.hbm %s3050_s9, %s1992_s15 }
 0x514   : > { %s1732_s1 = sshll.u32 %s1729_s23, 4  ;;  %s1733_s1 = int_to_ptr.hbm [resolvable:$true] %s1732_s1 }
 0x515   : > { %s2211_s25 = sshra.s32 %s1733_s1, 4  ;;  %s2212_s25 = int_to_ptr.hbm [resolvable:$true] %s2211_s25 }
 0x516   : > { %s2213_s4 = scalar_lea.hbm %s2212_s25, 32  ;;  %p2218_p1 = scmp.lt.s32.totalorder %s2212_s25, %s3050_s9 }
 0x517   : > { %p2214_p12 = scmp.ne.s32.totalorder %s2212_s25, %s2213_s4  ;;  %p2219_p2 = scmp.lt.s32.totalorder %s2217_s26, %s2213_s4 }
 0x519   : > { %p2215_p13 = pnand %p2214_p12, %p2406_p4  ;;  %p2220_p3 = por %p2219_p2, %p2218_p1 }
 0x51b   : > { %p2216_p0 = pneg %p2215_p13 }
 0x51d   : > { %p2221_p5 = pnand %p2220_p3, %p2216_p0 }
 0x55a   : > { %v1153_v25 = vpop.permute.xlu2 %1152 }
 0x55b   : > { %1156 = vst.msk [vmem:[#allocation5] sm:$0xff] %vm1155_vm4, %v1153_v25 }
 0x576   : > { %v1659_v31 = vpop.permute.xlu0 %1658 }
 0x584   : > { %v1406_v30 = vpop.permute.xlu1 %1405 }
 0x585   : > { %1409 = vst.msk [vmem:[#allocation5] sm:$0xff] %vm1408_vm5, %v1406_v30 }
 0x586   : > { %1662 = vst.msk [vmem:[#allocation5] sm:$0xff] %vm1661_vm6, %v1659_v31 }
 0x58d   : > { %v1663_v60 = vld [vmem:[#allocation5] sm:$0xff] }
 0x58e   : > { %1982 = vmatmul.msk.f32.vlgmr.msrb.gmra.mxu3 %vm411_vm0, %v1663_v60 }
 0x58f   : > { %2224 = shalt.err (!%p2221_p5)
}
 0x590   : > { %s2315_s15 = smov 128   ;;  %s3064_s16 = smov 8   ;;  %v2180_v32 = vld [vmem:[%s3048_s7] ss:$0 sm:$0xff] }
 0x591   : > { %1994 = dma.vmem_to_hbm [thread:$0]  (%p2406_p4), %s1731_s28, 512, %s1733_s1, %s1702_s29, %s2315_s15, %s2315_s15, %s3064_s16  }
 0x592   : > { %s1871_s20 = sshll.u32 %s2877_s18, 3  ;;  %s1985_s23 = sshll.u32 %s2299_s12, 3 }
 0x593   : > { %s1713_s0 = scalar_lea.hbm %s3049_s8, %s1985_s23  ;;  %s381_s4 = scalar_lea.vmem [#allocation6], %s1871_s20 }
 0x594   : > { %s1715_s26 = sshll.u32 %s381_s4, 4  ;;  %s1717_s3 = sshll.u32 %s1713_s0, 4  ;;  %s1716_s26 = int_to_ptr.vmem [resolvable:$true] %s1715_s26  ;;  %s1718_s3 = int_to_ptr.hbm [resolvable:$true] %s1717_s3 }
 0x595   : > { %s1697_s28 = scalar_lea.sflag [#allocation7], %s2877_s18  ;;  %s2239_s12 = sshra.s32 %s1718_s3, 4  ;;  %s2240_s12 = int_to_ptr.hbm [resolvable:$true] %s2239_s12 }
 0x596   : > { %s2241_s1 = scalar_lea.hbm %s2240_s12, 8  ;;  %s2245_s16 = scalar_lea.hbm %s3049_s8, 16 }
 0x597   : > { %p2242_p6 = scmp.ne.s32.totalorder %s2240_s12, %s2241_s1  ;;  %p2246_p10 = scmp.lt.s32.totalorder %s2240_s12, %s3049_s8 }
 0x598   : > { %p2247_p11 = scmp.lt.s32.totalorder %s2245_s16, %s2241_s1 }
 0x599   : > { %p2243_p7 = pnand %p2242_p6, %p2406_p4 }
 0x59a   : > { %p2248_p12 = por %p2247_p11, %p2246_p10 }
 0x59b   : > { %p2244_p9 = pneg %p2243_p7 }
 0x59d   : > { %p2249_p13 = pnand %p2248_p12, %p2244_p9 }
 0x611   : > { %v1692_v33 = vpop.f32.mrf.mxu3 }
 0x612   : > { %v1693_v34 = vadd.f32 %v2180_v32, %v1692_v33 }
 0x614   : > { %1695 = vst.msk [vmem:[%s381_s4] sm:$0xff] %vm411_vm0, %v1693_v34 }
 0x615   : > { %2252 = shalt.err (!%p2249_p13)
}
 0x616   : > { %1993 = dma.vmem_to_hbm [thread:$0]  (%p2406_p4), %s1716_s26, 128, %s1718_s3, %s1697_s28  }
 0x617 PF: > { %p2004_p0 = scmp.ge.s32.totalorder %s2307_s14, 2  ;;  %s1747_s18 = sand.u32 1, %s2287_s30  }
 0x618   : > { %s1748_s27 = scalar_lea.sflag [#allocation7], %s1747_s18 }
 0x619   : > { %p1998_p1 = pnand %p2004_p0, %p2413_p8 }
 0x61b   : > { %p1999_p2 = pneg %p1998_p1 }
 0x61d   : > { %2278 = dma.done.wait (%p1999_p2), %s1748_s27, 128  }
 0x61e   : > { %2280 = vsyncadd (%p1999_p2), %s1748_s27, 4294967168  ;;  %s1758_s24 = scalar_lea.sflag [#allocation9], %s1747_s18 }
 0x61f   : > { %2282 = dma.done.wait (%p1999_p2), %s1758_s24, 512  }
 0x620   : > { %2284 = vsyncadd (%p1999_p2), %s1758_s24, 4294966784  ;;  %s26_s14 = sadd.s32 1, %s2307_s14   ;;  %s3065_s30 = smov %s2291_s10 }
 0x621   : > { %p23_p3 = scmp.ge.s32.totalorder %s26_s14, 4   ;;  %s3066_s10 = smov %s2295_s11 }
 0x622   : > { %s3067_s11 = smov %s2419_s22  ;;  %s3068_s12 = smov %s2303_s13 }
 0x623   : > { %s3069_s13 = smov %s3071_s17  ;;  %25 = sbr.rel (!%p23_p3) target bundleno = 12 (0xc), region = 113 }
 0x628   :  { %1764 = vsyncpa [#allocation7], 1 }
 0x629   :  { %1766 = vsyncpa [#allocation7 + $0x1], 1 }
 0x62a   :  { %1767 = vsyncpa [#allocation9], 1 }
 0x62b   :  { %1769 = vsyncpa [#allocation9 + $0x1], 1 }

</bundles_post_ra>
